<compile_context>
chip_gen: v7x
topology: tpu7x:2x2x1
jax: 0.10.0
libtpu: 0.0.40
codegen_flags: <defaults>
</compile_context>

<pallas_src>
import jax
import jax.numpy as jnp
from jax.experimental import pallas as pl
from jax.experimental.pallas import tpu as pltpu

# ----------------------------- model hyper-parameters -----------------------------
IN_CH = 4                    # input_dim
CH0 = 16                     # channels (level 0)
CH1 = 32                     # channels (level 1) == num_features == d_model
D_MODEL = CH1
D_STATE = 16
D_CONV = 4
EXPAND = 2
D_INNER = EXPAND * D_MODEL   # 64
DT_RANK = -(-D_MODEL // 16)  # 2
DT_BC_N = D_INNER + 2 * D_STATE   # fused dt|B|C projection width = 96

F32 = jnp.float32
VMEM_LIMIT = 32 * 1024 * 1024     # explicit scoped-VMEM limit (safe on v5e/v6e/v7x)

# ----------------------------- kernel A pack layout -----------------------------
_PK = 4 * 9 * IN_CH               # packed stem input width = 144
_A_ROWS = (("stem", _PK), ("w1a", 4 * CH0), ("w2a", 4 * CH0 * 4),
           ("w1b", 4 * CH0), ("w2b", 4 * CH0 * 4),
           ("down", 4 * CH0), ("w1c", CH1), ("w2c", CH1 * 4),
           ("w1d", CH1), ("w2d", CH1 * 4))
_A_OFF = {}
_off = 0
for _n, _r in _A_ROWS:
    _A_OFF[_n] = _off
    _off += _r
_A_BIAS0 = _off                   # 1168 (multiple of 8); each bias gets its own 8-row block
_A_PACK_W = 4 * CH0 * 4           # 256 (widest matrix)

# ----------------------------- kernel B pack layout -----------------------------
_B_WIN = 0                        # w_in   [32, 128]
_B_WDTBC = _B_WIN + D_MODEL       # 32     w_dtbc [64, 96]
_B_WOF = _B_WDTBC + D_INNER       # 96     w_out@w_fc [64, 2]
_V_BIN, _V_BCONV, _V_BDT, _V_D, _V_BOF, _V_WCONV = 0, 8, 16, 24, 32, 40   # vpack rows
_SC_A = 0                         # scanpack lanes: a_tile [.,64]
_SC_EB = D_INNER                  # 64: B-diag-select mask [., 32]
_SC_EC = D_INNER + 2 * D_STATE    # 96: C-diag-select mask [., 32]
_SC_R = D_INNER + 4 * D_STATE     # 128: repeat matrix R [., T]


# ================================ kernel A ================================
def _spatial_kernel(p_ref, pk_ref, pool_ref, o_ref):
    def wmat(name, nrows, ncols):
        r = _A_OFF[name]
        return pk_ref[r:r + nrows, :ncols]

    def bias(i, ncols):
        r = _A_BIAS0 + 8 * i
        return pk_ref[r:r + 1, :ncols]

    gelu = lambda v: jax.nn.gelu(v, approximate=True)
    dot = lambda a, b: jnp.dot(a, b, preferred_element_type=F32)

    # stem 3x3/s2 conv, packed 4 pixels/row (block-diagonal weight) -> [rows, 64]
    x = gelu(dot(p_ref[...], wmat("stem", _PK, 4 * CH0)) + bias(0, 4 * CH0))
    # two residual channel-MLP blocks @16ch (packed -> 64/256-lane matmuls)
    h = gelu(dot(x, wmat("w1a", 4 * CH0, 4 * CH0 * 4)) + bias(1, 4 * CH0 * 4))
    x = x + dot(h, wmat("w2a", 4 * CH0 * 4, 4 * CH0)) + bias(2, 4 * CH0)
    h = gelu(dot(x, wmat("w1b", 4 * CH0, 4 * CH0 * 4)) + bias(3, 4 * CH0 * 4))
    x = x + dot(h, wmat("w2b", 4 * CH0 * 4, 4 * CH0)) + bias(4, 4 * CH0)
    # 2x2/s2 downsample (rows are already the space-to-depth layout) -> [rows, 32]
    x = dot(x, wmat("down", 4 * CH0, CH1)) + bias(5, CH1)
    # two residual channel-MLP blocks @32ch
    h = gelu(dot(x, wmat("w1c", CH1, CH1 * 4)) + bias(6, CH1 * 4))
    x = x + dot(h, wmat("w2c", CH1 * 4, CH1)) + bias(7, CH1)
    h = gelu(dot(x, wmat("w1d", CH1, CH1 * 4)) + bias(8, CH1 * 4))
    x = x + dot(h, wmat("w2d", CH1 * 4, CH1)) + bias(9, CH1)
    # per-frame adaptive average pool as a pool-matrix matmul -> [frames_per_tile, 32]
    o_ref[...] = dot(pool_ref[...], x)


def _block_diag(w, n):
    k, m = w.shape
    out = jnp.zeros((n * k, n * m), w.dtype)
    for i in range(n):
        out = out.at[i * k:(i + 1) * k, i * m:(i + 1) * m].set(w)
    return out


def _build_spatial_pack(params):
    l0, l1 = params["lvl0"], params["lvl1"]
    mats = [_block_diag(params["w_stem"], 4),
            _block_diag(l0[0]["w1"], 4), _block_diag(l0[0]["w2"], 4),
            _block_diag(l0[1]["w1"], 4), _block_diag(l0[1]["w2"], 4),
            params["w_down"], l1[0]["w1"], l1[0]["w2"], l1[1]["w1"], l1[1]["w2"]]
    biases = [jnp.tile(params["b_stem"], 4),
              jnp.tile(l0[0]["b1"], 4), jnp.tile(l0[0]["b2"], 4),
              jnp.tile(l0[1]["b1"], 4), jnp.tile(l0[1]["b2"], 4),
              params["b_down"], l1[0]["b1"], l1[0]["b2"], l1[1]["b1"], l1[1]["b2"]]
    rows = [jnp.pad(m.astype(F32), ((0, 0), (0, _A_PACK_W - m.shape[1]))) for m in mats]
    rows += [jnp.pad(b.astype(F32).reshape(1, -1),
                     ((0, 7), (0, _A_PACK_W - b.shape[0]))) for b in biases]
    return jnp.concatenate(rows, axis=0)              # [_A_BIAS0 + 80, 256]


def _choose_frames_per_tile(frames_total, s1, target_rows=1024):
    """Whole-frame, sublane-aligned row tiles of ~target_rows; prefer >=2 grid steps."""
    cands = [d for d in range(1, frames_total + 1)
             if frames_total % d == 0 and (d * s1) % 8 == 0]
    if not cands:
        return frames_total                            # single full block (rule waived)
    fitting = [d for d in cands if d * s1 <= target_rows]
    d = max(fitting) if fitting else min(cands)
    if d == frames_total and frames_total > 1:
        smaller = [c for c in cands if c < frames_total]
        if smaller:
            d = max(smaller)
    return d


def spatial_backbone(patches, params, frames, s1, f_tile):
    m4, kdim = patches.shape
    tile_rows = f_tile * s1
    pack = _build_spatial_pack(params)
    pool = jnp.where(jnp.arange(f_tile)[:, None] == (jnp.arange(tile_rows) // s1)[None, :],
                     1.0 / s1, 0.0).astype(F32)        # [f_tile, tile_rows]
    return pl.pallas_call(
        _spatial_kernel,
        out_shape=jax.ShapeDtypeStruct((frames, CH1), F32),
        grid=(frames // f_tile,),
        in_specs=[pl.BlockSpec((tile_rows, kdim), lambda i: (i, 0)),
                  pl.BlockSpec(pack.shape, lambda i: (0, 0)),
                  pl.BlockSpec(pool.shape, lambda i: (0, 0))],
        out_specs=pl.BlockSpec((f_tile, CH1), lambda i: (i, 0)),
        compiler_params=pltpu.CompilerParams(
            dimension_semantics=("parallel",), vmem_limit_bytes=VMEM_LIMIT),
    )(patches, pack, pool)


# ================================ kernel B ================================
def _temporal_kernel(p_ref, wp_ref, vp_ref, sc_ref, gp_ref, o_ref, h_hist):
    T = p_ref.shape[0]
    TS = T * D_STATE
    dot = lambda a, b: jnp.dot(a, b, preferred_element_type=F32)
    silu = lambda v: v * jax.nn.sigmoid(v)

    pooled = p_ref[...]                                               # [T, d_model]

    # in_proj: ONE [32,128] matmul, slice x / z from the lane-dense result
    xz = dot(pooled, wp_ref[_B_WIN:_B_WIN + D_MODEL, :]) + vp_ref[_V_BIN:_V_BIN + 1, :]
    x_in = xz[:, :D_INNER]
    z = xz[:, D_INNER:]

    # depthwise causal conv1d (k=4): one [T,4T]@[4T,64] matmul over pre-scaled stacked x_in
    wc = vp_ref[_V_WCONV:_V_WCONV + D_CONV, :D_INNER]                 # [4, 64]
    xs = jnp.concatenate([x_in * wc[k:k + 1, :] for k in range(D_CONV)], axis=0)  # [4T, 64]
    xc = dot(gp_ref[:, TS:TS + D_CONV * T], xs) + vp_ref[_V_BCONV:_V_BCONV + 1, :D_INNER]
    xc = silu(xc)

    # fused dt / B / C projection: ONE [T,64]@[64,96] matmul
    r = dot(xc, wp_ref[_B_WDTBC:_B_WDTBC + D_INNER, :DT_BC_N])
    dt_lin = r[:, :D_INNER] + vp_ref[_V_BDT:_V_BDT + 1, :D_INNER]
    dt = jnp.maximum(dt_lin, 0.0) + jnp.log(1.0 + jnp.exp(-jnp.abs(dt_lin)))   # softplus
    bc = r[:, D_INNER:]                                               # [T, 32]  (B | C)
    u = dt * xc                                                       # [T, 64]

    # vectorized scan precompute: one repeat matmul + one big exp (no per-step lists)
    rep = dot(sc_ref[:, _SC_R:_SC_R + T],
              jnp.concatenate([dt, u, bc], axis=1))                   # [T*d_state, 160]
    dt_rep = rep[:, :D_INNER]
    u_rep = rep[:, D_INNER:2 * D_INNER]
    bc_rep = rep[:, 2 * D_INNER:]
    da_all = jnp.exp(dt_rep * sc_ref[:, :D_INNER])                    # exp(dt*A), [TS, 64]
    bm = jnp.sum(bc_rep * sc_ref[:, _SC_EB:_SC_EB + 2 * D_STATE], axis=1, keepdims=True)
    cm = jnp.sum(bc_rep * sc_ref[:, _SC_EC:_SC_EC + 2 * D_STATE], axis=1, keepdims=True)
    dbx_all = bm * u_rep                                              # B_t * dt * x, [TS, 64]

    # serial recurrence: only h = dA*h + dBx on the critical path (static 16-row slices)
    h = jnp.zeros((D_STATE, D_INNER), F32)
    for t in range(T):
        lo = t * D_STATE
        h = da_all[lo:lo + D_STATE, :] * h + dbx_all[lo:lo + D_STATE, :]
        h_hist[lo:lo + D_STATE, :] = h

    # C contraction as ONE matmul over the h history, skip, SiLU gate, fused out_proj+fc
    y = dot(gp_ref[:, :TS], cm * h_hist[...])                         # [T, 64]
    y = y + vp_ref[_V_D:_V_D + 1, :D_INNER] * xc
    y = y * silu(z)
    o_ref[...] = dot(y, wp_ref[_B_WOF:_B_WOF + D_INNER, :2]) + vp_ref[_V_BOF:_V_BOF + 1, :2]


def temporal_head(pooled, params, B, T):
    # host-side (trace-time) weight prep: all fusions are exact linear-algebra rewrites
    w_xp = params["w_xproj"]
    w_dtbc = jnp.concatenate([w_xp[:, :DT_RANK] @ params["w_dt"], w_xp[:, DT_RANK:]], axis=1)
    w_of = params["w_out"] @ params["w_fc"]                           # [64, 2]
    b_of = params["b_out"] @ params["w_fc"] + params["b_fc"]          # [2]

    pad128 = lambda a: jnp.pad(a, ((0, 0), (0, 128 - a.shape[1])))
    wpack = jnp.concatenate([params["w_in"], pad128(w_dtbc), pad128(w_of)],
                            axis=0).astype(F32)                       # [160, 128]

    def vblock(v):
        v = jnp.asarray(v, F32)
        v = v.reshape(1, -1) if v.ndim == 1 else v
        return jnp.pad(v, ((0, 8 - v.shape[0]), (0, 128 - v.shape[1])))
    vpack = jnp.concatenate([vblock(params["b_in"]), vblock(params["b_conv"]),
                             vblock(params["b_dt"]), vblock(params["D"]), vblock(b_of),
                             vblock(params["w_conv"])], axis=0)       # [48, 128]

    TS = T * D_STATE
    rr = jnp.arange(TS)
    a_tile = jnp.tile(-jnp.exp(params["A_logT"]), (T, 1)).astype(F32)               # [TS, 64]
    eb = (rr[:, None] % D_STATE == jnp.arange(2 * D_STATE)[None, :]).astype(F32)
    ec = (rr[:, None] % D_STATE + D_STATE == jnp.arange(2 * D_STATE)[None, :]).astype(F32)
    rmat = (rr[:, None] // D_STATE == jnp.arange(T)[None, :]).astype(F32)            # [TS, T]
    scanpack = jnp.concatenate([a_tile, eb, ec, rmat], axis=1)                       # [TS, 128+T]

    g = (jnp.arange(T)[:, None] == (rr // D_STATE)[None, :]).astype(F32)             # [T, TS]
    tt = jnp.arange(T)
    sconv = jnp.concatenate(
        [(tt[:, None] - (D_CONV - 1 - k) == tt[None, :]).astype(F32) for k in range(D_CONV)],
        axis=1)                                                                      # [T, 4T]
    gpack = jnp.concatenate([g, sconv], axis=1)                                      # [T, TS+4T]

    return pl.pallas_call(
        _temporal_kernel,
        out_shape=jax.ShapeDtypeStruct((B, T, 2), F32),
        grid=(B,),
        in_specs=[pl.BlockSpec((T, D_MODEL), lambda b: (b, 0)),
                  pl.BlockSpec(wpack.shape, lambda b: (0, 0)),
                  pl.BlockSpec(vpack.shape, lambda b: (0, 0)),
                  pl.BlockSpec(scanpack.shape, lambda b: (0, 0)),
                  pl.BlockSpec(gpack.shape, lambda b: (0, 0))],
        out_specs=pl.BlockSpec((None, T, 2), lambda b: (b, 0, 0)),
        scratch_shapes=[pltpu.VMEM((TS, D_INNER), F32)],
        compiler_params=pltpu.CompilerParams(
            dimension_semantics=("parallel",), vmem_limit_bytes=VMEM_LIMIT),
    )(pooled, wpack, vpack, scanpack, gpack)


# ----------------------------- JAX glue -----------------------------
def _im2col_packed(x_nhwc):
    """3x3/s2/p1 patches with 4 sibling stem pixels packed per row.
    Rows ordered (n, i, j); columns ordered (di, dj, ki, kj, C) so the 2x2/s2
    space-to-depth is already baked into the layout (block-diagonal stem weight)."""
    N, H, W, C = x_nhwc.shape
    Ho, Wo = H // 2, W // 2
    xp = jnp.pad(x_nhwc, ((0, 0), (1, 1), (1, 1), (0, 0)))
    cols = []
    for ki in range(3):
        for kj in range(3):
            cols.append(xp[:, ki:ki + 2 * Ho:2, kj:kj + 2 * Wo:2, :])
    pat = jnp.concatenate(cols, axis=-1)                                     # [N, Ho, Wo, 9C]
    pat = pat.reshape(N, Ho // 2, 2, Wo // 2, 2, 9 * C).transpose(0, 1, 3, 2, 4, 5)
    return pat.reshape(N * (Ho // 2) * (Wo // 2), 4 * 9 * C)


def init_params(key):
    ks = jax.random.split(key, 16)
    nrm = lambda k, shape, s=0.05: jax.random.normal(k, shape, F32) * s
    p = {}
    p["w_stem"] = nrm(ks[0], (3 * 3 * IN_CH, CH0)); p["b_stem"] = jnp.zeros((CH0,))
    p["lvl0"] = [dict(w1=nrm(ks[1 + i], (CH0, CH0 * 4)), b1=jnp.zeros((CH0 * 4,)),
                      w2=nrm(ks[3 + i], (CH0 * 4, CH0)), b2=jnp.zeros((CH0,)))
                 for i in range(2)]
    p["w_down"] = nrm(ks[5], (4 * CH0, CH1)); p["b_down"] = jnp.zeros((CH1,))
    p["lvl1"] = [dict(w1=nrm(ks[6 + i], (CH1, CH1 * 4)), b1=jnp.zeros((CH1 * 4,)),
                      w2=nrm(ks[8 + i], (CH1 * 4, CH1)), b2=jnp.zeros((CH1,)))
                 for i in range(2)]
    p["w_in"] = nrm(ks[10], (D_MODEL, 2 * D_INNER)); p["b_in"] = jnp.zeros((2 * D_INNER,))
    p["w_conv"] = nrm(ks[11], (D_CONV, D_INNER)); p["b_conv"] = jnp.zeros((D_INNER,))
    p["w_xproj"] = nrm(ks[12], (D_INNER, DT_RANK + 2 * D_STATE))
    p["w_dt"] = nrm(ks[13], (DT_RANK, D_INNER), 0.5); p["b_dt"] = jnp.full((D_INNER,), -2.0)
    p["A_logT"] = (jnp.log(jnp.arange(1, D_STATE + 1, dtype=F32))[:, None]
                   * jnp.ones((1, D_INNER), F32))
    p["D"] = jnp.ones((D_INNER,), F32)
    p["w_out"] = nrm(ks[14], (D_INNER, D_MODEL)); p["b_out"] = jnp.zeros((D_MODEL,))
    p["w_fc"] = nrm(ks[15], (D_MODEL, 2)); p["b_fc"] = jnp.zeros((2,))
    return p


def graph_ssm_forward(params, x):
    """x: [B, T, C, H, W] float32 -> gaze coords [B, T, 2]"""
    B, T, C, H, W = x.shape
    x2d = x.reshape(B * T, C, H, W).transpose(0, 2, 3, 1)      # NCHW -> NHWC
    patches = _im2col_packed(x2d)                              # [B*T*s1, 4*9*C]
    s1 = (H // 4) * (W // 4)
    frames = B * T
    f_tile = _choose_frames_per_tile(frames, s1)
    pooled = spatial_backbone(patches, params, frames, s1, f_tile)   # [B*T, 32]
    return temporal_head(pooled, params, B, T)                       # [B, T, 2]


if __name__ == "__main__":
    key = jax.random.PRNGKey(0)
    pkey, xkey = jax.random.split(key)
    params = init_params(pkey)
    B, T, C, H, W = 2, 8, IN_CH, 16, 16
    x = jax.random.normal(xkey, (B, T, C, H, W), F32)
    out = jax.jit(graph_ssm_forward)(params, x)
    jax.block_until_ready(out)
    assert out.shape == (B, T, 2) and out.dtype == jnp.float32
    assert bool(jnp.all(jnp.isfinite(out)))
    print("KERNEL_OK")
</pallas_src>

<mosaic_0001>
module attributes {stable_mosaic.version = 11 : i64} {
  func.func @_spatial_kernel(%arg0: i32, %arg1: memref<128x144xf32, #tpu.memory_space<vmem>>, %arg2: memref<1248x256xf32, #tpu.memory_space<vmem>>, %arg3: memref<8x128xf32, #tpu.memory_space<vmem>>, %arg4: memref<8x32xf32, #tpu.memory_space<vmem>>) attributes {dimension_semantics = [#tpu.dimension_semantics<parallel>], iteration_bounds = array<i64: 2>, scalar_prefetch = 0 : i64, scratch_operands = 0 : i64, tpu.core_type = #tpu.core_type<tc>, window_params = [{transform_indices = @transform_0, window_bounds = array<i64: 128, 144>}, {pipeline_mode = #tpu.pipeline_mode<synchronous>, transform_indices = @transform_1, window_bounds = array<i64: 1248, 256>}, {pipeline_mode = #tpu.pipeline_mode<synchronous>, transform_indices = @transform_2, window_bounds = array<i64: 8, 128>}, {transform_indices = @transform_3, window_bounds = array<i64: 8, 32>}]} {
    %c0 = arith.constant 0 : index
    %c0_0 = arith.constant 0 : index
    %0 = vector.load %arg1[%c0, %c0_0] : memref<128x144xf32, #tpu.memory_space<vmem>>, vector<128x144xf32>
    %c0_1 = arith.constant 0 : index
    %c0_2 = arith.constant 0 : index
    %1 = vector.load %arg2[%c0_1, %c0_2] : memref<1248x256xf32, #tpu.memory_space<vmem>>, vector<144x64xf32>
    %cst = arith.constant dense<0.000000e+00> : vector<128x64xf32>
    %2 = tpu.matmul %0, %1, %cst {dimension_numbers = #tpu.dot_dimension_numbers<[1], [0], [0], [1], [0, 0, 1, 1], [], []>} : vector<128x144xf32>, vector<144x64xf32>, vector<128x64xf32> -> vector<128x64xf32>
    %c1168 = arith.constant 1168 : index
    %c0_3 = arith.constant 0 : index
    %3 = vector.load %arg2[%c1168, %c0_3] : memref<1248x256xf32, #tpu.memory_space<vmem>>, vector<1x64xf32>
    %4 = vector.broadcast %3 : vector<1x64xf32> to vector<128x64xf32>
    %5 = arith.addf %2, %4 : vector<128x64xf32>
    %6 = arith.mulf %5, %5 : vector<128x64xf32>
    %7 = arith.mulf %5, %6 : vector<128x64xf32>
    %cst_4 = arith.constant 4.471500e-02 : f32
    %8 = vector.broadcast %cst_4 : f32 to vector<128x64xf32>
    %9 = arith.mulf %8, %7 : vector<128x64xf32>
    %10 = arith.addf %5, %9 : vector<128x64xf32>
    %cst_5 = arith.constant 0.797884583 : f32
    %11 = vector.broadcast %cst_5 : f32 to vector<128x64xf32>
    %12 = arith.mulf %11, %10 : vector<128x64xf32>
    %13 = math.tanh %12 : vector<128x64xf32>
    %cst_6 = arith.constant 1.000000e+00 : f32
    %14 = vector.broadcast %cst_6 : f32 to vector<128x64xf32>
    %15 = arith.addf %14, %13 : vector<128x64xf32>
    %cst_7 = arith.constant 5.000000e-01 : f32
    %16 = vector.broadcast %cst_7 : f32 to vector<128x64xf32>
    %17 = arith.mulf %16, %15 : vector<128x64xf32>
    %18 = arith.mulf %5, %17 : vector<128x64xf32>
    %c144 = arith.constant 144 : index
    %c0_8 = arith.constant 0 : index
    %19 = vector.load %arg2[%c144, %c0_8] : memref<1248x256xf32, #tpu.memory_space<vmem>>, vector<64x256xf32>
    %cst_9 = arith.constant dense<0.000000e+00> : vector<128x256xf32>
    %20 = tpu.matmul %18, %19, %cst_9 {dimension_numbers = #tpu.dot_dimension_numbers<[1], [0], [0], [1], [0, 0, 1, 1], [], []>} : vector<128x64xf32>, vector<64x256xf32>, vector<128x256xf32> -> vector<128x256xf32>
    %c1176 = arith.constant 1176 : index
    %c0_10 = arith.constant 0 : index
    %21 = vector.load %arg2[%c1176, %c0_10] : memref<1248x256xf32, #tpu.memory_space<vmem>>, vector<1x256xf32>
    %22 = vector.broadcast %21 : vector<1x256xf32> to vector<128x256xf32>
    %23 = arith.addf %20, %22 : vector<128x256xf32>
    %24 = arith.mulf %23, %23 : vector<128x256xf32>
    %25 = arith.mulf %23, %24 : vector<128x256xf32>
    %cst_11 = arith.constant 4.471500e-02 : f32
    %26 = vector.broadcast %cst_11 : f32 to vector<128x256xf32>
    %27 = arith.mulf %26, %25 : vector<128x256xf32>
    %28 = arith.addf %23, %27 : vector<128x256xf32>
    %cst_12 = arith.constant 0.797884583 : f32
    %29 = vector.broadcast %cst_12 : f32 to vector<128x256xf32>
    %30 = arith.mulf %29, %28 : vector<128x256xf32>
    %31 = math.tanh %30 : vector<128x256xf32>
    %cst_13 = arith.constant 1.000000e+00 : f32
    %32 = vector.broadcast %cst_13 : f32 to vector<128x256xf32>
    %33 = arith.addf %32, %31 : vector<128x256xf32>
    %cst_14 = arith.constant 5.000000e-01 : f32
    %34 = vector.broadcast %cst_14 : f32 to vector<128x256xf32>
    %35 = arith.mulf %34, %33 : vector<128x256xf32>
    %36 = arith.mulf %23, %35 : vector<128x256xf32>
    %c208 = arith.constant 208 : index
    %c0_15 = arith.constant 0 : index
    %37 = vector.load %arg2[%c208, %c0_15] : memref<1248x256xf32, #tpu.memory_space<vmem>>, vector<256x64xf32>
    %cst_16 = arith.constant dense<0.000000e+00> : vector<128x64xf32>
    %38 = tpu.matmul %36, %37, %cst_16 {dimension_numbers = #tpu.dot_dimension_numbers<[1], [0], [0], [1], [0, 0, 1, 1], [], []>} : vector<128x256xf32>, vector<256x64xf32>, vector<128x64xf32> -> vector<128x64xf32>
    %39 = arith.addf %18, %38 : vector<128x64xf32>
    %c1184 = arith.constant 1184 : index
    %c0_17 = arith.constant 0 : index
    %40 = vector.load %arg2[%c1184, %c0_17] : memref<1248x256xf32, #tpu.memory_space<vmem>>, vector<1x64xf32>
    %41 = vector.broadcast %40 : vector<1x64xf32> to vector<128x64xf32>
    %42 = arith.addf %39, %41 : vector<128x64xf32>
    %c464 = arith.constant 464 : index
    %c0_18 = arith.constant 0 : index
    %43 = vector.load %arg2[%c464, %c0_18] : memref<1248x256xf32, #tpu.memory_space<vmem>>, vector<64x256xf32>
    %cst_19 = arith.constant dense<0.000000e+00> : vector<128x256xf32>
    %44 = tpu.matmul %42, %43, %cst_19 {dimension_numbers = #tpu.dot_dimension_numbers<[1], [0], [0], [1], [0, 0, 1, 1], [], []>} : vector<128x64xf32>, vector<64x256xf32>, vector<128x256xf32> -> vector<128x256xf32>
    %c1192 = arith.constant 1192 : index
    %c0_20 = arith.constant 0 : index
    %45 = vector.load %arg2[%c1192, %c0_20] : memref<1248x256xf32, #tpu.memory_space<vmem>>, vector<1x256xf32>
    %46 = vector.broadcast %45 : vector<1x256xf32> to vector<128x256xf32>
    %47 = arith.addf %44, %46 : vector<128x256xf32>
    %48 = arith.mulf %47, %47 : vector<128x256xf32>
    %49 = arith.mulf %47, %48 : vector<128x256xf32>
    %cst_21 = arith.constant 4.471500e-02 : f32
    %50 = vector.broadcast %cst_21 : f32 to vector<128x256xf32>
    %51 = arith.mulf %50, %49 : vector<128x256xf32>
    %52 = arith.addf %47, %51 : vector<128x256xf32>
    %cst_22 = arith.constant 0.797884583 : f32
    %53 = vector.broadcast %cst_22 : f32 to vector<128x256xf32>
    %54 = arith.mulf %53, %52 : vector<128x256xf32>
    %55 = math.tanh %54 : vector<128x256xf32>
    %cst_23 = arith.constant 1.000000e+00 : f32
    %56 = vector.broadcast %cst_23 : f32 to vector<128x256xf32>
    %57 = arith.addf %56, %55 : vector<128x256xf32>
    %cst_24 = arith.constant 5.000000e-01 : f32
    %58 = vector.broadcast %cst_24 : f32 to vector<128x256xf32>
    %59 = arith.mulf %58, %57 : vector<128x256xf32>
    %60 = arith.mulf %47, %59 : vector<128x256xf32>
    %c528 = arith.constant 528 : index
    %c0_25 = arith.constant 0 : index
    %61 = vector.load %arg2[%c528, %c0_25] : memref<1248x256xf32, #tpu.memory_space<vmem>>, vector<256x64xf32>
    %cst_26 = arith.constant dense<0.000000e+00> : vector<128x64xf32>
    %62 = tpu.matmul %60, %61, %cst_26 {dimension_numbers = #tpu.dot_dimension_numbers<[1], [0], [0], [1], [0, 0, 1, 1], [], []>} : vector<128x256xf32>, vector<256x64xf32>, vector<128x64xf32> -> vector<128x64xf32>
    %63 = arith.addf %42, %62 : vector<128x64xf32>
    %c1200 = arith.constant 1200 : index
    %c0_27 = arith.constant 0 : index
    %64 = vector.load %arg2[%c1200, %c0_27] : memref<1248x256xf32, #tpu.memory_space<vmem>>, vector<1x64xf32>
    %65 = vector.broadcast %64 : vector<1x64xf32> to vector<128x64xf32>
    %66 = arith.addf %63, %65 : vector<128x64xf32>
    %c784 = arith.constant 784 : index
    %c0_28 = arith.constant 0 : index
    %67 = vector.load %arg2[%c784, %c0_28] : memref<1248x256xf32, #tpu.memory_space<vmem>>, vector<64x32xf32>
    %cst_29 = arith.constant dense<0.000000e+00> : vector<128x32xf32>
    %68 = tpu.matmul %66, %67, %cst_29 {dimension_numbers = #tpu.dot_dimension_numbers<[1], [0], [0], [1], [0, 0, 1, 1], [], []>} : vector<128x64xf32>, vector<64x32xf32>, vector<128x32xf32> -> vector<128x32xf32>
    %c1208 = arith.constant 1208 : index
    %c0_30 = arith.constant 0 : index
    %69 = vector.load %arg2[%c1208, %c0_30] : memref<1248x256xf32, #tpu.memory_space<vmem>>, vector<1x32xf32>
    %70 = vector.broadcast %69 : vector<1x32xf32> to vector<128x32xf32>
    %71 = arith.addf %68, %70 : vector<128x32xf32>
    %c848 = arith.constant 848 : index
    %c0_31 = arith.constant 0 : index
    %72 = vector.load %arg2[%c848, %c0_31] : memref<1248x256xf32, #tpu.memory_space<vmem>>, vector<32x128xf32>
    %cst_32 = arith.constant dense<0.000000e+00> : vector<128x128xf32>
    %73 = tpu.matmul %71, %72, %cst_32 {dimension_numbers = #tpu.dot_dimension_numbers<[1], [0], [0], [1], [0, 0, 1, 1], [], []>} : vector<128x32xf32>, vector<32x128xf32>, vector<128x128xf32> -> vector<128x128xf32>
    %c1216 = arith.constant 1216 : index
    %c0_33 = arith.constant 0 : index
    %74 = vector.load %arg2[%c1216, %c0_33] : memref<1248x256xf32, #tpu.memory_space<vmem>>, vector<1x128xf32>
    %75 = vector.broadcast %74 : vector<1x128xf32> to vector<128x128xf32>
    %76 = arith.addf %73, %75 : vector<128x128xf32>
    %77 = arith.mulf %76, %76 : vector<128x128xf32>
    %78 = arith.mulf %76, %77 : vector<128x128xf32>
    %cst_34 = arith.constant 4.471500e-02 : f32
    %79 = vector.broadcast %cst_34 : f32 to vector<128x128xf32>
    %80 = arith.mulf %79, %78 : vector<128x128xf32>
    %81 = arith.addf %76, %80 : vector<128x128xf32>
    %cst_35 = arith.constant 0.797884583 : f32
    %82 = vector.broadcast %cst_35 : f32 to vector<128x128xf32>
    %83 = arith.mulf %82, %81 : vector<128x128xf32>
    %84 = math.tanh %83 : vector<128x128xf32>
    %cst_36 = arith.constant 1.000000e+00 : f32
    %85 = vector.broadcast %cst_36 : f32 to vector<128x128xf32>
    %86 = arith.addf %85, %84 : vector<128x128xf32>
    %cst_37 = arith.constant 5.000000e-01 : f32
    %87 = vector.broadcast %cst_37 : f32 to vector<128x128xf32>
    %88 = arith.mulf %87, %86 : vector<128x128xf32>
    %89 = arith.mulf %76, %88 : vector<128x128xf32>
    %c880 = arith.constant 880 : index
    %c0_38 = arith.constant 0 : index
    %90 = vector.load %arg2[%c880, %c0_38] : memref<1248x256xf32, #tpu.memory_space<vmem>>, vector<128x32xf32>
    %cst_39 = arith.constant dense<0.000000e+00> : vector<128x32xf32>
    %91 = tpu.matmul %89, %90, %cst_39 {dimension_numbers = #tpu.dot_dimension_numbers<[1], [0], [0], [1], [0, 0, 1, 1], [], []>} : vector<128x128xf32>, vector<128x32xf32>, vector<128x32xf32> -> vector<128x32xf32>
    %92 = arith.addf %71, %91 : vector<128x32xf32>
    %c1224 = arith.constant 1224 : index
    %c0_40 = arith.constant 0 : index
    %93 = vector.load %arg2[%c1224, %c0_40] : memref<1248x256xf32, #tpu.memory_space<vmem>>, vector<1x32xf32>
    %94 = vector.broadcast %93 : vector<1x32xf32> to vector<128x32xf32>
    %95 = arith.addf %92, %94 : vector<128x32xf32>
    %c1008 = arith.constant 1008 : index
    %c0_41 = arith.constant 0 : index
    %96 = vector.load %arg2[%c1008, %c0_41] : memref<1248x256xf32, #tpu.memory_space<vmem>>, vector<32x128xf32>
    %cst_42 = arith.constant dense<0.000000e+00> : vector<128x128xf32>
    %97 = tpu.matmul %95, %96, %cst_42 {dimension_numbers = #tpu.dot_dimension_numbers<[1], [0], [0], [1], [0, 0, 1, 1], [], []>} : vector<128x32xf32>, vector<32x128xf32>, vector<128x128xf32> -> vector<128x128xf32>
    %c1232 = arith.constant 1232 : index
    %c0_43 = arith.constant 0 : index
    %98 = vector.load %arg2[%c1232, %c0_43] : memref<1248x256xf32, #tpu.memory_space<vmem>>, vector<1x128xf32>
    %99 = vector.broadcast %98 : vector<1x128xf32> to vector<128x128xf32>
    %100 = arith.addf %97, %99 : vector<128x128xf32>
    %101 = arith.mulf %100, %100 : vector<128x128xf32>
    %102 = arith.mulf %100, %101 : vector<128x128xf32>
    %cst_44 = arith.constant 4.471500e-02 : f32
    %103 = vector.broadcast %cst_44 : f32 to vector<128x128xf32>
    %104 = arith.mulf %103, %102 : vector<128x128xf32>
    %105 = arith.addf %100, %104 : vector<128x128xf32>
    %cst_45 = arith.constant 0.797884583 : f32
    %106 = vector.broadcast %cst_45 : f32 to vector<128x128xf32>
    %107 = arith.mulf %106, %105 : vector<128x128xf32>
    %108 = math.tanh %107 : vector<128x128xf32>
    %cst_46 = arith.constant 1.000000e+00 : f32
    %109 = vector.broadcast %cst_46 : f32 to vector<128x128xf32>
    %110 = arith.addf %109, %108 : vector<128x128xf32>
    %cst_47 = arith.constant 5.000000e-01 : f32
    %111 = vector.broadcast %cst_47 : f32 to vector<128x128xf32>
    %112 = arith.mulf %111, %110 : vector<128x128xf32>
    %113 = arith.mulf %100, %112 : vector<128x128xf32>
    %c1040 = arith.constant 1040 : index
    %c0_48 = arith.constant 0 : index
    %114 = vector.load %arg2[%c1040, %c0_48] : memref<1248x256xf32, #tpu.memory_space<vmem>>, vector<128x32xf32>
    %cst_49 = arith.constant dense<0.000000e+00> : vector<128x32xf32>
    %115 = tpu.matmul %113, %114, %cst_49 {dimension_numbers = #tpu.dot_dimension_numbers<[1], [0], [0], [1], [0, 0, 1, 1], [], []>} : vector<128x128xf32>, vector<128x32xf32>, vector<128x32xf32> -> vector<128x32xf32>
    %116 = arith.addf %95, %115 : vector<128x32xf32>
    %c1240 = arith.constant 1240 : index
    %c0_50 = arith.constant 0 : index
    %117 = vector.load %arg2[%c1240, %c0_50] : memref<1248x256xf32, #tpu.memory_space<vmem>>, vector<1x32xf32>
    %118 = vector.broadcast %117 : vector<1x32xf32> to vector<128x32xf32>
    %119 = arith.addf %116, %118 : vector<128x32xf32>
    %c0_51 = arith.constant 0 : index
    %c0_52 = arith.constant 0 : index
    %120 = vector.load %arg3[%c0_51, %c0_52] : memref<8x128xf32, #tpu.memory_space<vmem>>, vector<8x128xf32>
    %cst_53 = arith.constant dense<0.000000e+00> : vector<8x32xf32>
    %121 = tpu.matmul %120, %119, %cst_53 {dimension_numbers = #tpu.dot_dimension_numbers<[1], [0], [0], [1], [0, 0, 1, 1], [], []>} : vector<8x128xf32>, vector<128x32xf32>, vector<8x32xf32> -> vector<8x32xf32>
    %c0_54 = arith.constant 0 : index
    %c0_55 = arith.constant 0 : index
    %122 = vector.load %arg4[%c0_54, %c0_55] : memref<8x32xf32, #tpu.memory_space<vmem>>, vector<8x32xf32>
    tpu.vector_store %arg4[%c0_54, %c0_55], %121 {strides = array<i32>} : memref<8x32xf32, #tpu.memory_space<vmem>>, vector<8x32xf32>,
    return
  }
  func.func @transform_0(%arg0: i32) -> (i32, i32) {
    %c0_i32 = arith.constant 0 : i32
    %c0_i32_0 = arith.constant 0 : i32
    return %arg0, %c0_i32 : i32, i32
  }
  func.func @transform_1(%arg0: i32) -> (i32, i32) {
    %c0_i32 = arith.constant 0 : i32
    %c0_i32_0 = arith.constant 0 : i32
    %c0_i32_1 = arith.constant 0 : i32
    return %c0_i32, %c0_i32_0 : i32, i32
  }
  func.func @transform_2(%arg0: i32) -> (i32, i32) {
    %c0_i32 = arith.constant 0 : i32
    %c0_i32_0 = arith.constant 0 : i32
    %c0_i32_1 = arith.constant 0 : i32
    return %c0_i32, %c0_i32_0 : i32, i32
  }
  func.func @transform_3(%arg0: i32) -> (i32, i32) {
    %c0_i32 = arith.constant 0 : i32
    %c0_i32_0 = arith.constant 0 : i32
    return %arg0, %c0_i32 : i32, i32
  }
}

module attributes {stable_mosaic.version = 11 : i64} {
  func.func @_temporal_kernel(%arg0: i32, %arg1: memref<8x32xf32, #tpu.memory_space<vmem>>, %arg2: memref<160x128xf32, #tpu.memory_space<vmem>>, %arg3: memref<48x128xf32, #tpu.memory_space<vmem>>, %arg4: memref<128x136xf32, #tpu.memory_space<vmem>>, %arg5: memref<8x160xf32, #tpu.memory_space<vmem>>, %arg6: memref<1x8x2xf32, #tpu.memory_space<vmem>>, %arg7: memref<128x64xf32, #tpu.memory_space<vmem>>) attributes {dimension_semantics = [#tpu.dimension_semantics<parallel>], iteration_bounds = array<i64: 2>, scalar_prefetch = 0 : i64, scratch_operands = 1 : i64, tpu.core_type = #tpu.core_type<tc>, window_params = [{transform_indices = @transform_0, window_bounds = array<i64: 8, 32>}, {pipeline_mode = #tpu.pipeline_mode<synchronous>, transform_indices = @transform_1, window_bounds = array<i64: 160, 128>}, {pipeline_mode = #tpu.pipeline_mode<synchronous>, transform_indices = @transform_2, window_bounds = array<i64: 48, 128>}, {pipeline_mode = #tpu.pipeline_mode<synchronous>, transform_indices = @transform_3, window_bounds = array<i64: 128, 136>}, {pipeline_mode = #tpu.pipeline_mode<synchronous>, transform_indices = @transform_4, window_bounds = array<i64: 8, 160>}, {transform_indices = @transform_5, window_bounds = array<i64: 1, 8, 2>}]} {
    %c0 = arith.constant 0 : index
    %c0_0 = arith.constant 0 : index
    %0 = vector.load %arg1[%c0, %c0_0] : memref<8x32xf32, #tpu.memory_space<vmem>>, vector<8x32xf32>
    %c0_1 = arith.constant 0 : index
    %c0_2 = arith.constant 0 : index
    %1 = vector.load %arg2[%c0_1, %c0_2] : memref<160x128xf32, #tpu.memory_space<vmem>>, vector<32x128xf32>
    %cst = arith.constant dense<0.000000e+00> : vector<8x128xf32>
    %2 = tpu.matmul %0, %1, %cst {dimension_numbers = #tpu.dot_dimension_numbers<[1], [0], [0], [1], [0, 0, 1, 1], [], []>} : vector<8x32xf32>, vector<32x128xf32>, vector<8x128xf32> -> vector<8x128xf32>
    %c0_3 = arith.constant 0 : index
    %c0_4 = arith.constant 0 : index
    %3 = vector.load %arg3[%c0_3, %c0_4] : memref<48x128xf32, #tpu.memory_space<vmem>>, vector<1x128xf32>
    %4 = vector.broadcast %3 : vector<1x128xf32> to vector<8x128xf32>
    %5 = arith.addf %2, %4 : vector<8x128xf32>
    %6 = vector.extract_strided_slice %5 {offsets = [0, 0], sizes = [8, 64], strides = [1, 1]} : vector<8x128xf32> to vector<8x64xf32>
    %7 = vector.extract_strided_slice %5 {offsets = [0, 64], sizes = [8, 64], strides = [1, 1]} : vector<8x128xf32> to vector<8x64xf32>
    %c40 = arith.constant 40 : index
    %c0_5 = arith.constant 0 : index
    %8 = vector.load %arg3[%c40, %c0_5] : memref<48x128xf32, #tpu.memory_space<vmem>>, vector<4x64xf32>
    %9 = vector.extract_strided_slice %8 {offsets = [0, 0], sizes = [1, 64], strides = [1, 1]} : vector<4x64xf32> to vector<1x64xf32>
    %10 = vector.broadcast %9 : vector<1x64xf32> to vector<8x64xf32>
    %11 = arith.mulf %6, %10 : vector<8x64xf32>
    %12 = vector.extract_strided_slice %8 {offsets = [1, 0], sizes = [1, 64], strides = [1, 1]} : vector<4x64xf32> to vector<1x64xf32>
    %13 = vector.broadcast %12 : vector<1x64xf32> to vector<8x64xf32>
    %14 = arith.mulf %6, %13 : vector<8x64xf32>
    %15 = vector.extract_strided_slice %8 {offsets = [2, 0], sizes = [1, 64], strides = [1, 1]} : vector<4x64xf32> to vector<1x64xf32>
    %16 = vector.broadcast %15 : vector<1x64xf32> to vector<8x64xf32>
    %17 = arith.mulf %6, %16 : vector<8x64xf32>
    %18 = vector.extract_strided_slice %8 {offsets = [3, 0], sizes = [1, 64], strides = [1, 1]} : vector<4x64xf32> to vector<1x64xf32>
    %19 = vector.broadcast %18 : vector<1x64xf32> to vector<8x64xf32>
    %20 = arith.mulf %6, %19 : vector<8x64xf32>
    %21 = tpu.concatenate %11, %14, %17, %20 in 0 : vector<8x64xf32>, vector<8x64xf32>, vector<8x64xf32>, vector<8x64xf32> -> vector<32x64xf32>
    %c0_6 = arith.constant 0 : index
    %c128 = arith.constant 128 : index
    %22 = vector.load %arg5[%c0_6, %c128] : memref<8x160xf32, #tpu.memory_space<vmem>>, vector<8x32xf32>
    %cst_7 = arith.constant dense<0.000000e+00> : vector<8x64xf32>
    %23 = tpu.matmul %22, %21, %cst_7 {dimension_numbers = #tpu.dot_dimension_numbers<[1], [0], [0], [1], [0, 0, 1, 1], [], []>} : vector<8x32xf32>, vector<32x64xf32>, vector<8x64xf32> -> vector<8x64xf32>
    %c8 = arith.constant 8 : index
    %c0_8 = arith.constant 0 : index
    %24 = vector.load %arg3[%c8, %c0_8] : memref<48x128xf32, #tpu.memory_space<vmem>>, vector<1x64xf32>
    %25 = vector.broadcast %24 : vector<1x64xf32> to vector<8x64xf32>
    %26 = arith.addf %23, %25 : vector<8x64xf32>
    %27 = arith.negf %26 : vector<8x64xf32>
    %28 = math.exp %27 : vector<8x64xf32>
    %cst_9 = arith.constant 1.000000e+00 : f32
    %29 = vector.broadcast %cst_9 : f32 to vector<8x64xf32>
    %30 = arith.addf %29, %28 : vector<8x64xf32>
    %31 = arith.divf %29, %30 : vector<8x64xf32>
    %32 = arith.mulf %26, %31 : vector<8x64xf32>
    %c32 = arith.constant 32 : index
    %c0_10 = arith.constant 0 : index
    %33 = vector.load %arg2[%c32, %c0_10] : memref<160x128xf32, #tpu.memory_space<vmem>>, vector<64x96xf32>
    %cst_11 = arith.constant dense<0.000000e+00> : vector<8x96xf32>
    %34 = tpu.matmul %32, %33, %cst_11 {dimension_numbers = #tpu.dot_dimension_numbers<[1], [0], [0], [1], [0, 0, 1, 1], [], []>} : vector<8x64xf32>, vector<64x96xf32>, vector<8x96xf32> -> vector<8x96xf32>
    %35 = vector.extract_strided_slice %34 {offsets = [0, 0], sizes = [8, 64], strides = [1, 1]} : vector<8x96xf32> to vector<8x64xf32>
    %c16 = arith.constant 16 : index
    %c0_12 = arith.constant 0 : index
    %36 = vector.load %arg3[%c16, %c0_12] : memref<48x128xf32, #tpu.memory_space<vmem>>, vector<1x64xf32>
    %37 = vector.broadcast %36 : vector<1x64xf32> to vector<8x64xf32>
    %38 = arith.addf %35, %37 : vector<8x64xf32>
    %cst_13 = arith.constant 0.000000e+00 : f32
    %39 = vector.broadcast %cst_13 : f32 to vector<8x64xf32>
    %40 = arith.maximumf %38, %39 : vector<8x64xf32>
    %41 = math.absf %38 : vector<8x64xf32>
    %cst_14 = arith.constant 0.000000e+00 : f32
    %42 = vector.broadcast %cst_14 : f32 to vector<8x64xf32>
    %43 = arith.subf %42, %41 : vector<8x64xf32>
    %44 = math.exp %43 : vector<8x64xf32>
    %cst_15 = arith.constant 1.000000e+00 : f32
    %45 = vector.broadcast %cst_15 : f32 to vector<8x64xf32>
    %46 = arith.addf %45, %44 : vector<8x64xf32>
    %47 = math.log %46 : vector<8x64xf32>
    %48 = arith.addf %40, %47 : vector<8x64xf32>
    %49 = vector.extract_strided_slice %34 {offsets = [0, 64], sizes = [8, 32], strides = [1, 1]} : vector<8x96xf32> to vector<8x32xf32>
    %50 = arith.mulf %48, %32 : vector<8x64xf32>
    %c0_16 = arith.constant 0 : index
    %c128_17 = arith.constant 128 : index
    %51 = vector.load %arg4[%c0_16, %c128_17] : memref<128x136xf32, #tpu.memory_space<vmem>>, vector<128x8xf32>
    %52 = tpu.concatenate %48, %50, %49 in 1 : vector<8x64xf32>, vector<8x64xf32>, vector<8x32xf32> -> vector<8x160xf32>
    %cst_18 = arith.constant dense<0.000000e+00> : vector<128x160xf32>
    %53 = tpu.matmul %51, %52, %cst_18 {dimension_numbers = #tpu.dot_dimension_numbers<[1], [0], [0], [1], [0, 0, 1, 1], [], []>} : vector<128x8xf32>, vector<8x160xf32>, vector<128x160xf32> -> vector<128x160xf32>
    %54 = vector.extract_strided_slice %53 {offsets = [0, 0], sizes = [128, 64], strides = [1, 1]} : vector<128x160xf32> to vector<128x64xf32>
    %55 = vector.extract_strided_slice %53 {offsets = [0, 64], sizes = [128, 64], strides = [1, 1]} : vector<128x160xf32> to vector<128x64xf32>
    %56 = vector.extract_strided_slice %53 {offsets = [0, 128], sizes = [128, 32], strides = [1, 1]} : vector<128x160xf32> to vector<128x32xf32>
    %c0_19 = arith.constant 0 : index
    %c0_20 = arith.constant 0 : index
    %57 = vector.load %arg4[%c0_19, %c0_20] : memref<128x136xf32, #tpu.memory_space<vmem>>, vector<128x64xf32>
    %58 = arith.mulf %54, %57 : vector<128x64xf32>
    %59 = math.exp %58 : vector<128x64xf32>
    %c0_21 = arith.constant 0 : index
    %c64 = arith.constant 64 : index
    %60 = vector.load %arg4[%c0_21, %c64] : memref<128x136xf32, #tpu.memory_space<vmem>>, vector<128x32xf32>
    %61 = arith.mulf %56, %60 : vector<128x32xf32>
    %cst_22 = arith.constant dense<0.000000e+00> : vector<128xf32>
    %62 = vector.multi_reduction <add>, %61, %cst_22 [1] : vector<128x32xf32> to vector<128xf32>
    %63 = vector.shape_cast %62 : vector<128xf32> to vector<128x1xf32>
    %c0_23 = arith.constant 0 : index
    %c96 = arith.constant 96 : index
    %64 = vector.load %arg4[%c0_23, %c96] : memref<128x136xf32, #tpu.memory_space<vmem>>, vector<128x32xf32>
    %65 = arith.mulf %56, %64 : vector<128x32xf32>
    %cst_24 = arith.constant dense<0.000000e+00> : vector<128xf32>
    %66 = vector.multi_reduction <add>, %65, %cst_24 [1] : vector<128x32xf32> to vector<128xf32>
    %67 = vector.shape_cast %66 : vector<128xf32> to vector<128x1xf32>
    %68 = vector.broadcast %63 : vector<128x1xf32> to vector<128x64xf32>
    %69 = arith.mulf %68, %55 : vector<128x64xf32>
    %cst_25 = arith.constant 0.000000e+00 : f32
    %70 = vector.broadcast %cst_25 : f32 to vector<16x64xf32>
    %71 = vector.extract_strided_slice %59 {offsets = [0, 0], sizes = [16, 64], strides = [1, 1]} : vector<128x64xf32> to vector<16x64xf32>
    %72 = arith.mulf %71, %70 : vector<16x64xf32>
    %73 = vector.extract_strided_slice %69 {offsets = [0, 0], sizes = [16, 64], strides = [1, 1]} : vector<128x64xf32> to vector<16x64xf32>
    %74 = arith.addf %72, %73 : vector<16x64xf32>
    %c0_26 = arith.constant 0 : index
    %c0_27 = arith.constant 0 : index
    %75 = vector.load %arg7[%c0_26, %c0_27] : memref<128x64xf32, #tpu.memory_space<vmem>>, vector<16x64xf32>
    tpu.vector_store %arg7[%c0_26, %c0_27], %74 {strides = array<i32>} : memref<128x64xf32, #tpu.memory_space<vmem>>, vector<16x64xf32>,
    %76 = vector.extract_strided_slice %59 {offsets = [16, 0], sizes = [16, 64], strides = [1, 1]} : vector<128x64xf32> to vector<16x64xf32>
    %77 = arith.mulf %76, %74 : vector<16x64xf32>
    %78 = vector.extract_strided_slice %69 {offsets = [16, 0], sizes = [16, 64], strides = [1, 1]} : vector<128x64xf32> to vector<16x64xf32>
    %79 = arith.addf %77, %78 : vector<16x64xf32>
    %c16_28 = arith.constant 16 : index
    %c0_29 = arith.constant 0 : index
    %80 = vector.load %arg7[%c16_28, %c0_29] : memref<128x64xf32, #tpu.memory_space<vmem>>, vector<16x64xf32>
    tpu.vector_store %arg7[%c16_28, %c0_29], %79 {strides = array<i32>} : memref<128x64xf32, #tpu.memory_space<vmem>>, vector<16x64xf32>,
    %81 = vector.extract_strided_slice %59 {offsets = [32, 0], sizes = [16, 64], strides = [1, 1]} : vector<128x64xf32> to vector<16x64xf32>
    %82 = arith.mulf %81, %79 : vector<16x64xf32>
    %83 = vector.extract_strided_slice %69 {offsets = [32, 0], sizes = [16, 64], strides = [1, 1]} : vector<128x64xf32> to vector<16x64xf32>
    %84 = arith.addf %82, %83 : vector<16x64xf32>
    %c32_30 = arith.constant 32 : index
    %c0_31 = arith.constant 0 : index
    %85 = vector.load %arg7[%c32_30, %c0_31] : memref<128x64xf32, #tpu.memory_space<vmem>>, vector<16x64xf32>
    tpu.vector_store %arg7[%c32_30, %c0_31], %84 {strides = array<i32>} : memref<128x64xf32, #tpu.memory_space<vmem>>, vector<16x64xf32>,
    %86 = vector.extract_strided_slice %59 {offsets = [48, 0], sizes = [16, 64], strides = [1, 1]} : vector<128x64xf32> to vector<16x64xf32>
    %87 = arith.mulf %86, %84 : vector<16x64xf32>
    %88 = vector.extract_strided_slice %69 {offsets = [48, 0], sizes = [16, 64], strides = [1, 1]} : vector<128x64xf32> to vector<16x64xf32>
    %89 = arith.addf %87, %88 : vector<16x64xf32>
    %c48 = arith.constant 48 : index
    %c0_32 = arith.constant 0 : index
    %90 = vector.load %arg7[%c48, %c0_32] : memref<128x64xf32, #tpu.memory_space<vmem>>, vector<16x64xf32>
    tpu.vector_store %arg7[%c48, %c0_32], %89 {strides = array<i32>} : memref<128x64xf32, #tpu.memory_space<vmem>>, vector<16x64xf32>,
    %91 = vector.extract_strided_slice %59 {offsets = [64, 0], sizes = [16, 64], strides = [1, 1]} : vector<128x64xf32> to vector<16x64xf32>
    %92 = arith.mulf %91, %89 : vector<16x64xf32>
    %93 = vector.extract_strided_slice %69 {offsets = [64, 0], sizes = [16, 64], strides = [1, 1]} : vector<128x64xf32> to vector<16x64xf32>
    %94 = arith.addf %92, %93 : vector<16x64xf32>
    %c64_33 = arith.constant 64 : index
    %c0_34 = arith.constant 0 : index
    %95 = vector.load %arg7[%c64_33, %c0_34] : memref<128x64xf32, #tpu.memory_space<vmem>>, vector<16x64xf32>
    tpu.vector_store %arg7[%c64_33, %c0_34], %94 {strides = array<i32>} : memref<128x64xf32, #tpu.memory_space<vmem>>, vector<16x64xf32>,
    %96 = vector.extract_strided_slice %59 {offsets = [80, 0], sizes = [16, 64], strides = [1, 1]} : vector<128x64xf32> to vector<16x64xf32>
    %97 = arith.mulf %96, %94 : vector<16x64xf32>
    %98 = vector.extract_strided_slice %69 {offsets = [80, 0], sizes = [16, 64], strides = [1, 1]} : vector<128x64xf32> to vector<16x64xf32>
    %99 = arith.addf %97, %98 : vector<16x64xf32>
    %c80 = arith.constant 80 : index
    %c0_35 = arith.constant 0 : index
    %100 = vector.load %arg7[%c80, %c0_35] : memref<128x64xf32, #tpu.memory_space<vmem>>, vector<16x64xf32>
    tpu.vector_store %arg7[%c80, %c0_35], %99 {strides = array<i32>} : memref<128x64xf32, #tpu.memory_space<vmem>>, vector<16x64xf32>,
    %101 = vector.extract_strided_slice %59 {offsets = [96, 0], sizes = [16, 64], strides = [1, 1]} : vector<128x64xf32> to vector<16x64xf32>
    %102 = arith.mulf %101, %99 : vector<16x64xf32>
    %103 = vector.extract_strided_slice %69 {offsets = [96, 0], sizes = [16, 64], strides = [1, 1]} : vector<128x64xf32> to vector<16x64xf32>
    %104 = arith.addf %102, %103 : vector<16x64xf32>
    %c96_36 = arith.constant 96 : index
    %c0_37 = arith.constant 0 : index
    %105 = vector.load %arg7[%c96_36, %c0_37] : memref<128x64xf32, #tpu.memory_space<vmem>>, vector<16x64xf32>
    tpu.vector_store %arg7[%c96_36, %c0_37], %104 {strides = array<i32>} : memref<128x64xf32, #tpu.memory_space<vmem>>, vector<16x64xf32>,
    %106 = vector.extract_strided_slice %59 {offsets = [112, 0], sizes = [16, 64], strides = [1, 1]} : vector<128x64xf32> to vector<16x64xf32>
    %107 = arith.mulf %106, %104 : vector<16x64xf32>
    %108 = vector.extract_strided_slice %69 {offsets = [112, 0], sizes = [16, 64], strides = [1, 1]} : vector<128x64xf32> to vector<16x64xf32>
    %109 = arith.addf %107, %108 : vector<16x64xf32>
    %c112 = arith.constant 112 : index
    %c0_38 = arith.constant 0 : index
    %110 = vector.load %arg7[%c112, %c0_38] : memref<128x64xf32, #tpu.memory_space<vmem>>, vector<16x64xf32>
    tpu.vector_store %arg7[%c112, %c0_38], %109 {strides = array<i32>} : memref<128x64xf32, #tpu.memory_space<vmem>>, vector<16x64xf32>,
    %c0_39 = arith.constant 0 : index
    %c0_40 = arith.constant 0 : index
    %111 = vector.load %arg5[%c0_39, %c0_40] : memref<8x160xf32, #tpu.memory_space<vmem>>, vector<8x128xf32>
    %c0_41 = arith.constant 0 : index
    %c0_42 = arith.constant 0 : index
    %112 = vector.load %arg7[%c0_41, %c0_42] : memref<128x64xf32, #tpu.memory_space<vmem>>, vector<128x64xf32>
    %113 = vector.broadcast %67 : vector<128x1xf32> to vector<128x64xf32>
    %114 = arith.mulf %113, %112 : vector<128x64xf32>
    %cst_43 = arith.constant dense<0.000000e+00> : vector<8x64xf32>
    %115 = tpu.matmul %111, %114, %cst_43 {dimension_numbers = #tpu.dot_dimension_numbers<[1], [0], [0], [1], [0, 0, 1, 1], [], []>} : vector<8x128xf32>, vector<128x64xf32>, vector<8x64xf32> -> vector<8x64xf32>
    %c24 = arith.constant 24 : index
    %c0_44 = arith.constant 0 : index
    %116 = vector.load %arg3[%c24, %c0_44] : memref<48x128xf32, #tpu.memory_space<vmem>>, vector<1x64xf32>
    %117 = vector.broadcast %116 : vector<1x64xf32> to vector<8x64xf32>
    %118 = arith.mulf %117, %32 : vector<8x64xf32>
    %119 = arith.addf %115, %118 : vector<8x64xf32>
    %120 = arith.negf %7 : vector<8x64xf32>
    %121 = math.exp %120 : vector<8x64xf32>
    %cst_45 = arith.constant 1.000000e+00 : f32
    %122 = vector.broadcast %cst_45 : f32 to vector<8x64xf32>
    %123 = arith.addf %122, %121 : vector<8x64xf32>
    %124 = arith.divf %122, %123 : vector<8x64xf32>
    %125 = arith.mulf %7, %124 : vector<8x64xf32>
    %126 = arith.mulf %119, %125 : vector<8x64xf32>
    %c96_46 = arith.constant 96 : index
    %c0_47 = arith.constant 0 : index
    %127 = vector.load %arg2[%c96_46, %c0_47] : memref<160x128xf32, #tpu.memory_space<vmem>>, vector<64x2xf32>
    %cst_48 = arith.constant dense<0.000000e+00> : vector<8x2xf32>
    %128 = tpu.matmul %126, %127, %cst_48 {dimension_numbers = #tpu.dot_dimension_numbers<[1], [0], [0], [1], [0, 0, 1, 1], [], []>} : vector<8x64xf32>, vector<64x2xf32>, vector<8x2xf32> -> vector<8x2xf32>
    %c32_49 = arith.constant 32 : index
    %c0_50 = arith.constant 0 : index
    %129 = vector.load %arg3[%c32_49, %c0_50] : memref<48x128xf32, #tpu.memory_space<vmem>>, vector<1x2xf32>
    %130 = vector.broadcast %129 : vector<1x2xf32> to vector<8x2xf32>
    %131 = arith.addf %128, %130 : vector<8x2xf32>
    %c0_51 = arith.constant 0 : index
    %c0_52 = arith.constant 0 : index
    %c0_53 = arith.constant 0 : index
    %132 = vector.load %arg6[%c0_51, %c0_52, %c0_53] : memref<1x8x2xf32, #tpu.memory_space<vmem>>, vector<1x8x2xf32>
    %133 = vector.shape_cast %132 : vector<1x8x2xf32> to vector<8x2xf32>
    %134 = vector.shape_cast %131 : vector<8x2xf32> to vector<1x8x2xf32>
    tpu.vector_store %arg6[%c0_51, %c0_52, %c0_53], %134 {strides = array<i32>} : memref<1x8x2xf32, #tpu.memory_space<vmem>>, vector<1x8x2xf32>,
    return
  }
  func.func @transform_0(%arg0: i32) -> (i32, i32) {
    %c0_i32 = arith.constant 0 : i32
    %c0_i32_0 = arith.constant 0 : i32
    return %arg0, %c0_i32 : i32, i32
  }
  func.func @transform_1(%arg0: i32) -> (i32, i32) {
    %c0_i32 = arith.constant 0 : i32
    %c0_i32_0 = arith.constant 0 : i32
    %c0_i32_1 = arith.constant 0 : i32
    return %c0_i32, %c0_i32_0 : i32, i32
  }
  func.func @transform_2(%arg0: i32) -> (i32, i32) {
    %c0_i32 = arith.constant 0 : i32
    %c0_i32_0 = arith.constant 0 : i32
    %c0_i32_1 = arith.constant 0 : i32
    return %c0_i32, %c0_i32_0 : i32, i32
  }
  func.func @transform_3(%arg0: i32) -> (i32, i32) {
    %c0_i32 = arith.constant 0 : i32
    %c0_i32_0 = arith.constant 0 : i32
    %c0_i32_1 = arith.constant 0 : i32
    return %c0_i32, %c0_i32_0 : i32, i32
  }
  func.func @transform_4(%arg0: i32) -> (i32, i32) {
    %c0_i32 = arith.constant 0 : i32
    %c0_i32_0 = arith.constant 0 : i32
    %c0_i32_1 = arith.constant 0 : i32
    return %c0_i32, %c0_i32_0 : i32, i32
  }
  func.func @transform_5(%arg0: i32) -> (i32, i32, i32) {
    %c0_i32 = arith.constant 0 : i32
    %c0_i32_0 = arith.constant 0 : i32
    %c0_i32_1 = arith.constant 0 : i32
    return %arg0, %c0_i32, %c0_i32_0 : i32, i32, i32
  }
}

</mosaic_0001>

<bundles_post_ra>
// kernel: tile.33
= control target key start
LH: loop header
LB: loop body
LE: loop exit
PB: predicated region body
PF: predicated region fallthrough
CT: control target
= control target key end

     0   :  { %s22_s0 = inlined_call_operand.vmem [shape: f32[16], index: 0, kind: input, shape index: {}]   ;;  %s23_s1 = inlined_call_operand.vmem [shape: f32[4,16], index: 1, kind: output, shape index: {}]  }
   0x1   :  { %v4_v0 = vld [vmem:[%s22_s0] ss:$0 sm:$0xff] }
   0x2   :  { %5 = vst [vmem:[%s23_s1] sm:$0xf] %v4_v0 }

// kernel: tile.50
= control target key start
LH: loop header
LB: loop body
LE: loop exit
PB: predicated region body
PF: predicated region fallthrough
CT: control target
= control target key end

     0   :  { %vm7_vm0 = vcmask 130048   ;;  %s37_s8 = smov 16   ;;  %s38_s9 = smov 32   ;;  %vm13_vm1 = vcmask 523648   ;;  %vm19_vm2 = vcmask 392448   ;;  %vm25_vm3 = vcmask 261248   ;;  %s55_s0 = inlined_call_operand.vmem [shape: f32[4,16], index: 0, kind: input, shape index: {}]   ;;  %s56_s1 = inlined_call_operand.vmem [shape: f32[1,64], index: 1, kind: output, shape index: {}]  }
   0x1   :  { %v4_v0 = vld [vmem:[%s55_s0] sm:$0xf]  ;;  %s36_s0 = smov 48  }
   0x2   :  { %5 = vst [vmem:[#allocation1] sm:$0xf] %v4_v0 }
   0x9   :  { %v10_v1 = vld [vmem:[#allocation1 + $0x3] sm:$0x1]   ;;  %v22_v2 = vld [vmem:[#allocation1 + $0x1] sm:$0x1]   ;;  %v6_v3 = vld [vmem:[#allocation1] sm:$0x1]  }
   0xa   :  { %11 = vrot.lane.b32.xlu0 %v10_v1, %s36_s0  ;;  %23 = vrot.lane.b32.xlu1 %v22_v2, %s37_s8  ;;  %v16_v4 = vld [vmem:[#allocation1 + $0x2] sm:$0x1]   ;;  %8 = vst.msk [vmem:[#allocation0] sm:$0x1] %vm7_vm0, %v6_v3  }
   0xe   :  { %17 = vrot.lane.b32.xlu0 %v16_v4, %s38_s9 }
  0x7c   :  { %v12_v5 = vpop.permute.xlu0 %11   ;;  %v24_v6 = vpop.permute.xlu1 %23  }
  0x7d   :  { %14 = vst.msk [vmem:[#allocation0] sm:$0x1] %vm13_vm1, %v12_v5  }
  0x80   :  { %v18_v7 = vpop.permute.xlu0 %17  }
  0x81   :  { %20 = vst.msk [vmem:[#allocation0] sm:$0x1] %vm19_vm2, %v18_v7  }
  0x82   :  { %26 = vst.msk [vmem:[#allocation0] sm:$0x1] %vm25_vm3, %v24_v6  }
  0x89   :  { %v30_v8 = vld [vmem:[#allocation0] sm:$0x1] }
  0x8a   :  { %32 = vst [vmem:[%s56_s1] sm:$0x1] %v30_v8 }

// kernel: tile.37
= control target key start
LH: loop header
LB: loop body
LE: loop exit
PB: predicated region body
PF: predicated region fallthrough
CT: control target
= control target key end

     0   :  { %s22_s0 = inlined_call_operand.vmem [shape: f32[64], index: 0, kind: input, shape index: {}]   ;;  %s23_s1 = inlined_call_operand.vmem [shape: f32[4,64], index: 1, kind: output, shape index: {}]  }
   0x1   :  { %v4_v0 = vld [vmem:[%s22_s0] ss:$0 sm:$0xff] }
   0x2   :  { %5 = vst [vmem:[%s23_s1] sm:$0xf] %v4_v0 }

// kernel: tile.51
= control target key start
LH: loop header
LB: loop body
LE: loop exit
PB: predicated region body
PF: predicated region fallthrough
CT: control target
= control target key end

     0   :  { %s6_s8 = smov 3  ;;  %vm8_vm0 = vcmask 523264   ;;  %s30_s9 = smov 64   ;;  %vm15_vm1 = vcmask 1048064   ;;  %s50_s0 = inlined_call_operand.vmem [shape: f32[4,64], index: 0, kind: input, shape index: {}]   ;;  %s51_s1 = inlined_call_operand.vmem [shape: f32[1,256], index: 1, kind: output, shape index: {}]  }
   0x1   :  { %v4_v0 = vld [vmem:[%s50_s0] sm:$0xf]  ;;  %s11_s0 = smov 3 }
   0x2   :  { %5 = vst [vmem:[#allocation1] sm:$0xf] %v4_v0 }
   0x9   :  { %v12_v1 = vld [vmem:[#allocation1 + $0x1] ss:$2 sm:%s11_s0]   ;;  %v7_v2 = vld [vmem:[#allocation1] ss:$2 sm:%s6_s8]  }
   0xa   :  { %13 = vrot.lane.b32.xlu0 %v12_v1, %s30_s9  ;;  %9 = vst.msk [vmem:[#allocation0] ss:$8 sm:$0x3] %vm8_vm0, %v7_v2  }
  0x7c   :  { %v14_v3 = vpop.permute.xlu0 %13  }
  0x7d   :  { %16 = vst.msk [vmem:[#allocation0] ss:$8 sm:$0x3] %vm15_vm1, %v14_v3  }
  0x84   :  { %v20_v4 = vld [vmem:[#allocation0] sm:$0x1]  ;;  %v24_v5 = vld [vmem:[#allocation0 + $0x8] sm:$0x1] }
  0x85   :  { %22 = vst [vmem:[%s51_s1] sm:$0x1] %v20_v4  ;;  %28 = vst [vmem:[%s51_s1 + $0x1] sm:$0x1] %v24_v5 }

// kernel: graph_ssm_forward.3
= control target key start
LH: loop header
LB: loop body
LE: loop exit
PB: predicated region body
PF: predicated region fallthrough
CT: control target
= control target key end

     0   :  { %s1774_s18 = smov 0   ;;  %s2360_s0 = inlined_call_operand.vmem [shape: f32[16,32], index: 0, kind: input, shape index: {}]   ;;  %s2361_s1 = inlined_call_operand.vmem [shape: f32[160,128], index: 1, kind: input, shape index: {}]   ;;  %s2362_s2 = inlined_call_operand.vmem [shape: f32[48,128], index: 2, kind: input, shape index: {}]   ;;  %s2363_s3 = inlined_call_operand.vmem [shape: f32[128,136], index: 3, kind: input, shape index: {}]   ;;  %s2364_s4 = inlined_call_operand.vmem [shape: f32[8,160], index: 4, kind: input, shape index: {}]   ;;  %s2365_s5 = inlined_call_operand.vmem [shape: f32[2,8,2], index: 5, kind: output, shape index: {}]  }
   0x1 LB: > { %s1438_s19 = sadd.s32 4294967295, %s1737_s18   ;;  %p1442_p0 = scmp.ge.s32.totalorder %s1737_s18, 1  ;;  %s1737_s18 = sphi %s1774_s18, %s15_s18  }
   0x2   : > { %p186_p1 = scmp.lt.s32.totalorder %s1737_s18, 3 }
   0x4   : > { %p187_p2 = pnand %p1442_p0, %p186_p1 }
   0x5   : > { %v221_v0 = vld [vmem:[%s2361_s1] sm:$0xff] (!%p187_p2)  ;;  %v222_v1 = vld [vmem:[%s2361_s1 + $0x8] sm:$0xff] (!%p187_p2)  ;;  %v223_v2 = vld [vmem:[%s2361_s1 + $0x10] sm:$0xff] (!%p187_p2)  ;;  %v1739_v3 = vmov (!%p187_p2), 0.0|0.0   ;;  %vm1740_vm0 = vmmov (!%p187_p2), 0   ;;  %v1741_v6 = vmov (!%p187_p2), 0.0   ;;  %v305_v9 = vlaneseq (!%p187_p2) }
   0x6   : > { %190 = sbr.rel (%p187_p2) target bundleno = 1838 (0x72e), region = 40  ;;  %1614 = vmatprep.subr.bf16.mxu0 (!%p187_p2), %v1739_v3  ;;  %v1615_v4 = vpack.c.bf16 (!%p187_p2), %v222_v1, %v221_v0  ;;  %v224_v5 = vld [vmem:[%s2361_s1 + $0x18] sm:$0xff] (!%p187_p2)  ;;  %1527 = vmatprep.mubr.msk.f32.mxu0 (!%p187_p2), %vm1740_vm0, %v1741_v6  ;;  %p212_p3 = scmp.lt.s32.totalorder (!%p187_p2), %s1438_s19, 1  ;;  %vm230_vm1 = vcmask (!%p187_p2), 261120   ;;  %v304_v13 = vld [vmem:[%s2362_s2 + $0x28] sm:$0xf] (!%p187_p2) }
   0x7   : > { %1620 = vmatprep.subr.bf16.mxu1 (!%p187_p2), %v1739_v3  ;;  %1538 = vmatprep.mubr.msk.f32.mxu1 (!%p187_p2), %vm1740_vm0, %v1741_v6  ;;  %v1618_v7 = vpack.c.bf16 (!%p187_p2), %v224_v5, %v223_v2  ;;  %v306_v10 = vshrl.u32 (!%p187_p2), %v305_v9, 7  ;;  %v1445_v16 = vld [vmem:[%s2362_s2] ss:$0 sm:$0xff] (!%p187_p2)  ;;  %v325_v30 = vld [vmem:[%s2364_s4 + $0x8] sm:$0xff] (!%p187_p2)  ;;  %v413_v34 = vld [vmem:[%s2361_s1 + $0x30] sm:$0xff] (!%p187_p2)  ;;  %vm419_vm2 = vcmask (!%p187_p2), 523264  }
   0x8   : > { %1616 = vmatpush3.bf16.msra.mxu0 (!%p187_p2), %v1615_v4  ;;  %v411_v31 = vld [vmem:[%s2361_s1 + $0x20] sm:$0xff] (!%p187_p2)  ;;  %v412_v32 = vld [vmem:[%s2361_s1 + $0x28] sm:$0xff] (!%p187_p2)  ;;  %v414_v35 = vld [vmem:[%s2361_s1 + $0x38] sm:$0xff] (!%p187_p2)  ;;  %s1742_s11 = smov (!%p187_p2), 64   ;;  %s1743_s25 = smov (!%p187_p2), 32   ;;  %vm534_vm3 = vcmask (!%p187_p2), 64512  }
   0x9   : > { %1617 = vmatprep.subr.bf16.mxu0 (!%p187_p2), %v1739_v3  ;;  %v307_v11 = vsub.s32 (!%p187_p2), 0, %v306_v10  ;;  %v312_v12 = vsub.s32 (!%p187_p2), 1, %v306_v10  ;;  %v317_v14 = vsub.s32 (!%p187_p2), 2, %v306_v10  ;;  %v322_v15 = vsub.s32 (!%p187_p2), 3, %v306_v10  ;;  %v415_v37 = vld [vmem:[%s2361_s1 + $0x40] sm:$0xff] (!%p187_p2)  ;;  %v416_v38 = vld [vmem:[%s2361_s1 + $0x48] sm:$0xff] (!%p187_p2) }
   0xa   : > { %v1627_v33 = vpack.c.bf16 (!%p187_p2), %v412_v32, %v411_v31  ;;  %v1630_v36 = vpack.c.bf16 (!%p187_p2), %v414_v35, %v413_v34  ;;  %v1633_v39 = vpack.c.bf16 (!%p187_p2), %v416_v38, %v415_v37  ;;  %v417_v40 = vld [vmem:[%s2361_s1 + $0x50] sm:$0xff] (!%p187_p2)  ;;  %v418_v41 = vld [vmem:[%s2361_s1 + $0x58] sm:$0xff] (!%p187_p2)  ;;  %v1447_v43 = vld [vmem:[%s2362_s2 + $0x8] ss:$0 sm:$0xff] (!%p187_p2)  ;;  %vm1383_vm4 = vcmask (!%p187_p2), 15360  }
   0xb   : > { %v308_v17 = vrot.slane (!%p187_p2), %v304_v13, %v307_v11  ;;  %v313_v18 = vrot.slane (!%p187_p2), %v304_v13, %v312_v12  ;;  %v318_v22 = vrot.slane (!%p187_p2), %v304_v13, %v317_v14  ;;  %v323_v23 = vrot.slane (!%p187_p2), %v304_v13, %v322_v15  ;;  %v1451_v52 = vld [vmem:[%s2362_s2 + $0x10] ss:$0 sm:$0xff] (!%p187_p2)  ;;  %v1877_v2 = vld [vmem:[%s2363_s3] sm:$0xff] (!%p187_p2)  ;;  %v516_v31 = vld [vmem:[%s2363_s3 + $0x78] sm:$0xff] (!%p187_p2) }
   0xc   : > { %1619 = vmatpush3.bf16.msra.mxu0 (!%p187_p2), %v1618_v7  ;;  %v1636_v42 = vpack.c.bf16 (!%p187_p2), %v418_v41, %v417_v40  ;;  %824 = vrot.lane.b32.xlu1 (!%p187_p2), %v1877_v2, %s1742_s11  ;;  %v1884_v4 = vld [vmem:[%s2363_s3 + $0x20] sm:$0xff] (!%p187_p2)  ;;  %v1889_v5 = vld [vmem:[%s2363_s3 + $0x10] sm:$0xff] (!%p187_p2)  ;;  %v517_v32 = vld [vmem:[%s2363_s3 + $0x88] sm:$0xff] (!%p187_p2) }
   0xd   : > { %s2367_s19 = smov (!%p212_p3, %s1438_s19), 1  ;;  %1626 = vmatprep.subr.bf16.mxu0 %v1739_v3  ;;  %v1896_v7 = vld [vmem:[%s2363_s3 + $0x40] sm:$0xff]  ;;  %v1917_v10 = vld [vmem:[%s2363_s3 + $0x50] sm:$0xff]  ;;  %v519_v34 = vld [vmem:[%s2363_s3 + $0xa8] sm:$0xff] }
   0xe   : > { %s1443_s28 = sshll.u32 %s2367_s19, 3  ;;  %v1910_v9 = vld [vmem:[%s2363_s3 + $0x60] sm:$0xff]  ;;  %v1931_v12 = vld [vmem:[%s2363_s3 + $0x70] sm:$0xff]  ;;  %v520_v35 = vld [vmem:[%s2363_s3 + $0xb8] sm:$0xff] }
   0xf   : > { %s215_s6 = scalar_lea.vmem %s2360_s0, %s1443_s28  ;;  %v1924_v11 = vld [vmem:[%s2363_s3 + $0x80] sm:$0xff]  ;;  %v1945_v14 = vld [vmem:[%s2363_s3 + $0x90] sm:$0xff]  ;;  %v522_v37 = vld [vmem:[%s2363_s3 + $0xd8] sm:$0xff]  ;;  %s219_s15 = scalar_lea.vmem %s2365_s5, %s1443_s28 }
  0x10   : > { %v220_v8 = vld [vmem:[%s215_s6] sm:$0xff]  ;;  %826 = vrot.lane.b32.xlu1 %v1889_v5, %s1742_s11  ;;  %v523_v38 = vld [vmem:[%s2363_s3 + $0xe8] sm:$0xff] }
  0x11   : > { %1528 = vmatmul.mubr.msk.f32.vlgmr.msra.gmra.mrb[0].mxu0 %vm230_vm1, %v220_v8  ;;  %v1903_v8 = vld [vmem:[%s2363_s3 + $0x30] sm:$0xff]  ;;  %v1938_v13 = vld [vmem:[%s2363_s3 + $0xa0] sm:$0xff] }
  0x12   : > { %1557 = vmatprep.mubr.msk.f32.mxu0 %vm1740_vm0, %v1741_v6  ;;  %1628 = vmatpush3.bf16.msra.mxu0 %v1627_v33  ;;  %v1952_v15 = vld [vmem:[%s2363_s3 + $0xc0] sm:$0xff]  ;;  %v518_v33 = vld [vmem:[%s2363_s3 + $0x98] sm:$0xff] }
  0x13   : > { %1629 = vmatprep.subr.bf16.mxu0 %v1739_v3 }
  0x14   : > { %830 = vrot.lane.b32.xlu1 %v1903_v8, %s1742_s11 }
  0x16   : > { %1631 = vmatpush3.bf16.msra.mxu0 %v1630_v36  ;;  %v521_v36 = vld [vmem:[%s2363_s3 + $0xc8] sm:$0xff] }
  0x17   : > { %1632 = vmatprep.subr.bf16.mxu0 %v1739_v3 }
  0x18   : > { %834 = vrot.lane.b32.xlu1 %v1917_v10, %s1742_s11 }
  0x1a   : > { %1634 = vmatpush3.bf16.msra.mxu0 %v1633_v39  ;;  %v524_v39 = vld [vmem:[%s2363_s3 + $0xf8] sm:$0xff] }
  0x1b   : > { %1635 = vmatprep.subr.bf16.mxu0 %v1739_v3 }
  0x1c   : > { %838 = vrot.lane.b32.xlu1 %v1931_v12, %s1742_s11 }
  0x1e   : > { %1637 = vmatpush3.bf16.msra.mxu0 %v1636_v42 }
  0x1f   : > { %1638 = vmatprep.subr.bf16.mxu0 %v1739_v3 }
  0x20   : > { %842 = vrot.lane.b32.xlu1 %v1945_v14, %s1742_s11 }
  0x7e   : > { %v825_v40 = vpop.permute.xlu1 %824 }
  0x82   : > { %v827_v41 = vpop.permute.xlu1 %826 }
  0x86   : > { %v831_v42 = vpop.permute.xlu1 %830 }
  0xe4   : > { %v300_v19 = vpop.f32.mrb[0].mxu0 }
  0xe5   : > { %v1819_v20 = vadd.f32 %v1445_v16, %v300_v19  ;;  %v1529_v21 = vpop.f32.mrb[1].mxu0  ;;  %v1959_v16 = vld [vmem:[%s2363_s3 + $0xb0] sm:$0xff] }
  0xe6   : > { %846 = vrot.lane.b32.xlu1 %v1959_v16, %s1742_s11  ;;  %v1982_v19 = vld [vmem:[%s2363_s3 + $0xf0] sm:$0xff] }
  0xe7   : > { %v309_v24 = vmul.f32 %v308_v17, %v1819_v20  ;;  %v314_v25 = vmul.f32 %v313_v18, %v1819_v20  ;;  %v319_v27 = vmul.f32 %v318_v22, %v1819_v20  ;;  %v324_v28 = vmul.f32 %v323_v23, %v1819_v20  ;;  %v1966_v17 = vld [vmem:[%s2363_s3 + $0xe0] sm:$0xff]  ;;  %v1973_v18 = vld [vmem:[%s2363_s3 + $0xd0] sm:$0xff]  ;;  %v509_v23 = vld [vmem:[%s2363_s3 + $0x8] sm:$0xff] }
  0xe9   : > { %v1621_v26 = vpack.c.bf16 %v314_v25, %v309_v24  ;;  %v1624_v29 = vpack.c.bf16 %v324_v28, %v319_v27  ;;  %v510_v25 = vld [vmem:[%s2363_s3 + $0x18] sm:$0xff]  ;;  %v513_v28 = vld [vmem:[%s2363_s3 + $0x48] sm:$0xff] }
  0xea   : > { %850 = vrot.lane.b32.xlu1 %v1973_v18, %s1742_s11  ;;  %v512_v27 = vld [vmem:[%s2363_s3 + $0x38] sm:$0xff] }
  0xeb   : > { %1622 = vmatpush3.bf16.msra.mxu1 %v1621_v26  ;;  %v511_v26 = vld [vmem:[%s2363_s3 + $0x28] sm:$0xff] }
  0xec   : > { %1623 = vmatprep.subr.bf16.mxu1 %v1739_v3 }
  0xee   : > { %854 = vrot.lane.b32.xlu1 %v1982_v19, %s1742_s11 }
  0xef   : > { %1625 = vmatpush3.bf16.msra.mxu1 %v1624_v29  ;;  %v514_v29 = vld [vmem:[%s2363_s3 + $0x58] sm:$0xff] }
  0xf2   : > { %1539 = vmatmul.mubr.msk.f32.vlgmr.msra.gmra.mrb[0].mxu1 %vm230_vm1, %v325_v30  ;;  %936 = vrot.lane.b32.xlu1 %v1877_v2, %s1743_s25  ;;  %v515_v30 = vld [vmem:[%s2363_s3 + $0x68] sm:$0xff] }
  0xf3   : > { %647 = vmatprep.mubr.f32.mxu1 %v1741_v6 }
  0xf6   : > { %940 = vrot.lane.b32.xlu1 %v1884_v4, %s1743_s25 }
  0xfa   : > { %944 = vrot.lane.b32.xlu1 %v1896_v7, %s1743_s25 }
  0xfe   : > { %948 = vrot.lane.b32.xlu1 %v1910_v9, %s1743_s25 }
 0x102   : > { %952 = vrot.lane.b32.xlu1 %v1924_v11, %s1743_s25 }
 0x106   : > { %956 = vrot.lane.b32.xlu1 %v1938_v13, %s1743_s25 }
 0x10a   : > { %960 = vrot.lane.b32.xlu1 %v1952_v15, %s1743_s25 }
 0x10e   : > { %962 = vrot.lane.b32.xlu1 %v1973_v18, %s1743_s25 }
 0x112   : > { %966 = vrot.lane.b32.xlu1 %v1982_v19, %s1743_s25 }
 0x1c5   : > { %v400_v44 = vpop.f32.mrb[0].mxu1 }
 0x1c6   : > { %v401_v45 = vadd.f32 %v1447_v43, %v400_v44  ;;  %v1540_v46 = vpop.f32.mrb[1].mxu1  ;;  %v835_v44 = vpop.permute.xlu1 %834 }
 0x1c8   : > { %v1449_v47 = vmul.f32 -1.442695, %v401_v45 }
 0x1ca   : > { %1687 = vpow2.f32 %v1449_v47  ;;  %v2082_v46 = vpop.permute.xlu1 %838 }
 0x1d4   : > { %v1688_v48 = vpop.eup %1687 }
 0x1d5   : > { %v407_v49 = vadd.f32 1.0, %v1688_v48  ;;  %v2084_v48 = vpop.permute.xlu1 %842 }
 0x1d7   : > { %1689 = vrcp.f32 %v407_v49 }
 0x1e1   : > { %v1690_v50 = vpop.eup %1689 }
 0x1e2   : > { %v1862_v51 = vmul.f32 %v1690_v50, %v401_v45  ;;  %v2088_v50 = vpop.permute.xlu1 %846 }
 0x1e4   : > { %1558 = vmatmul.mubr.msk.f32.vlgmr.msra.gmra.mrb[2].mxu0 %vm419_vm2, %v1862_v51 }
 0x1e5   : > { %1592 = vmatprep.mubr.msk.f32.mxu0 %vm1740_vm0, %v1741_v6 }
 0x2b7   : > { %v489_v53 = vpop.f32.mrb[2].mxu0 }
 0x2b8   : > { %v498_v54 = vadd.f32 %v1451_v52, %v489_v53  ;;  %v1559_v55 = vpop.f32.mrb[3].mxu0 }
 0x2ba   : > { %v500_v56 = vand.u32 2147483647, %v498_v54  ;;  %v499_v62 = vmax.f32 %v498_v54, 0.0 }
 0x2bc   : > { %v501_v57 = vsub.f32 0.0, %v500_v56 }
 0x2be   : > { %v502_v58 = vmul.f32 1.442695, %v501_v57 }
 0x2c0   : > { %1691 = vpow2.f32 %v502_v58 }
 0x2ca   : > { %v1692_v59 = vpop.eup %1691 }
 0x2cb   : > { %v504_v60 = vadd.f32 1.0, %v1692_v59 }
 0x2cd   : > { %1693 = vlog2.f32 %v504_v60 }
 0x2d7   : > { %v1694_v61 = vpop.eup %1693 }
 0x2d8   : > { %v506_v63 = vmul.f32 0.6931472, %v1694_v61 }
 0x2da   : > { %v507_v0 = vadd.f32 %v506_v63, %v499_v62 }
 0x2dc   : > { %v508_v1 = vmul.f32 %v507_v0, %v1862_v51 }
 0x2de   : > { %526 = vrot.lane.b32.xlu0 %v508_v1, %s1742_s11 }
 0x2e2   : > { %530 = vrot.lane.b32.xlu0 %v489_v53, %s1742_s11  ;;  %v2092_v53 = vpop.permute.xlu1 %850 }
 0x2e6   : > { %828 = vrot.lane.b32.xlu0 %v1884_v4, %s1742_s11  ;;  %v2096_v55 = vpop.permute.xlu1 %854 }
 0x2ea   : > { %832 = vrot.lane.b32.xlu0 %v1896_v7, %s1742_s11  ;;  %v937_v59 = vpop.permute.xlu1 %936 }
 0x2ee   : > { %836 = vrot.lane.b32.xlu0 %v1910_v9, %s1742_s11 }
 0x2f2   : > { %840 = vrot.lane.b32.xlu0 %v1924_v11, %s1742_s11 }
 0x2f6   : > { %844 = vrot.lane.b32.xlu0 %v1938_v13, %s1742_s11 }
 0x2fa   : > { %848 = vrot.lane.b32.xlu0 %v1952_v15, %s1742_s11 }
 0x2fe   : > { %852 = vrot.lane.b32.xlu0 %v1966_v17, %s1742_s11 }
 0x302   : > { %938 = vrot.lane.b32.xlu0 %v1889_v5, %s1743_s25 }
 0x306   : > { %942 = vrot.lane.b32.xlu0 %v1903_v8, %s1743_s25 }
 0x30a   : > { %946 = vrot.lane.b32.xlu0 %v1917_v10, %s1743_s25 }
 0x30e   : > { %950 = vrot.lane.b32.xlu0 %v1931_v12, %s1743_s25 }
 0x312   : > { %954 = vrot.lane.b32.xlu0 %v1945_v14, %s1743_s25 }
 0x316   : > { %958 = vrot.lane.b32.xlu0 %v1959_v16, %s1743_s25 }
 0x31a   : > { %964 = vrot.lane.b32.xlu0 %v1966_v17, %s1743_s25 }
 0x350   : > { %v527_v21 = vpop.permute.xlu0 %526 }
 0x351   : > { %v533_v24 = vsel %vm419_vm2, %v507_v0, %v527_v21 }
 0x354   : > { %v531_v22 = vpop.permute.xlu0 %530 }
 0x355   : > { %583 = vmatprep.subr.mxu1 %v531_v22 }
 0x356   : > { %584 = vmatpush1.msra.mxu1 %v533_v24 }
 0x357   : > { %1452 = vmatmul.mubr.msk.f32.vlgmr.msra.gmra.mrb[2].mxu1 %vm534_vm3, %v509_v23 }
 0x358   : > { %653 = vmatprep.mubr.f32.mxu1 %v1741_v6  ;;  %v829_v43 = vpop.permute.xlu0 %828 }
 0x35b   : > { %1453 = vmatmul.mubr.msk.f32.gmra.mrb[4].mxu1 %vm534_vm3, %v510_v25 }
 0x35c   : > { %659 = vmatprep.mubr.f32.mxu1 %v1741_v6  ;;  %v833_v45 = vpop.permute.xlu0 %832 }
 0x35f   : > { %1454 = vmatmul.mubr.msk.f32.gmra.mrb[6].mxu1 %vm534_vm3, %v511_v26 }
 0x360   : > { %665 = vmatprep.mubr.f32.mxu1 %v1741_v6  ;;  %v837_v47 = vpop.permute.xlu0 %836 }
 0x363   : > { %1455 = vmatmul.mubr.msk.f32.gmra.mrb[8].mxu1 %vm534_vm3, %v512_v27  ;;  %v941_v27 = vpop.permute.xlu1 %940 }
 0x364   : > { %671 = vmatprep.mubr.f32.mxu1 %v1741_v6  ;;  %v2086_v49 = vpop.permute.xlu0 %840 }
 0x367   : > { %1456 = vmatmul.mubr.msk.f32.gmra.mrb[10].mxu1 %vm534_vm3, %v513_v28 }
 0x368   : > { %677 = vmatprep.mubr.f32.mxu1 %v1741_v6  ;;  %v2090_v52 = vpop.permute.xlu0 %844 }
 0x36b   : > { %1457 = vmatmul.mubr.msk.f32.gmra.mrb[12].mxu1 %vm534_vm3, %v514_v29 }
 0x36c   : > { %683 = vmatprep.mubr.f32.mxu1 %v1741_v6  ;;  %v2094_v54 = vpop.permute.xlu0 %848 }
 0x36f   : > { %1458 = vmatmul.mubr.msk.f32.gmra.mrb[14].mxu1 %vm534_vm3, %v515_v30 }
 0x370   : > { %689 = vmatprep.mubr.f32.mxu1 %v1741_v6  ;;  %v2098_v56 = vpop.permute.xlu0 %852 }
 0x373   : > { %1459 = vmatmul.mubr.msk.f32.gmra.mrb[16].mxu1 %vm534_vm3, %v516_v31 }
 0x374   : > { %695 = vmatprep.mubr.f32.mxu1 %v1741_v6  ;;  %v939_v1 = vpop.permute.xlu0 %938 }
 0x377   : > { %1460 = vmatmul.mubr.msk.f32.gmra.mrb[18].mxu1 %vm534_vm3, %v517_v32 }
 0x378   : > { %701 = vmatprep.mubr.f32.mxu1 %v1741_v6 }
 0x37b   : > { %1461 = vmatmul.mubr.msk.f32.gmra.mrb[20].mxu1 %vm534_vm3, %v518_v33 }
 0x37c   : > { %707 = vmatprep.mubr.f32.mxu1 %v1741_v6 }
 0x37f   : > { %1462 = vmatmul.mubr.msk.f32.gmra.mrb[22].mxu1 %vm534_vm3, %v519_v34 }
 0x380   : > { %713 = vmatprep.mubr.f32.mxu1 %v1741_v6 }
 0x383   : > { %1463 = vmatmul.mubr.msk.f32.gmra.mrb[24].mxu1 %vm534_vm3, %v520_v35  ;;  %v943_v35 = vpop.permute.xlu0 %942 }
 0x384   : > { %719 = vmatprep.mubr.f32.mxu1 %v1741_v6 }
 0x387   : > { %1464 = vmatmul.mubr.msk.f32.gmra.mrb[26].mxu1 %vm534_vm3, %v521_v36 }
 0x388   : > { %725 = vmatprep.mubr.f32.mxu1 %v1741_v6 }
 0x38b   : > { %1465 = vmatmul.mubr.msk.f32.gmra.mrb[28].mxu1 %vm534_vm3, %v522_v37 }
 0x38c   : > { %731 = vmatprep.mubr.f32.mxu1 %v1741_v6 }
 0x38f   : > { %1466 = vmatmul.mubr.msk.f32.gmra.mrb[30].mxu1 %vm534_vm3, %v523_v38 }
 0x390   : > { %737 = vmatprep.mubr.f32.mxu1 %v1741_v6 }
 0x393   : > { %1467 = vmatmul.mubr.msk.f32.gmra.mrb[32].mxu1 %vm534_vm3, %v524_v39  ;;  %v945_v39 = vpop.permute.xlu1 %944 }
 0x42a   : > { %v2100_v57 = vpop.f32.mrb[2].mxu1 }
 0x42b   : > { %v651_v58 = vpop.f32.mrb[3].mxu1 }
 0x42c   : > { %v872_v60 = vmul.f32 %v825_v40, %v651_v58  ;;  %v984_v61 = vmul.f32 %v937_v59, %v651_v58 }
 0x42e   : > { %v2102_v62 = vpop.f32.mrb[4].mxu1  ;;  %v888_v63 = vsel %vm230_vm1, %v872_v60, 0.0  ;;  %v1000_v24 = vsel %vm230_vm1, %v984_v61, 0.0 }
 0x42f   : > { %889 = vadd.xlane.f32.xlu0 %v888_v63  ;;  %v657_v0 = vpop.f32.mrb[5].mxu1  ;;  %v947_v63 = vpop.permute.xlu0 %946 }
 0x430   : > { %v873_v21 = vmul.f32 %v827_v41, %v657_v0  ;;  %v985_v22 = vmul.f32 %v939_v1, %v657_v0 }
 0x432   : > { %v2105_v23 = vpop.f32.mrb[6].mxu1  ;;  %v891_v25 = vsel %vm230_vm1, %v873_v21, 0.0  ;;  %v1003_v32 = vsel %vm230_vm1, %v985_v22, 0.0  ;;  %v949_v22 = vpop.permute.xlu1 %948 }
 0x433   : > { %1001 = vadd.xlane.f32.xlu0 %v1000_v24  ;;  %892 = vadd.xlane.f32.xlu1 %v891_v25  ;;  %v663_v26 = vpop.f32.mrb[7].mxu1 }
 0x434   : > { %v874_v28 = vmul.f32 %v829_v43, %v663_v26  ;;  %v986_v29 = vmul.f32 %v941_v27, %v663_v26 }
 0x436   : > { %v2109_v30 = vpop.f32.mrb[8].mxu1  ;;  %v894_v31 = vsel %vm230_vm1, %v874_v28, 0.0  ;;  %v1006_v37 = vsel %vm230_vm1, %v986_v29, 0.0 }
 0x437   : > { %v669_v33 = vpop.f32.mrb[9].mxu1  ;;  %895 = vadd.xlane.f32.xlu0 %v894_v31  ;;  %1004 = vadd.xlane.f32.xlu1 %v1003_v32  ;;  %v951_v32 = vpop.permute.xlu0 %950 }
 0x438   : > { %v875_v34 = vmul.f32 %v831_v42, %v669_v33  ;;  %v987_v41 = vmul.f32 %v943_v35, %v669_v33 }
 0x43a   : > { %v2113_v36 = vpop.f32.mrb[10].mxu1  ;;  %v897_v59 = vsel %vm230_vm1, %v875_v34, 0.0  ;;  %v1009_v21 = vsel %vm230_vm1, %v987_v41, 0.0 }
 0x43b   : > { %v675_v38 = vpop.f32.mrb[11].mxu1  ;;  %1007 = vadd.xlane.f32.xlu0 %v1006_v37  ;;  %v953_v37 = vpop.permute.xlu1 %952 }
 0x43c   : > { %v876_v40 = vmul.f32 %v833_v45, %v675_v38  ;;  %v988_v43 = vmul.f32 %v945_v39, %v675_v38 }
 0x43e   : > { %v2116_v58 = vpop.f32.mrb[12].mxu1  ;;  %v900_v60 = vsel %vm230_vm1, %v876_v40, 0.0  ;;  %v1012_v1 = vsel %vm230_vm1, %v988_v43, 0.0 }
 0x43f   : > { %v681_v61 = vpop.f32.mrb[13].mxu1  ;;  %898 = vadd.xlane.f32.xlu0 %v897_v59  ;;  %901 = vadd.xlane.f32.xlu1 %v900_v60 }
 0x440   : > { %v877_v42 = vmul.f32 %v835_v44, %v681_v61  ;;  %v989_v25 = vmul.f32 %v947_v63, %v681_v61 }
 0x442   : > { %v2120_v0 = vpop.f32.mrb[14].mxu1  ;;  %v903_v44 = vsel %vm230_vm1, %v877_v42, 0.0 }
 0x443   : > { %v687_v45 = vpop.f32.mrb[15].mxu1  ;;  %1013 = vadd.xlane.f32.xlu1 %v1012_v1  ;;  %1010 = vadd.xlane.f32.xlu0 %v1009_v21 }
 0x444   : > { %v878_v24 = vmul.f32 %v837_v47, %v687_v45  ;;  %v990_v26 = vmul.f32 %v949_v22, %v687_v45  ;;  %v1015_v47 = vsel %vm230_vm1, %v989_v25, 0.0 }
 0x446   : > { %v2124_v27 = vpop.f32.mrb[16].mxu1  ;;  %v906_v28 = vsel %vm230_vm1, %v878_v24, 0.0  ;;  %v1018_v34 = vsel %vm230_vm1, %v990_v26, 0.0 }
 0x447   : > { %v693_v29 = vpop.f32.mrb[17].mxu1  ;;  %907 = vadd.xlane.f32.xlu1 %v906_v28  ;;  %904 = vadd.xlane.f32.xlu0 %v903_v44 }
 0x448   : > { %v879_v31 = vmul.f32 %v2082_v46, %v693_v29  ;;  %v991_v39 = vmul.f32 %v951_v32, %v693_v29 }
 0x44a   : > { %v2129_v33 = vpop.f32.mrb[18].mxu1  ;;  %v909_v46 = vsel %vm230_vm1, %v879_v31, 0.0  ;;  %v1021_v63 = vsel %vm230_vm1, %v991_v39, 0.0 }
 0x44b   : > { %v699_v35 = vpop.f32.mrb[19].mxu1  ;;  %1019 = vadd.xlane.f32.xlu1 %v1018_v34  ;;  %1016 = vadd.xlane.f32.xlu0 %v1015_v47  ;;  %v955_v34 = vpop.permute.xlu0 %954 }
 0x44c   : > { %v880_v38 = vmul.f32 %v2086_v49, %v699_v35  ;;  %v992_v40 = vmul.f32 %v953_v37, %v699_v35  ;;  %v957_v35 = vpop.permute.xlu1 %956 }
 0x44e   : > { %v2134_v41 = vpop.f32.mrb[20].mxu1  ;;  %v912_v43 = vsel %vm230_vm1, %v880_v38, 0.0  ;;  %v1024_v42 = vsel %vm230_vm1, %v992_v40, 0.0 }
 0x44f   : > { %v705_v59 = vpop.f32.mrb[21].mxu1  ;;  %913 = vadd.xlane.f32.xlu1 %v912_v43  ;;  %910 = vadd.xlane.f32.xlu0 %v909_v46 }
 0x450   : > { %v881_v60 = vmul.f32 %v2084_v48, %v705_v59  ;;  %v961_v46 = vpop.permute.xlu1 %960 }
 0x452   : > { %v2139_v61 = vpop.f32.mrb[22].mxu1  ;;  %v915_v22 = vsel %vm230_vm1, %v881_v60, 0.0 }
 0x453   : > { %v711_v49 = vpop.f32.mrb[23].mxu1  ;;  %1025 = vadd.xlane.f32.xlu1 %v1024_v42  ;;  %1022 = vadd.xlane.f32.xlu0 %v1021_v63  ;;  %v993_v42 = vmul.f32 %v955_v34, %v705_v59 }
 0x454   : > { %v882_v1 = vmul.f32 %v2090_v52, %v711_v49  ;;  %v994_v39 = vmul.f32 %v957_v35, %v711_v49 }
 0x456   : > { %v2144_v21 = vpop.f32.mrb[24].mxu1  ;;  %v918_v45 = vsel %vm230_vm1, %v882_v1, 0.0  ;;  %v1030_v1 = vsel %vm230_vm1, %v994_v39, 0.0 }
 0x457   : > { %v717_v24 = vpop.f32.mrb[25].mxu1  ;;  %919 = vadd.xlane.f32.xlu1 %v918_v45  ;;  %916 = vadd.xlane.f32.xlu0 %v915_v22 }
 0x458   : > { %v883_v48 = vmul.f32 %v2088_v50, %v717_v24 }
 0x45a   : > { %v2149_v25 = vpop.f32.mrb[26].mxu1  ;;  %v921_v26 = vsel %vm230_vm1, %v883_v48, 0.0 }
 0x45b   : > { %v723_v28 = vpop.f32.mrb[27].mxu1  ;;  %922 = vadd.xlane.f32.xlu0 %v921_v26  ;;  %v1027_v26 = vsel %vm230_vm1, %v993_v42, 0.0 }
 0x45c   : > { %v884_v44 = vmul.f32 %v2094_v54, %v723_v28  ;;  %v959_v54 = vpop.permute.xlu0 %958  ;;  %v996_v63 = vmul.f32 %v961_v46, %v723_v28 }
 0x45e   : > { %v2153_v52 = vpop.f32.mrb[28].mxu1  ;;  %v924_v29 = vsel %vm230_vm1, %v884_v44, 0.0  ;;  %v1036_v48 = vsel %vm230_vm1, %v996_v63, 0.0  ;;  %v963_v44 = vpop.permute.xlu1 %962 }
 0x45f   : > { %v729_v31 = vpop.f32.mrb[29].mxu1  ;;  %925 = vadd.xlane.f32.xlu1 %v924_v29 }
 0x460   : > { %v885_v32 = vmul.f32 %v2092_v53, %v729_v31  ;;  %v965_v22 = vpop.permute.xlu0 %964  ;;  %v997_v29 = vmul.f32 %v963_v44, %v729_v31 }
 0x462   : > { %v2157_v47 = vpop.f32.mrb[30].mxu1  ;;  %v927_v50 = vsel %vm230_vm1, %v885_v32, 0.0  ;;  %v967_v28 = vpop.permute.xlu1 %966  ;;  %v1039_v34 = vsel %vm230_vm1, %v997_v29, 0.0 }
 0x463   : > { %v735_v37 = vpop.f32.mrb[31].mxu1  ;;  %928 = vadd.xlane.f32.xlu0 %v927_v50 }
 0x464   : > { %v886_v38 = vmul.f32 %v2098_v56, %v735_v37  ;;  %v995_v56 = vmul.f32 %v959_v54, %v717_v24  ;;  %v998_v49 = vmul.f32 %v965_v22, %v735_v37  ;;  %v1469_v22 = vmul.f32 -1.442695, %v1819_v20 }
 0x466   : > { %v2161_v40 = vpop.f32.mrb[32].mxu1  ;;  %v930_v43 = vsel %vm230_vm1, %v886_v38, 0.0  ;;  %v1042_v59 = vsel %vm230_vm1, %v998_v49, 0.0  ;;  %1695 = vpow2.f32 %v1469_v22 }
 0x467   : > { %v741_v60 = vpop.f32.mrb[33].mxu1  ;;  %931 = vadd.xlane.f32.xlu1 %v930_v43 }
 0x468   : > { %v887_v53 = vmul.f32 %v2096_v55, %v741_v60  ;;  %v1033_v55 = vsel %vm230_vm1, %v995_v56, 0.0  ;;  %v999_v32 = vmul.f32 %v967_v28, %v741_v60 }
 0x46a   : > { %v933_v45 = vsel %vm230_vm1, %v887_v53, 0.0  ;;  %v1045_v24 = vsel %vm230_vm1, %v999_v32, 0.0 }
 0x46b   : > { %1031 = vadd.xlane.f32.xlu1 %v1030_v1  ;;  %934 = vadd.xlane.f32.xlu0 %v933_v45 }
 0x46f   : > { %1037 = vadd.xlane.f32.xlu1 %v1036_v48  ;;  %1028 = vadd.xlane.f32.xlu0 %v1027_v26 }
 0x473   : > { %1034 = vadd.xlane.f32.xlu0 %v1033_v55  ;;  %1043 = vadd.xlane.f32.xlu1 %v1042_v59 }
 0x477   : > { %1040 = vadd.xlane.f32.xlu0 %v1039_v34 }
 0x47b   : > { %1046 = vadd.xlane.f32.xlu0 %v1045_v24 }
 0x4bc   : > { %v890_v50 = vpop.xlane.xlu0 %889 }
 0x4bd   : > { %v1048_v35 = vmul.f32 %v890_v50, %v2100_v57  ;;  %v1696_v50 = vpop.eup %1695 }
 0x4bf   : > { %1068 = vrot.lane.b32.xlu1 %v1048_v35, %s1742_s11 }
 0x4c0   : > { %v893_v31 = vpop.xlane.xlu1 %892  ;;  %v2175_v37 = vpop.xlane.xlu0 %1001 }
 0x4c1   : > { %v1049_v38 = vmul.f32 %v893_v31, %v2102_v62 }
 0x4c3   : > { %1070 = vrot.lane.b32.xlu0 %v1049_v38, %s1742_s11  ;;  %v1288_v38 = vadd.f32 1.0, %v1696_v50 }
 0x4c4   : > { %v896_v39 = vpop.xlane.xlu0 %895  ;;  %v2181_v43 = vpop.xlane.xlu1 %1004 }
 0x4c5   : > { %v1050_v54 = vmul.f32 %v896_v39, %v2105_v23  ;;  %1697 = vrcp.f32 %v1288_v38 }
 0x4c7   : > { %1082 = vrot.lane.b32.xlu1 %v1050_v54, %s1742_s11 }
 0x4c8   : > { %v2183_v46 = vpop.xlane.xlu0 %1007 }
 0x4cc   : > { %v902_v60 = vpop.xlane.xlu1 %901  ;;  %v899_v53 = vpop.xlane.xlu0 %898 }
 0x4cd   : > { %v1052_v42 = vmul.f32 %v902_v60, %v2113_v36  ;;  %v1051_v63 = vmul.f32 %v899_v53, %v2109_v30 }
 0x4cf   : > { %1096 = vrot.lane.b32.xlu1 %v1052_v42, %s1742_s11  ;;  %1084 = vrot.lane.b32.xlu0 %v1051_v63, %s1742_s11 }
 0x4d0   : > { %v2189_v1 = vpop.xlane.xlu1 %1013  ;;  %v2191_v45 = vpop.xlane.xlu0 %1010 }
 0x4d4   : > { %v908_v56 = vpop.xlane.xlu1 %907  ;;  %v905_v49 = vpop.xlane.xlu0 %904 }
 0x4d5   : > { %v1054_v48 = vmul.f32 %v908_v56, %v2120_v0  ;;  %v1053_v26 = vmul.f32 %v905_v49, %v2116_v58  ;;  %v1698_v49 = vpop.eup %1697 }
 0x4d7   : > { %1110 = vrot.lane.b32.xlu1 %v1054_v48, %s1742_s11  ;;  %1098 = vrot.lane.b32.xlu0 %v1053_v26, %s1742_s11 }
 0x4d8   : > { %v2198_v44 = vpop.xlane.xlu1 %1019  ;;  %v2200_v29 = vpop.xlane.xlu0 %1016 }
 0x4dc   : > { %v914_v55 = vpop.xlane.xlu1 %913  ;;  %v911_v59 = vpop.xlane.xlu0 %910 }
 0x4dd   : > { %v1056_v28 = vmul.f32 %v914_v55, %v2129_v33  ;;  %v1055_v32 = vmul.f32 %v911_v59, %v2124_v27  ;;  %v1291_v55 = vmul.f32 %v1698_v49, %v1819_v20  ;;  %v762_v20 = vmul.f32 %v1884_v4, %v2105_v23 }
 0x4df   : > { %1124 = vrot.lane.b32.xlu1 %v1056_v28, %s1742_s11  ;;  %1112 = vrot.lane.b32.xlu0 %v1055_v32, %s1742_s11  ;;  %v760_v32 = vmul.f32 %v1877_v2, %v2100_v57  ;;  %v764_v57 = vmul.f32 %v1896_v7, %v2113_v36 }
 0x4e0   : > { %v2206_v34 = vpop.xlane.xlu1 %1025  ;;  %v2208_v24 = vpop.xlane.xlu0 %1022 }
 0x4e1   : > { %v776_v50 = vmul.f32 1.442695, %v760_v32  ;;  %v784_v23 = vmul.f32 1.442695, %v764_v57 }
 0x4e3   : > { %1699 = vpow2.f32 %v776_v50 }
 0x4e4   : > { %v920_v35 = vpop.xlane.xlu1 %919  ;;  %v917_v31 = vpop.xlane.xlu0 %916 }
 0x4e5   : > { %v1058_v39 = vmul.f32 %v920_v35, %v2139_v61  ;;  %v1057_v54 = vmul.f32 %v917_v31, %v2134_v41  ;;  %v761_v35 = vmul.f32 %v1889_v5, %v2102_v62 }
 0x4e7   : > { %1138 = vrot.lane.b32.xlu1 %v1058_v39, %s1742_s11  ;;  %1126 = vrot.lane.b32.xlu0 %v1057_v54, %s1742_s11  ;;  %v778_v39 = vmul.f32 1.442695, %v761_v35  ;;  %v780_v54 = vmul.f32 1.442695, %v762_v20 }
 0x4e8   : > { %v923_v60 = vpop.xlane.xlu0 %922 }
 0x4e9   : > { %v1059_v53 = vmul.f32 %v923_v60, %v2144_v21  ;;  %v763_v60 = vmul.f32 %v1903_v8, %v2109_v30  ;;  %1701 = vpow2.f32 %v778_v39  ;;  %v765_v8 = vmul.f32 %v1917_v10, %v2116_v58 }
 0x4ea   : > { %1703 = vpow2.f32 %v780_v54  ;;  %v767_v58 = vmul.f32 %v1931_v12, %v2124_v27  ;;  %v769_v12 = vmul.f32 %v1945_v14, %v2134_v41 }
 0x4eb   : > { %1140 = vrot.lane.b32.xlu0 %v1059_v53, %s1742_s11  ;;  %v782_v5 = vmul.f32 1.442695, %v763_v60 }
 0x4ec   : > { %v926_v42 = vpop.xlane.xlu1 %925  ;;  %v790_v39 = vmul.f32 1.442695, %v767_v58 }
 0x4ed   : > { %v1060_v63 = vmul.f32 %v926_v42, %v2149_v25  ;;  %v1700_v4 = vpop.eup %1699  ;;  %1705 = vpow2.f32 %v782_v5 }
 0x4ee   : > { %v1064_v30 = vmul.f32 0.0, %v1700_v4  ;;  %1707 = vpow2.f32 %v784_v23 }
 0x4ef   : > { %1152 = vrot.lane.b32.xlu1 %v1060_v63, %s1742_s11 }
 0x4f0   : > { %v929_v22 = vpop.xlane.xlu0 %928 }
 0x4f1   : > { %v1061_v56 = vmul.f32 %v929_v22, %v2153_v52  ;;  %v766_v22 = vmul.f32 %v1910_v9, %v2120_v0  ;;  %v768_v0 = vmul.f32 %v1924_v11, %v2129_v33  ;;  %v770_v11 = vmul.f32 %v1938_v13, %v2139_v61 }
 0x4f2   : > { %v771_v13 = vmul.f32 %v1959_v16, %v2144_v21  ;;  %v772_v61 = vmul.f32 %v1952_v15, %v2149_v25  ;;  %v773_v25 = vmul.f32 %v1973_v18, %v2153_v52 }
 0x4f3   : > { %1154 = vrot.lane.b32.xlu0 %v1061_v56, %s1742_s11  ;;  %v1702_v63 = vpop.eup %1701  ;;  %v792_v60 = vmul.f32 1.442695, %v768_v0 }
 0x4f4   : > { %v932_v48 = vpop.xlane.xlu1 %931  ;;  %v1704_v36 = vpop.eup %1703  ;;  %v800_v15 = vmul.f32 1.442695, %v772_v61 }
 0x4f5   : > { %v1062_v26 = vmul.f32 %v932_v48, %v2157_v47  ;;  %v786_v48 = vmul.f32 1.442695, %v765_v8 }
 0x4f7   : > { %1166 = vrot.lane.b32.xlu1 %v1062_v26, %s1742_s11  ;;  %1293 = vrot.lane.b32.xlu0 %v1291_v55, %s1742_s11  ;;  %v1065_v26 = vmul.f32 0.0, %v1702_v63  ;;  %v1706_v10 = vpop.eup %1705  ;;  %1709 = vpow2.f32 %v786_v48 }
 0x4f8   : > { %v935_v59 = vpop.xlane.xlu0 %934  ;;  %v2234_v38 = vpop.xlane.xlu1 %1031 }
 0x4f9   : > { %v1063_v28 = vmul.f32 %v935_v59, %v2161_v40  ;;  %v788_v59 = vmul.f32 1.442695, %v766_v22  ;;  %v1708_v20 = vpop.eup %1707 }
 0x4fb   : > { %1168 = vrot.lane.b32.xlu1 %v1063_v28, %s1742_s11  ;;  %1711 = vpow2.f32 %v788_v59 }
 0x4fc   : > { %v2230_v31 = vpop.xlane.xlu0 %1028  ;;  %v2240_v2 = vpop.xlane.xlu1 %1037  ;;  %1713 = vpow2.f32 %v790_v39 }
 0x4fd   : > { %1715 = vpow2.f32 %v792_v60 }
 0x500   : > { %v2238_v53 = vpop.xlane.xlu0 %1034  ;;  %v2246_v42 = vpop.xlane.xlu1 %1043 }
 0x501   : > { %v1710_v8 = vpop.eup %1709 }
 0x504   : > { %v2244_v62 = vpop.xlane.xlu0 %1040 }
 0x508   : > { %v2252_v56 = vpop.xlane.xlu0 %1046 }
 0x531   : > { %v1069_v49 = vpop.permute.xlu1 %1068 }
 0x532   : > { %v1074_v7 = vadd.f32 %v1069_v49, %v1064_v30  ;;  %v1712_v49 = vpop.eup %1711 }
 0x534   : > { %1076 = vst.msk [vmem:[#allocation2] sm:$0xff] %vm419_vm2, %v1074_v7  ;;  %v1078_v55 = vmul.f32 %v1704_v36, %v1074_v7  ;;  %v794_v7 = vmul.f32 1.442695, %v769_v12 }
 0x535   : > { %v1071_v28 = vpop.permute.xlu0 %1070 }
 0x536   : > { %v1075_v32 = vadd.f32 %v1071_v28, %v1065_v26  ;;  %1717 = vpow2.f32 %v794_v7  ;;  %v1714_v26 = vpop.eup %1713 }
 0x537   : > { %v1716_v28 = vpop.eup %1715 }
 0x538   : > { %1077 = vst.msk [vmem:[#allocation2 + $0x8] sm:$0xff] %vm419_vm2, %v1075_v32  ;;  %v1079_v9 = vmul.f32 %v1706_v10, %v1075_v32  ;;  %v798_v32 = vmul.f32 1.442695, %v771_v13 }
 0x539   : > { %v1083_v50 = vpop.permute.xlu1 %1082 }
 0x53a   : > { %v1088_v35 = vadd.f32 %v1083_v50, %v1078_v55  ;;  %v802_v50 = vmul.f32 1.442695, %v773_v25 }
 0x53b   : > { %v1177_v5 = vld [vmem:[#allocation2] sm:$0xff] }
 0x53c   : > { %1090 = vst.msk [vmem:[#allocation2 + $0x10] sm:$0xff] %vm419_vm2, %v1088_v35  ;;  %v1092_v54 = vmul.f32 %v1708_v20, %v1088_v35  ;;  %v1193_v27 = vmul.f32 %v1177_v5, %v2175_v37  ;;  %v796_v37 = vmul.f32 1.442695, %v770_v11  ;;  %v774_v35 = vmul.f32 %v1966_v17, %v2157_v47 }
 0x53e   : > { %1719 = vpow2.f32 %v796_v37  ;;  %v804_v47 = vmul.f32 1.442695, %v774_v35 }
 0x53f   : > { %v1178_v57 = vld [vmem:[#allocation2 + $0x8] sm:$0xff]  ;;  %1721 = vpow2.f32 %v798_v32 }
 0x540   : > { %v1194_v4 = vmul.f32 %v1178_v57, %v2181_v43  ;;  %1723 = vpow2.f32 %v800_v15 }
 0x541   : > { %v1097_v33 = vpop.permute.xlu1 %1096  ;;  %v1085_v23 = vpop.permute.xlu0 %1084  ;;  %1725 = vpow2.f32 %v802_v50 }
 0x542   : > { %v1102_v30 = vadd.f32 %v1097_v33, %v1092_v54  ;;  %v1089_v63 = vadd.f32 %v1085_v23, %v1079_v9  ;;  %v1639_v22 = vpack.c.bf16 %v1194_v4, %v1193_v27  ;;  %v775_v27 = vmul.f32 %v1982_v19, %v2161_v40 }
 0x543   : > { %v1179_v48 = vld [vmem:[#allocation2 + $0x10] sm:$0xff]  ;;  %1727 = vpow2.f32 %v804_v47  ;;  %v1302_v47 = vld [vmem:[%s2361_s1 + $0x88] sm:$0xff] }
 0x544   : > { %1104 = vst.msk [vmem:[#allocation2 + $0x20] sm:$0xff] %vm419_vm2, %v1102_v30  ;;  %1091 = vst.msk [vmem:[#allocation2 + $0x18] sm:$0xff] %vm419_vm2, %v1089_v63  ;;  %1640 = vmatpush3.bf16.msra.mxu0 %v1639_v22  ;;  %v1106_v14 = vmul.f32 %v1712_v49, %v1102_v30  ;;  %v1093_v41 = vmul.f32 %v1710_v8, %v1089_v63  ;;  %v1195_v16 = vmul.f32 %v1179_v48, %v2183_v46 }
 0x545   : > { %1641 = vmatprep.subr.bf16.mxu0 %v1739_v3  ;;  %v806_v11 = vmul.f32 1.442695, %v775_v27 }
 0x547   : > { %1729 = vpow2.f32 %v806_v11 }
 0x549   : > { %v1111_v43 = vpop.permute.xlu1 %1110  ;;  %v1099_v36 = vpop.permute.xlu0 %1098 }
 0x54a   : > { %v1116_v55 = vadd.f32 %v1111_v43, %v1106_v14  ;;  %v1103_v59 = vadd.f32 %v1099_v36, %v1093_v41 }
 0x54b   : > { %v1180_v10 = vld [vmem:[#allocation2 + $0x18] sm:$0xff]  ;;  %v1181_v46 = vld [vmem:[#allocation2 + $0x20] sm:$0xff] }
 0x54c   : > { %1118 = vst.msk [vmem:[#allocation2 + $0x30] sm:$0xff] %vm419_vm2, %v1116_v55  ;;  %1105 = vst.msk [vmem:[#allocation2 + $0x28] sm:$0xff] %vm419_vm2, %v1103_v59  ;;  %v1196_v21 = vmul.f32 %v1180_v10, %v2191_v45  ;;  %v1120_v58 = vmul.f32 %v1716_v28, %v1116_v55  ;;  %v1107_v9 = vmul.f32 %v1714_v26, %v1103_v59  ;;  %v1718_v45 = vpop.eup %1717 }
 0x54d   : > { %v1720_v5 = vpop.eup %1719  ;;  %v1197_v18 = vmul.f32 %v1181_v46, %v2189_v1 }
 0x54e   : > { %v1642_v0 = vpack.c.bf16 %v1196_v21, %v1195_v16  ;;  %v1722_v30 = vpop.eup %1721 }
 0x550   : > { %1643 = vmatpush3.bf16.msra.mxu0 %v1642_v0 }
 0x551   : > { %v1125_v20 = vpop.permute.xlu1 %1124  ;;  %v1113_v39 = vpop.permute.xlu0 %1112  ;;  %1644 = vmatprep.subr.bf16.mxu0 %v1739_v3 }
 0x552   : > { %v1130_v54 = vadd.f32 %v1125_v20, %v1120_v58  ;;  %v1117_v60 = vadd.f32 %v1113_v39, %v1107_v9 }
 0x553   : > { %v1182_v57 = vld [vmem:[#allocation2 + $0x28] sm:$0xff]  ;;  %v1183_v8 = vld [vmem:[#allocation2 + $0x30] sm:$0xff] }
 0x554   : > { %1132 = vst.msk [vmem:[#allocation2 + $0x40] sm:$0xff] %vm419_vm2, %v1130_v54  ;;  %1119 = vst.msk [vmem:[#allocation2 + $0x38] sm:$0xff] %vm419_vm2, %v1117_v60  ;;  %v1198_v52 = vmul.f32 %v1182_v57, %v2200_v29  ;;  %v1134_v12 = vmul.f32 %v1720_v5, %v1130_v54  ;;  %v1121_v17 = vmul.f32 %v1718_v45, %v1117_v60  ;;  %v1724_v29 = vpop.eup %1723  ;;  %v1297_v57 = vld [vmem:[%s2361_s1 + $0x60] sm:$0xff] }
 0x555   : > { %v1199_v19 = vmul.f32 %v1183_v8, %v2198_v44  ;;  %v1726_v13 = vpop.eup %1725 }
 0x556   : > { %v1645_v4 = vpack.c.bf16 %v1198_v52, %v1197_v18  ;;  %v1728_v26 = vpop.eup %1727 }
 0x557   : > { %v1730_v21 = vpop.eup %1729 }
 0x558   : > { %1646 = vmatpush3.bf16.msra.mxu0 %v1645_v4  ;;  %v1304_v4 = vld [vmem:[%s2361_s1 + $0x98] sm:$0xff] }
 0x559   : > { %v1139_v33 = vpop.permute.xlu1 %1138  ;;  %v1127_v23 = vpop.permute.xlu0 %1126  ;;  %1647 = vmatprep.subr.bf16.mxu0 %v1739_v3 }
 0x55a   : > { %v1144_v1 = vadd.f32 %v1139_v33, %v1134_v12  ;;  %v1131_v63 = vadd.f32 %v1127_v23, %v1121_v17  ;;  %v1301_v17 = vld [vmem:[%s2361_s1 + $0x80] sm:$0xff]  ;;  %v1468_v33 = vld [vmem:[%s2362_s2 + $0x18] ss:$0 sm:$0xff] }
 0x55b   : > { %v1184_v22 = vld [vmem:[#allocation2 + $0x38] sm:$0xff]  ;;  %v1185_v36 = vld [vmem:[#allocation2 + $0x40] sm:$0xff]  ;;  %v1669_v27 = vpack.c.bf16 %v1302_v47, %v1301_v17  ;;  %v1214_v23 = vmul.f32 %v1468_v33, %v1862_v51 }
 0x55c   : > { %1146 = vst.msk [vmem:[#allocation2 + $0x50] sm:$0xff] %vm419_vm2, %v1144_v1  ;;  %1133 = vst.msk [vmem:[#allocation2 + $0x48] sm:$0xff] %vm419_vm2, %v1131_v63  ;;  %v1135_v49 = vmul.f32 %v1722_v30, %v1131_v63  ;;  %v1200_v40 = vmul.f32 %v1184_v22, %v2208_v24  ;;  %v1148_v7 = vmul.f32 %v1724_v29, %v1144_v1  ;;  %v1470_v29 = vld [vmem:[%s2362_s2 + $0x20] ss:$0 sm:$0xff] }
 0x55d   : > { %v1141_v14 = vpop.permute.xlu0 %1140  ;;  %v1201_v44 = vmul.f32 %v1185_v36, %v2206_v34 }
 0x55e   : > { %v1145_v41 = vadd.f32 %v1141_v14, %v1135_v49  ;;  %v1648_v37 = vpack.c.bf16 %v1200_v40, %v1199_v19 }
 0x560   : > { %1147 = vst.msk [vmem:[#allocation2 + $0x58] sm:$0xff] %vm419_vm2, %v1145_v41  ;;  %1649 = vmatpush3.bf16.msra.mxu0 %v1648_v37  ;;  %v1149_v61 = vmul.f32 %v1726_v13, %v1145_v41 }
 0x561   : > { %v1153_v43 = vpop.permute.xlu1 %1152  ;;  %1650 = vmatprep.subr.bf16.mxu0 %v1739_v3 }
 0x562   : > { %v1158_v48 = vadd.f32 %v1153_v43, %v1148_v7 }
 0x563   : > { %v1186_v55 = vld [vmem:[#allocation2 + $0x48] sm:$0xff]  ;;  %v1187_v32 = vld [vmem:[#allocation2 + $0x50] sm:$0xff] }
 0x564   : > { %1160 = vst.msk [vmem:[#allocation2 + $0x60] sm:$0xff] %vm419_vm2, %v1158_v48  ;;  %v1202_v24 = vmul.f32 %v1186_v55, %v2230_v31  ;;  %v1162_v59 = vmul.f32 %v1728_v26, %v1158_v48  ;;  %v1203_v9 = vmul.f32 %v1187_v32, %v2234_v38 }
 0x565   : > { %v1155_v28 = vpop.permute.xlu0 %1154 }
 0x566   : > { %v1159_v10 = vadd.f32 %v1155_v28, %v1149_v61  ;;  %v1651_v16 = vpack.c.bf16 %v1202_v24, %v1201_v44 }
 0x567   : > { %v1188_v58 = vld [vmem:[#allocation2 + $0x58] sm:$0xff] }
 0x568   : > { %1161 = vst.msk [vmem:[#allocation2 + $0x68] sm:$0xff] %vm419_vm2, %v1159_v10  ;;  %1652 = vmatpush3.bf16.msra.mxu0 %v1651_v16  ;;  %v1204_v15 = vmul.f32 %v1188_v58, %v2238_v53  ;;  %v1163_v25 = vmul.f32 %v1730_v21, %v1159_v10 }
 0x569   : > { %v1167_v0 = vpop.permute.xlu1 %1166  ;;  %1653 = vmatprep.subr.bf16.mxu0 %v1739_v3 }
 0x56a   : > { %v1172_v34 = vadd.f32 %v1167_v0, %v1162_v59  ;;  %v1654_v31 = vpack.c.bf16 %v1204_v15, %v1203_v9 }
 0x56b   : > { %v1189_v35 = vld [vmem:[#allocation2 + $0x60] sm:$0xff] }
 0x56c   : > { %1174 = vst.msk [vmem:[#allocation2 + $0x70] sm:$0xff] %vm419_vm2, %v1172_v34  ;;  %1655 = vmatpush3.bf16.msra.mxu0 %v1654_v31  ;;  %v1205_v38 = vmul.f32 %v1189_v35, %v2240_v2  ;;  %v1298_v2 = vld [vmem:[%s2361_s1 + $0x68] sm:$0xff] }
 0x56d   : > { %v1169_v50 = vpop.permute.xlu1 %1168  ;;  %1656 = vmatprep.subr.bf16.mxu0 %v1739_v3  ;;  %v1663_v52 = vpack.c.bf16 %v1298_v2, %v1297_v57 }
 0x56e   : > { %v1173_v20 = vadd.f32 %v1169_v50, %v1163_v25 }
 0x56f   : > { %v1190_v39 = vld [vmem:[#allocation2 + $0x68] sm:$0xff] }
 0x570   : > { %1175 = vst.msk [vmem:[#allocation2 + $0x78] sm:$0xff] %vm419_vm2, %v1173_v20  ;;  %v1206_v53 = vmul.f32 %v1190_v39, %v2244_v62  ;;  %v1176_v62 = vld [vmem:[%s2364_s4] sm:$0xff] }
 0x572   : > { %v1657_v46 = vpack.c.bf16 %v1206_v53, %v1205_v38 }
 0x573   : > { %v1191_v45 = vld [vmem:[#allocation2 + $0x70] sm:$0xff] }
 0x574   : > { %1658 = vmatpush3.bf16.msra.mxu0 %v1657_v46  ;;  %v1207_v60 = vmul.f32 %v1191_v45, %v2246_v42  ;;  %v1299_v42 = vld [vmem:[%s2361_s1 + $0x70] sm:$0xff] }
 0x575   : > { %1659 = vmatprep.subr.bf16.mxu0 %v1739_v3 }
 0x577   : > { %v1192_v54 = vld [vmem:[#allocation2 + $0x78] sm:$0xff] }
 0x578   : > { %v1208_v5 = vmul.f32 %v1192_v54, %v2252_v56  ;;  %v1300_v56 = vld [vmem:[%s2361_s1 + $0x78] sm:$0xff] }
 0x579   : > { %v1666_v12 = vpack.c.bf16 %v1300_v56, %v1299_v42 }
 0x57a   : > { %v1660_v18 = vpack.c.bf16 %v1208_v5, %v1207_v60 }
 0x57c   : > { %1661 = vmatpush3.bf16.msra.mxu0 %v1660_v18 }
 0x57d   : > { %1662 = vmatprep.subr.bf16.mxu0 %v1739_v3 }
 0x57f   : > { %1593 = vmatmul.mubr.f32.vlgmr.msra.gmra.mrb[4].mxu0 %v1176_v62 }
 0x580   : > { %1664 = vmatpush3.bf16.msra.mxu0 %v1663_v52  ;;  %1611 = vmatprep.mubr.msk.f32.mxu0 %vm1740_vm0, %v1741_v6  ;;  %v1303_v6 = vld [vmem:[%s2361_s1 + $0x90] sm:$0xff] }
 0x581   : > { %1665 = vmatprep.subr.bf16.mxu0 %v1739_v3  ;;  %v1672_v11 = vpack.c.bf16 %v1304_v4, %v1303_v6 }
 0x584   : > { %1667 = vmatpush3.bf16.msra.mxu0 %v1666_v12 }
 0x585   : > { %1668 = vmatprep.subr.bf16.mxu0 %v1739_v3 }
 0x588   : > { %1670 = vmatpush3.bf16.msra.mxu0 %v1669_v27 }
 0x589   : > { %1671 = vmatprep.subr.bf16.mxu0 %v1739_v3  ;;  %v1294_v3 = vpop.permute.xlu0 %1293 }
 0x58c   : > { %1673 = vmatpush3.bf16.msra.mxu0 %v1672_v11 }
 0x652   : > { %v1281_v8 = vpop.f32.mrb[4].mxu0 }
 0x653   : > { %v1282_v30 = vadd.f32 %v1281_v8, %v1214_v23  ;;  %v1594_v1 = vpop.f32.mrb[5].mxu0 }
 0x655   : > { %v1296_v63 = vmul.f32 %v1294_v3, %v1282_v30 }
 0x657   : > { %1612 = vmatmul.mubr.msk.f32.vlgmr.msra.gmra.mrb[6].mxu0 %vm419_vm2, %v1296_v63 }
 0x72a   : > { %v1379_v22 = vpop.f32.mrb[6].mxu0 }
 0x72b   : > { %v1380_v49 = vadd.f32 %v1470_v29, %v1379_v22  ;;  %v1613_v51 = vpop.f32.mrb[7].mxu0 }
 0x72d   : > { %1384 = vst.msk [vmem:[%s219_s15] sm:$0xff] %vm1383_vm4, %v1380_v49 }
 0x72e PF: > { %s15_s18 = sadd.s32 1, %s1737_s18  }
 0x72f   : > { %p12_p4 = scmp.ge.s32.totalorder %s15_s18, 4  }
 0x731   :  { %14 = sbr.rel (!%p12_p4) target bundleno = 1 (0x1), region = 70 }

// kernel: graph_ssm_forward.2
= control target key start
LH: loop header
LB: loop body
LE: loop exit
PB: predicated region body
PF: predicated region fallthrough
CT: control target
= control target key end

     0   :  { %s4611_s12 = smov 0   ;;  %s6408_s0 = inlined_call_operand.vmem [shape: f32[256,144], index: 0, kind: input, shape index: {}]   ;;  %s6409_s1 = inlined_call_operand.vmem [shape: f32[1248,256], index: 1, kind: input, shape index: {}]   ;;  %s6410_s2 = inlined_call_operand.vmem [shape: f32[8,128], index: 2, kind: input, shape index: {}]   ;;  %s6411_s3 = inlined_call_operand.vmem [shape: f32[16,32], index: 3, kind: output, shape index: {}]  }
   0x1 LB: > { %s4617_s13 = sadd.s32 4294967295, %s4586_s12   ;;  %p3440_p0 = scmp.ge.s32.totalorder %s4586_s12, 1  ;;  %s4586_s12 = sphi %s4611_s12, %s13_s12  }
   0x2   : > { %p139_p1 = scmp.lt.s32.totalorder %s4586_s12, 3 }
   0x4   : > { %p140_p2 = pnand %p3440_p0, %p139_p1 }
   0x6   : > { %143 = sbr.rel (%p140_p2) target bundleno = 2661 (0xa65), region = 32 }
   0xd   : > { %v206_v0 = vld [vmem:[%s6409_s1] sm:$0xff]  ;;  %v207_v1 = vld [vmem:[%s6409_s1 + $0x10] sm:$0xff]  ;;  %s3441_s20 = sshll.u32 %s4617_s13, 4  ;;  %v6412_v3 = vmov 0.0|0.0   ;;  %vm225_vm0 = vcmask 130048   ;;  %v564_v60 = vld [vmem:[%s6409_s1 + $0x128] sm:$0xff] }
   0xe   : > { %v208_v2 = vld [vmem:[%s6409_s1 + $0x20] sm:$0xff]  ;;  %4102 = vmatprep.subr.bf16.mxu0 %v6412_v3  ;;  %v4103_v4 = vpack.c.bf16 %v207_v1, %v206_v0  ;;  %v209_v5 = vld [vmem:[%s6409_s1 + $0x30] sm:$0xff]  ;;  %p164_p3 = scmp.lt.s32.totalorder %s3441_s20, 31  ;;  %v566_v61 = vld [vmem:[%s6409_s1 + $0x138] sm:$0xff]  ;;  %vm592_vm1 = vcmask 523264   ;;  %vm2243_vm2 = vcmask 261120  }
   0xf   : > { %v4106_v6 = vpack.c.bf16 %v209_v5, %v208_v2  ;;  %v210_v7 = vld [vmem:[%s6409_s1 + $0x40] sm:$0xff]  ;;  %v211_v8 = vld [vmem:[%s6409_s1 + $0x50] sm:$0xff]  ;;  %v4129_v62 = vpack.c.bf16 %v566_v61, %v564_v60  ;;  %v568_v2 = vld [vmem:[%s6409_s1 + $0x148] sm:$0xff]  ;;  %vm4590_vm3 = vmmov 0   ;;  %p170_p4 = scmp.lt.s32.totalorder %s4617_s13, 1 }
  0x10   : > { %4104 = vmatpush1.bf16.msra.mxu0 %v4103_v4  ;;  %s6442_s20 = smov (!%p164_p3, %s3441_s20), 31  ;;  %v4109_v9 = vpack.c.bf16 %v211_v8, %v210_v7  ;;  %v212_v11 = vld [vmem:[%s6409_s1 + $0x60] sm:$0xff]  ;;  %v213_v12 = vld [vmem:[%s6409_s1 + $0x70] sm:$0xff]  ;;  %v570_v4 = vld [vmem:[%s6409_s1 + $0x158] sm:$0xff] }
  0x11   : > { %4105 = vmatprep.subr.bf16.mxu0 %v6412_v3  ;;  %s3545_s27 = sshll.u32 %s6442_s20, 4  ;;  %v4112_v13 = vpack.c.bf16 %v213_v12, %v212_v11  ;;  %v214_v14 = vld [vmem:[%s6409_s1 + $0x80] sm:$0xff]  ;;  %v215_v15 = vld [vmem:[%s6409_s1 + $0x90] sm:$0xff]  ;;  %4130 = vmatprep.subr.bf16.mxu1 %v4129_v62  ;;  %v4133_v5 = vpack.c.bf16 %v570_v4, %v568_v2  ;;  %s6444_s13 = smov (!%p170_p4, %s4617_s13), 1 }
  0x12   : > { %s4645_s30 = scalar_lea.vmem %s6408_s0, %s3545_s27  ;;  %v4115_v16 = vpack.c.bf16 %v215_v15, %v214_v14  ;;  %v216_v17 = vld [vmem:[%s6409_s1 + $0xa0] sm:$0xff]  ;;  %v217_v18 = vld [vmem:[%s6409_s1 + $0xb0] sm:$0xff]  ;;  %v576_v15 = vld [vmem:[%s6409_s1 + $0x188] sm:$0xff]  ;;  %s3444_s15 = sshll.u32 %s6444_s13, 3 }
  0x13   : > { %v175_v10 = vld [vmem:[%s4645_s30 + $0x8] sm:$0xff]  ;;  %v4118_v19 = vpack.c.bf16 %v217_v18, %v216_v17  ;;  %v218_v20 = vld [vmem:[%s6409_s1 + $0xc0] sm:$0xff]  ;;  %v219_v21 = vld [vmem:[%s6409_s1 + $0xd0] sm:$0xff]  ;;  %s173_s18 = scalar_lea.vmem %s6411_s3, %s3444_s15 }
  0x14   : > { %4107 = vmatpush1.bf16.msra.mxu0 %v4106_v6  ;;  %3445 = vmatprep.mubr.msk.f32.mxu0 %vm225_vm0, %v175_v10  ;;  %v4121_v22 = vpack.c.bf16 %v219_v21, %v218_v20  ;;  %v220_v23 = vld [vmem:[%s6409_s1 + $0xe0] sm:$0xff]  ;;  %v221_v24 = vld [vmem:[%s6409_s1 + $0xf0] sm:$0xff]  ;;  %v177_v30 = vld [vmem:[%s4645_s30 + $0x18] sm:$0xff]  ;;  %v6416_v21 = vmov 0.0  }
  0x15   : > { %4108 = vmatprep.subr.bf16.mxu0 %v6412_v3  ;;  %v4124_v25 = vpack.c.bf16 %v221_v24, %v220_v23  ;;  %v222_v26 = vld [vmem:[%s6409_s1 + $0x100] sm:$0xff]  ;;  %v223_v27 = vld [vmem:[%s6409_s1 + $0x110] sm:$0xff]  ;;  %v179_v32 = vld [vmem:[%s4645_s30 + $0x28] sm:$0xff]  ;;  %705 = vmatprep.mubr.f32.mxu1 %v6416_v21 }
  0x16   : > { %v4127_v28 = vpack.c.bf16 %v223_v27, %v222_v26  ;;  %v174_v29 = vld [vmem:[%s4645_s30] sm:$0xff]  ;;  %v176_v31 = vld [vmem:[%s4645_s30 + $0x10] sm:$0xff]  ;;  %v181_v34 = vld [vmem:[%s4645_s30 + $0x38] sm:$0xff] }
  0x17   : > { %v178_v33 = vld [vmem:[%s4645_s30 + $0x20] sm:$0xff]  ;;  %v180_v35 = vld [vmem:[%s4645_s30 + $0x30] sm:$0xff]  ;;  %v183_v36 = vld [vmem:[%s4645_s30 + $0x48] sm:$0xff] }
  0x18   : > { %4110 = vmatpush1.bf16.msra.mxu0 %v4109_v9  ;;  %v182_v37 = vld [vmem:[%s4645_s30 + $0x40] sm:$0xff]  ;;  %v185_v38 = vld [vmem:[%s4645_s30 + $0x58] sm:$0xff]  ;;  %v184_v39 = vld [vmem:[%s4645_s30 + $0x50] sm:$0xff] }
  0x19   : > { %4111 = vmatprep.subr.bf16.mxu0 %v6412_v3  ;;  %v187_v40 = vld [vmem:[%s4645_s30 + $0x68] sm:$0xff]  ;;  %v186_v41 = vld [vmem:[%s4645_s30 + $0x60] sm:$0xff]  ;;  %v189_v42 = vld [vmem:[%s4645_s30 + $0x78] sm:$0xff] }
  0x1a   : > { %v188_v43 = vld [vmem:[%s4645_s30 + $0x70] sm:$0xff]  ;;  %v191_v44 = vld [vmem:[%s4645_s30 + $0x88] sm:$0xff]  ;;  %v190_v45 = vld [vmem:[%s4645_s30 + $0x80] sm:$0xff] }
  0x1b   : > { %v193_v46 = vld [vmem:[%s4645_s30 + $0x98] sm:$0xff]  ;;  %v192_v47 = vld [vmem:[%s4645_s30 + $0x90] sm:$0xff]  ;;  %v195_v48 = vld [vmem:[%s4645_s30 + $0xa8] sm:$0xff] }
  0x1c   : > { %4113 = vmatpush1.bf16.msra.mxu0 %v4112_v13  ;;  %v194_v49 = vld [vmem:[%s4645_s30 + $0xa0] sm:$0xff]  ;;  %v197_v50 = vld [vmem:[%s4645_s30 + $0xb8] sm:$0xff]  ;;  %v196_v51 = vld [vmem:[%s4645_s30 + $0xb0] sm:$0xff] }
  0x1d   : > { %4114 = vmatprep.subr.bf16.mxu0 %v6412_v3  ;;  %v199_v52 = vld [vmem:[%s4645_s30 + $0xc8] sm:$0xff]  ;;  %v198_v53 = vld [vmem:[%s4645_s30 + $0xc0] sm:$0xff]  ;;  %v201_v54 = vld [vmem:[%s4645_s30 + $0xd8] sm:$0xff] }
  0x1e   : > { %v200_v55 = vld [vmem:[%s4645_s30 + $0xd0] sm:$0xff]  ;;  %v203_v56 = vld [vmem:[%s4645_s30 + $0xe8] sm:$0xff]  ;;  %v202_v57 = vld [vmem:[%s4645_s30 + $0xe0] sm:$0xff] }
  0x1f   : > { %v205_v58 = vld [vmem:[%s4645_s30 + $0xf8] sm:$0xff]  ;;  %v204_v59 = vld [vmem:[%s4645_s30 + $0xf0] sm:$0xff]  ;;  %v563_v63 = vld [vmem:[%s6409_s1 + $0x120] sm:$0xff] }
  0x20   : > { %4116 = vmatpush1.bf16.msra.mxu0 %v4115_v16  ;;  %v565_v0 = vld [vmem:[%s6409_s1 + $0x130] sm:$0xff]  ;;  %v567_v6 = vld [vmem:[%s6409_s1 + $0x140] sm:$0xff]  ;;  %v572_v9 = vld [vmem:[%s6409_s1 + $0x168] sm:$0xff] }
  0x21   : > { %4117 = vmatprep.subr.bf16.mxu0 %v6412_v3  ;;  %v4131_v1 = vpack.c.bf16 %v565_v0, %v563_v63  ;;  %v569_v7 = vld [vmem:[%s6409_s1 + $0x150] sm:$0xff]  ;;  %v574_v10 = vld [vmem:[%s6409_s1 + $0x178] sm:$0xff]  ;;  %v571_v12 = vld [vmem:[%s6409_s1 + $0x160] sm:$0xff] }
  0x22   : > { %v4135_v8 = vpack.c.bf16 %v569_v7, %v567_v6  ;;  %v4137_v11 = vpack.c.bf16 %v574_v10, %v572_v9  ;;  %v573_v13 = vld [vmem:[%s6409_s1 + $0x170] sm:$0xff]  ;;  %v578_v16 = vld [vmem:[%s6409_s1 + $0x198] sm:$0xff]  ;;  %v575_v18 = vld [vmem:[%s6409_s1 + $0x180] sm:$0xff] }
  0x23   : > { %4132 = vmatpush1.bf16.msra.mxu1 %v4131_v1  ;;  %v4139_v14 = vpack.c.bf16 %v573_v13, %v571_v12  ;;  %v4141_v17 = vpack.c.bf16 %v578_v16, %v576_v15  ;;  %v1107_v23 = vld [vmem:[%s6409_s1 + $0x2b0] sm:$0xff] }
  0x24   : > { %4119 = vmatpush1.bf16.msra.mxu0 %v4118_v19  ;;  %4134 = vmatprep.subr.bf16.mxu1 %v4133_v5  ;;  %v577_v19 = vld [vmem:[%s6409_s1 + $0x190] sm:$0xff] }
  0x25   : > { %4120 = vmatprep.subr.bf16.mxu0 %v6412_v3  ;;  %v4143_v20 = vpack.c.bf16 %v577_v19, %v575_v18  ;;  %v1091_v9 = vld [vmem:[%s6409_s1 + $0x1b0] sm:$0xff] }
  0x26   : > { %v1109_v15 = vld [vmem:[%s6409_s1 + $0x2d0] sm:$0xff] }
  0x27   : > { %4136 = vmatpush1.bf16.msra.mxu1 %v4135_v8  ;;  %v1090_v8 = vld [vmem:[%s6409_s1 + $0x1a0] sm:$0xff] }
  0x28   : > { %4122 = vmatpush1.bf16.msra.mxu0 %v4121_v22  ;;  %4138 = vmatprep.subr.bf16.mxu1 %v4137_v11  ;;  %v1106_v22 = vld [vmem:[%s6409_s1 + $0x2a0] sm:$0xff] }
  0x29   : > { %4123 = vmatprep.subr.bf16.mxu0 %v6412_v3  ;;  %v4145_v24 = vpack.c.bf16 %v1107_v23, %v1106_v22  ;;  %v4147_v22 = vpack.c.bf16 %v1091_v9, %v1090_v8 }
  0x2b   : > { %4140 = vmatpush1.bf16.msra.mxu1 %v4139_v14  ;;  %v1108_v14 = vld [vmem:[%s6409_s1 + $0x2c0] sm:$0xff] }
  0x2c   : > { %4125 = vmatpush1.bf16.msra.mxu0 %v4124_v25  ;;  %4142 = vmatprep.subr.bf16.mxu1 %v4141_v17  ;;  %v4797_v25 = vld [vmem:[%s6409_s1 + $0x920] ss:$0 sm:$0xff] }
  0x2d   : > { %4126 = vmatprep.subr.bf16.mxu0 %v6412_v3 }
  0x2f   : > { %4144 = vmatpush1.bf16.msra.mxu1 %v4143_v20 }
  0x30   : > { %4128 = vmatpush1.bf16.msra.mxu0 %v4127_v28  ;;  %4146 = vmatprep.subr.bf16.mxu1 %v4145_v24 }
  0x33   : > { %339 = vmatmul.mubr.f32.vlgmr.msra.gmra.mrb[0].mxu0 %v174_v29 }
  0x34   : > { %3446 = vmatprep.mubr.msk.f32.mxu0 %vm225_vm0, %v177_v30 }
  0x37   : > { %344 = vmatmul.mubr.f32.gmra.mrb[2].mxu0 %v176_v31 }
  0x38   : > { %3447 = vmatprep.mubr.msk.f32.mxu0 %vm225_vm0, %v179_v32 }
  0x3b   : > { %349 = vmatmul.mubr.f32.gmra.mrb[4].mxu0 %v178_v33 }
  0x3c   : > { %3448 = vmatprep.mubr.msk.f32.mxu0 %vm225_vm0, %v181_v34 }
  0x3f   : > { %354 = vmatmul.mubr.f32.gmra.mrb[6].mxu0 %v180_v35 }
  0x40   : > { %3449 = vmatprep.mubr.msk.f32.mxu0 %vm225_vm0, %v183_v36 }
  0x43   : > { %359 = vmatmul.mubr.f32.gmra.mrb[8].mxu0 %v182_v37 }
  0x44   : > { %3450 = vmatprep.mubr.msk.f32.mxu0 %vm225_vm0, %v185_v38 }
  0x47   : > { %364 = vmatmul.mubr.f32.gmra.mrb[10].mxu0 %v184_v39 }
  0x48   : > { %3451 = vmatprep.mubr.msk.f32.mxu0 %vm225_vm0, %v187_v40 }
  0x4b   : > { %369 = vmatmul.mubr.f32.gmra.mrb[12].mxu0 %v186_v41 }
  0x4c   : > { %3452 = vmatprep.mubr.msk.f32.mxu0 %vm225_vm0, %v189_v42 }
  0x4f   : > { %374 = vmatmul.mubr.f32.gmra.mrb[14].mxu0 %v188_v43 }
  0x50   : > { %3453 = vmatprep.mubr.msk.f32.mxu0 %vm225_vm0, %v191_v44 }
  0x53   : > { %379 = vmatmul.mubr.f32.gmra.mrb[16].mxu0 %v190_v45 }
  0x54   : > { %3454 = vmatprep.mubr.msk.f32.mxu0 %vm225_vm0, %v193_v46 }
  0x57   : > { %384 = vmatmul.mubr.f32.gmra.mrb[18].mxu0 %v192_v47 }
  0x58   : > { %3455 = vmatprep.mubr.msk.f32.mxu0 %vm225_vm0, %v195_v48 }
  0x5b   : > { %389 = vmatmul.mubr.f32.gmra.mrb[20].mxu0 %v194_v49 }
  0x5c   : > { %3456 = vmatprep.mubr.msk.f32.mxu0 %vm225_vm0, %v197_v50 }
  0x5f   : > { %394 = vmatmul.mubr.f32.gmra.mrb[22].mxu0 %v196_v51 }
  0x60   : > { %3457 = vmatprep.mubr.msk.f32.mxu0 %vm225_vm0, %v199_v52 }
  0x63   : > { %399 = vmatmul.mubr.f32.gmra.mrb[24].mxu0 %v198_v53 }
  0x64   : > { %3458 = vmatprep.mubr.msk.f32.mxu0 %vm225_vm0, %v201_v54 }
  0x67   : > { %404 = vmatmul.mubr.f32.gmra.mrb[26].mxu0 %v200_v55 }
  0x68   : > { %3459 = vmatprep.mubr.msk.f32.mxu0 %vm225_vm0, %v203_v56 }
  0x6b   : > { %409 = vmatmul.mubr.f32.gmra.mrb[28].mxu0 %v202_v57 }
  0x6c   : > { %3460 = vmatprep.mubr.msk.f32.mxu0 %vm225_vm0, %v205_v58 }
  0x6f   : > { %414 = vmatmul.mubr.f32.gmra.mrb[30].mxu0 %v204_v59 }
  0x70   : > { %1441 = vmatprep.mubr.f32.mxu0 %v6416_v21 }
 0x106   : > { %v340_v26 = vpop.f32.mrb[0].mxu0 }
 0x107   : > { %v4800_v27 = vadd.f32 %v340_v26, %v4797_v25  ;;  %v342_v28 = vpop.f32.mrb[1].mxu0 }
 0x108   : > { %v4149_v28 = vpack.c.bf16 %v1109_v15, %v1108_v14 }
 0x109   : > { %v419_v29 = vmul.f32 %v4800_v27, %v4800_v27 }
 0x10a   : > { %v345_v30 = vpop.f32.mrb[2].mxu0 }
 0x10b   : > { %v435_v31 = vmul.f32 %v419_v29, %v4800_v27  ;;  %v4806_v32 = vadd.f32 %v345_v30, %v4797_v25  ;;  %v347_v33 = vpop.f32.mrb[3].mxu0  ;;  %v1092_v29 = vld [vmem:[%s6409_s1 + $0x1c0] sm:$0xff]  ;;  %v1093_v30 = vld [vmem:[%s6409_s1 + $0x1d0] sm:$0xff] }
 0x10d   : > { %v451_v34 = vmul.f32 0.044715, %v435_v31  ;;  %v420_v35 = vmul.f32 %v4806_v32, %v4806_v32 }
 0x10e   : > { %v350_v36 = vpop.f32.mrb[4].mxu0 }
 0x10f   : > { %v467_v37 = vadd.f32 %v451_v34, %v4800_v27  ;;  %v436_v38 = vmul.f32 %v420_v35, %v4806_v32  ;;  %v4813_v39 = vadd.f32 %v350_v36, %v4797_v25  ;;  %v352_v40 = vpop.f32.mrb[5].mxu0  ;;  %v1110_v35 = vld [vmem:[%s6409_s1 + $0x2e0] sm:$0xff]  ;;  %v1111_v36 = vld [vmem:[%s6409_s1 + $0x2f0] sm:$0xff] }
 0x111   : > { %v483_v41 = vmul.f32 0.7978846, %v467_v37  ;;  %v452_v42 = vmul.f32 0.044715, %v436_v38  ;;  %v421_v43 = vmul.f32 %v4813_v39, %v4813_v39 }
 0x112   : > { %v355_v44 = vpop.f32.mrb[6].mxu0 }
 0x113   : > { %4356 = vtanh.f32 %v483_v41  ;;  %v468_v45 = vadd.f32 %v452_v42, %v4806_v32  ;;  %v437_v46 = vmul.f32 %v421_v43, %v4813_v39  ;;  %v4820_v47 = vadd.f32 %v355_v44, %v4797_v25  ;;  %v357_v48 = vpop.f32.mrb[7].mxu0 }
 0x114   : > { %v4151_v43 = vpack.c.bf16 %v1093_v30, %v1092_v29  ;;  %v4153_v48 = vpack.c.bf16 %v1111_v36, %v1110_v35 }
 0x115   : > { %v484_v49 = vmul.f32 0.7978846, %v468_v45  ;;  %v453_v50 = vmul.f32 0.044715, %v437_v46  ;;  %v422_v51 = vmul.f32 %v4820_v47, %v4820_v47 }
 0x116   : > { %v360_v52 = vpop.f32.mrb[8].mxu0 }
 0x117   : > { %4358 = vtanh.f32 %v484_v49  ;;  %v469_v53 = vadd.f32 %v453_v50, %v4813_v39  ;;  %v438_v54 = vmul.f32 %v422_v51, %v4820_v47  ;;  %v4827_v55 = vadd.f32 %v360_v52, %v4797_v25  ;;  %v362_v56 = vpop.f32.mrb[9].mxu0  ;;  %v1094_v49 = vld [vmem:[%s6409_s1 + $0x1e0] sm:$0xff]  ;;  %v1095_v50 = vld [vmem:[%s6409_s1 + $0x1f0] sm:$0xff] }
 0x118   : > { %v1113_v56 = vld [vmem:[%s6409_s1 + $0x310] sm:$0xff] }
 0x119   : > { %v485_v57 = vmul.f32 0.7978846, %v469_v53  ;;  %v454_v58 = vmul.f32 0.044715, %v438_v54  ;;  %v423_v59 = vmul.f32 %v4827_v55, %v4827_v55  ;;  %v1112_v54 = vld [vmem:[%s6409_s1 + $0x300] sm:$0xff] }
 0x11a   : > { %v365_v60 = vpop.f32.mrb[10].mxu0 }
 0x11b   : > { %4360 = vtanh.f32 %v485_v57  ;;  %v470_v61 = vadd.f32 %v454_v58, %v4820_v47  ;;  %v439_v62 = vmul.f32 %v423_v59, %v4827_v55  ;;  %v4834_v63 = vadd.f32 %v365_v60, %v4797_v25  ;;  %v367_v0 = vpop.f32.mrb[11].mxu0 }
 0x11d   : > { %v4357_v1 = vpop.eup %4356  ;;  %v486_v2 = vmul.f32 0.7978846, %v470_v61  ;;  %v455_v4 = vmul.f32 0.044715, %v439_v62  ;;  %v424_v5 = vmul.f32 %v4834_v63, %v4834_v63  ;;  %v4155_v62 = vpack.c.bf16 %v1095_v50, %v1094_v49 }
 0x11e   : > { %v370_v6 = vpop.f32.mrb[12].mxu0  ;;  %v515_v7 = vadd.f32 1.0, %v4357_v1 }
 0x11f   : > { %4362 = vtanh.f32 %v486_v2  ;;  %v471_v10 = vadd.f32 %v455_v4, %v4827_v55  ;;  %v440_v11 = vmul.f32 %v424_v5, %v4834_v63  ;;  %v4847_v12 = vadd.f32 %v370_v6, %v4797_v25  ;;  %v372_v13 = vpop.f32.mrb[13].mxu0  ;;  %v1096_v5 = vld [vmem:[%s6409_s1 + $0x200] sm:$0xff]  ;;  %v1097_v6 = vld [vmem:[%s6409_s1 + $0x210] sm:$0xff] }
 0x120   : > { %v531_v16 = vmul.f32 0.5, %v515_v7  ;;  %v4157_v4 = vpack.c.bf16 %v1113_v56, %v1112_v54 }
 0x121   : > { %v4359_v17 = vpop.eup %4358  ;;  %v487_v18 = vmul.f32 0.7978846, %v471_v10  ;;  %v456_v19 = vmul.f32 0.044715, %v440_v11  ;;  %v425_v20 = vmul.f32 %v4847_v12, %v4847_v12 }
 0x122   : > { %v375_v23 = vpop.f32.mrb[14].mxu0  ;;  %v4858_v24 = vmul.f32 %v531_v16, %v4800_v27  ;;  %v516_v26 = vadd.f32 1.0, %v4359_v17  ;;  %v4159_v16 = vpack.c.bf16 %v1097_v6, %v1096_v5 }
 0x123   : > { %4364 = vtanh.f32 %v487_v18  ;;  %v472_v31 = vadd.f32 %v456_v19, %v4834_v63  ;;  %v441_v33 = vmul.f32 %v425_v20, %v4847_v12  ;;  %v4869_v34 = vadd.f32 %v375_v23, %v4797_v25  ;;  %v377_v27 = vpop.f32.mrb[15].mxu0 }
 0x124   : > { %3462 = vmatmul.mubr.msk.f32.vlgmr.msra.gmra.mrb[0].mxu1 %vm592_vm1, %v4858_v24  ;;  %v532_v37 = vmul.f32 0.5, %v516_v26 }
 0x125   : > { %v4361_v38 = vpop.eup %4360  ;;  %v488_v40 = vmul.f32 0.7978846, %v472_v31  ;;  %v457_v41 = vmul.f32 0.044715, %v441_v33  ;;  %v426_v42 = vmul.f32 %v4869_v34, %v4869_v34  ;;  %711 = vmatprep.mubr.f32.mxu1 %v6416_v21  ;;  %4148 = vmatpush3.bf16.msra.mxu1 %v4147_v22 }
 0x126   : > { %v380_v44 = vpop.f32.mrb[16].mxu0  ;;  %v4883_v45 = vmul.f32 %v532_v37, %v4806_v32  ;;  %v517_v46 = vadd.f32 1.0, %v4361_v38  ;;  %4150 = vmatprep.subr.bf16.mxu1 %v4149_v28 }
 0x127   : > { %4366 = vtanh.f32 %v488_v40  ;;  %v473_v51 = vadd.f32 %v457_v41, %v4847_v12  ;;  %v442_v52 = vmul.f32 %v426_v42, %v4869_v34  ;;  %v4894_v53 = vadd.f32 %v380_v44, %v4797_v25  ;;  %v382_v32 = vpop.f32.mrb[17].mxu0 }
 0x128   : > { %3463 = vmatmul.mubr.msk.f32.gmra.mrb[2].mxu1 %vm592_vm1, %v4883_v45  ;;  %v533_v57 = vmul.f32 0.5, %v517_v46 }
 0x129   : > { %v4363_v58 = vpop.eup %4362  ;;  %v489_v59 = vmul.f32 0.7978846, %v473_v51  ;;  %v458_v60 = vmul.f32 0.044715, %v442_v52  ;;  %v427_v61 = vmul.f32 %v4894_v53, %v4894_v53  ;;  %717 = vmatprep.mubr.f32.mxu1 %v6416_v21  ;;  %4152 = vmatpush3.bf16.msra.mxu1 %v4151_v43 }
 0x12a   : > { %v385_v0 = vpop.f32.mrb[18].mxu0  ;;  %v4908_v1 = vmul.f32 %v533_v57, %v4813_v39  ;;  %v518_v2 = vadd.f32 1.0, %v4363_v58  ;;  %4154 = vmatprep.subr.bf16.mxu1 %v4153_v48 }
 0x12b   : > { %4368 = vtanh.f32 %v489_v59  ;;  %v474_v7 = vadd.f32 %v458_v60, %v4869_v34  ;;  %v443_v8 = vmul.f32 %v427_v61, %v4894_v53  ;;  %v4919_v9 = vadd.f32 %v385_v0, %v4797_v25  ;;  %v387_v39 = vpop.f32.mrb[19].mxu0 }
 0x12c   : > { %3464 = vmatmul.mubr.msk.f32.gmra.mrb[4].mxu1 %vm592_vm1, %v4908_v1  ;;  %v534_v10 = vmul.f32 0.5, %v518_v2 }
 0x12d   : > { %v4365_v11 = vpop.eup %4364  ;;  %v490_v13 = vmul.f32 0.7978846, %v474_v7  ;;  %v459_v14 = vmul.f32 0.044715, %v443_v8  ;;  %v428_v15 = vmul.f32 %v4919_v9, %v4919_v9  ;;  %723 = vmatprep.mubr.f32.mxu1 %v6416_v21  ;;  %4156 = vmatpush3.bf16.msra.mxu1 %v4155_v62 }
 0x12e   : > { %v390_v17 = vpop.f32.mrb[20].mxu0  ;;  %v4927_v18 = vmul.f32 %v534_v10, %v4820_v47  ;;  %v519_v19 = vadd.f32 1.0, %v4365_v11  ;;  %4158 = vmatprep.subr.bf16.mxu1 %v4157_v4 }
 0x12f   : > { %4370 = vtanh.f32 %v490_v13  ;;  %v475_v20 = vadd.f32 %v459_v14, %v4894_v53  ;;  %v444_v22 = vmul.f32 %v428_v15, %v4919_v9  ;;  %v4932_v23 = vadd.f32 %v390_v17, %v4797_v25  ;;  %v392_v26 = vpop.f32.mrb[21].mxu0 }
 0x130   : > { %3465 = vmatmul.mubr.msk.f32.gmra.mrb[6].mxu1 %vm592_vm1, %v4927_v18  ;;  %v535_v28 = vmul.f32 0.5, %v519_v19 }
 0x131   : > { %v4367_v29 = vpop.eup %4366  ;;  %v491_v30 = vmul.f32 0.7978846, %v475_v20  ;;  %v460_v31 = vmul.f32 0.044715, %v444_v22  ;;  %v429_v47 = vmul.f32 %v4932_v23, %v4932_v23  ;;  %729 = vmatprep.mubr.f32.mxu1 %v6416_v21  ;;  %4160 = vmatpush3.bf16.msra.mxu1 %v4159_v16 }
 0x132   : > { %v395_v33 = vpop.f32.mrb[22].mxu0  ;;  %v4940_v27 = vmul.f32 %v535_v28, %v4827_v55  ;;  %v520_v35 = vadd.f32 1.0, %v4367_v29 }
 0x133   : > { %4372 = vtanh.f32 %v491_v30  ;;  %v476_v36 = vadd.f32 %v460_v31, %v4919_v9  ;;  %v445_v37 = vmul.f32 %v429_v47, %v4932_v23  ;;  %v4945_v38 = vadd.f32 %v395_v33, %v4797_v25  ;;  %v397_v40 = vpop.f32.mrb[23].mxu0 }
 0x134   : > { %3466 = vmatmul.mubr.msk.f32.gmra.mrb[8].mxu1 %vm592_vm1, %v4940_v27  ;;  %v536_v41 = vmul.f32 0.5, %v520_v35 }
 0x135   : > { %v4369_v42 = vpop.eup %4368  ;;  %v492_v43 = vmul.f32 0.7978846, %v476_v36  ;;  %v461_v44 = vmul.f32 0.044715, %v445_v37  ;;  %v430_v55 = vmul.f32 %v4945_v38, %v4945_v38  ;;  %735 = vmatprep.mubr.f32.mxu1 %v6416_v21 }
 0x136   : > { %v400_v46 = vpop.f32.mrb[24].mxu0  ;;  %v4953_v48 = vmul.f32 %v536_v41, %v4834_v63  ;;  %v521_v49 = vadd.f32 1.0, %v4369_v42 }
 0x137   : > { %4374 = vtanh.f32 %v492_v43  ;;  %v477_v50 = vadd.f32 %v461_v44, %v4932_v23  ;;  %v446_v51 = vmul.f32 %v430_v55, %v4945_v38  ;;  %v4958_v52 = vadd.f32 %v400_v46, %v4797_v25  ;;  %v402_v32 = vpop.f32.mrb[25].mxu0 }
 0x138   : > { %3467 = vmatmul.mubr.msk.f32.gmra.mrb[10].mxu1 %vm592_vm1, %v4953_v48  ;;  %v537_v54 = vmul.f32 0.5, %v521_v49 }
 0x139   : > { %v4371_v56 = vpop.eup %4370  ;;  %v493_v57 = vmul.f32 0.7978846, %v477_v50  ;;  %v462_v58 = vmul.f32 0.044715, %v446_v51  ;;  %v431_v63 = vmul.f32 %v4958_v52, %v4958_v52  ;;  %741 = vmatprep.mubr.f32.mxu1 %v6416_v21 }
 0x13a   : > { %v405_v59 = vpop.f32.mrb[26].mxu0  ;;  %v4966_v60 = vmul.f32 %v537_v54, %v4847_v12  ;;  %v522_v61 = vadd.f32 1.0, %v4371_v56 }
 0x13b   : > { %4376 = vtanh.f32 %v493_v57  ;;  %v478_v62 = vadd.f32 %v462_v58, %v4945_v38  ;;  %v447_v0 = vmul.f32 %v431_v63, %v4958_v52  ;;  %v4971_v2 = vadd.f32 %v405_v59, %v4797_v25  ;;  %v407_v4 = vpop.f32.mrb[27].mxu0 }
 0x13c   : > { %3468 = vmatmul.mubr.msk.f32.gmra.mrb[12].mxu1 %vm592_vm1, %v4966_v60  ;;  %v538_v5 = vmul.f32 0.5, %v522_v61 }
 0x13d   : > { %v4373_v6 = vpop.eup %4372  ;;  %v494_v7 = vmul.f32 0.7978846, %v478_v62  ;;  %v463_v8 = vmul.f32 0.044715, %v447_v0  ;;  %v432_v12 = vmul.f32 %v4971_v2, %v4971_v2  ;;  %747 = vmatprep.mubr.f32.mxu1 %v6416_v21 }
 0x13e   : > { %v410_v39 = vpop.f32.mrb[28].mxu0  ;;  %v4979_v10 = vmul.f32 %v538_v5, %v4869_v34  ;;  %v523_v11 = vadd.f32 1.0, %v4373_v6 }
 0x13f   : > { %4378 = vtanh.f32 %v494_v7  ;;  %v479_v13 = vadd.f32 %v463_v8, %v4958_v52  ;;  %v448_v14 = vmul.f32 %v432_v12, %v4971_v2  ;;  %v4984_v15 = vadd.f32 %v410_v39, %v4797_v25  ;;  %v412_v16 = vpop.f32.mrb[29].mxu0  ;;  %v1114_v12 = vld [vmem:[%s6409_s1 + $0x320] sm:$0xff]  ;;  %v1115_v39 = vld [vmem:[%s6409_s1 + $0x330] sm:$0xff] }
 0x140   : > { %3469 = vmatmul.mubr.msk.f32.gmra.mrb[14].mxu1 %vm592_vm1, %v4979_v10  ;;  %v539_v17 = vmul.f32 0.5, %v523_v11  ;;  %v4161_v11 = vpack.c.bf16 %v1115_v39, %v1114_v12  ;;  %v1116_v16 = vld [vmem:[%s6409_s1 + $0x340] sm:$0xff]  ;;  %v3461_v12 = vld [vmem:[%s6409_s1 + $0x930] ss:$8 sm:$0x3] }
 0x141   : > { %v4375_v19 = vpop.eup %4374  ;;  %v495_v20 = vmul.f32 0.7978846, %v479_v13  ;;  %v464_v22 = vmul.f32 0.044715, %v448_v14  ;;  %v433_v34 = vmul.f32 %v4984_v15, %v4984_v15  ;;  %753 = vmatprep.mubr.f32.mxu1 %v6416_v21  ;;  %v1098_v13 = vld [vmem:[%s6409_s1 + $0x220] sm:$0xff]  ;;  %v1099_v14 = vld [vmem:[%s6409_s1 + $0x230] sm:$0xff] }
 0x142   : > { %v415_v26 = vpop.f32.mrb[30].mxu0  ;;  %v4992_v28 = vmul.f32 %v539_v17, %v4894_v53  ;;  %v524_v29 = vadd.f32 1.0, %v4375_v19  ;;  %4162 = vmatprep.subr.bf16.mxu1 %v4161_v11  ;;  %v1117_v17 = vld [vmem:[%s6409_s1 + $0x350] sm:$0xff] }
 0x143   : > { %4380 = vtanh.f32 %v495_v20  ;;  %v480_v30 = vadd.f32 %v464_v22, %v4971_v2  ;;  %v449_v31 = vmul.f32 %v433_v34, %v4984_v15  ;;  %v416_v47 = vadd.f32 %v415_v26, %v4797_v25  ;;  %v417_v33 = vpop.f32.mrb[31].mxu0  ;;  %v1100_v20 = vld [vmem:[%s6409_s1 + $0x240] sm:$0xff]  ;;  %v1101_v22 = vld [vmem:[%s6409_s1 + $0x250] sm:$0xff] }
 0x144   : > { %3470 = vmatmul.mubr.msk.f32.gmra.mrb[16].mxu1 %vm592_vm1, %v4992_v28  ;;  %v540_v35 = vmul.f32 0.5, %v524_v29  ;;  %v4165_v19 = vpack.c.bf16 %v1117_v17, %v1116_v16  ;;  %v4167_v34 = vpack.c.bf16 %v1101_v22, %v1100_v20  ;;  %v1118_v26 = vld [vmem:[%s6409_s1 + $0x360] sm:$0xff]  ;;  %v1119_v29 = vld [vmem:[%s6409_s1 + $0x370] sm:$0xff] }
 0x145   : > { %v4377_v36 = vpop.eup %4376  ;;  %v496_v37 = vmul.f32 0.7978846, %v480_v30  ;;  %v465_v40 = vmul.f32 0.044715, %v449_v31  ;;  %v434_v41 = vmul.f32 %v416_v47, %v416_v47  ;;  %759 = vmatprep.mubr.f32.mxu1 %v6416_v21  ;;  %v4169_v30 = vpack.c.bf16 %v1119_v29, %v1118_v26  ;;  %v1102_v31 = vld [vmem:[%s6409_s1 + $0x260] sm:$0xff] }
 0x146   : > { %v5001_v53 = vmul.f32 %v540_v35, %v4919_v9  ;;  %v525_v42 = vadd.f32 1.0, %v4377_v36  ;;  %v1120_v35 = vld [vmem:[%s6409_s1 + $0x380] sm:$0xff]  ;;  %v1121_v36 = vld [vmem:[%s6409_s1 + $0x390] sm:$0xff] }
 0x147   : > { %4382 = vtanh.f32 %v496_v37  ;;  %v481_v43 = vadd.f32 %v465_v40, %v4984_v15  ;;  %v450_v44 = vmul.f32 %v434_v41, %v416_v47  ;;  %v4173_v37 = vpack.c.bf16 %v1121_v36, %v1120_v35  ;;  %v1104_v40 = vld [vmem:[%s6409_s1 + $0x280] sm:$0xff]  ;;  %v1105_v41 = vld [vmem:[%s6409_s1 + $0x290] sm:$0xff] }
 0x148   : > { %3471 = vmatmul.mubr.msk.f32.gmra.mrb[18].mxu1 %vm592_vm1, %v5001_v53  ;;  %v541_v25 = vmul.f32 0.5, %v525_v42  ;;  %v4175_v42 = vpack.c.bf16 %v1105_v41, %v1104_v40 }
 0x149   : > { %v4379_v55 = vpop.eup %4378  ;;  %v497_v46 = vmul.f32 0.7978846, %v481_v43  ;;  %v466_v49 = vmul.f32 0.044715, %v450_v44  ;;  %765 = vmatprep.mubr.f32.mxu1 %v6416_v21  ;;  %v582_v43 = vlaneseq  ;;  %v1301_v44 = vld [vmem:[%s6409_s1 + $0x3a8] sm:$0xff] }
 0x14a   : > { %v5008_v50 = vmul.f32 %v541_v25, %v4932_v23  ;;  %v526_v51 = vadd.f32 1.0, %v4379_v55  ;;  %v1303_v25 = vld [vmem:[%s6409_s1 + $0x3b8] sm:$0xff]  ;;  %v1300_v55 = vld [vmem:[%s6409_s1 + $0x3a0] sm:$0xff] }
 0x14b   : > { %4384 = vtanh.f32 %v497_v46  ;;  %v482_v9 = vadd.f32 %v466_v49, %v416_v47  ;;  %v4177_v46 = vpack.c.bf16 %v1303_v25, %v1301_v44  ;;  %v1302_v49 = vld [vmem:[%s6409_s1 + $0x3b0] sm:$0xff] }
 0x14c   : > { %3472 = vmatmul.mubr.msk.f32.gmra.mrb[20].mxu1 %vm592_vm1, %v5008_v50  ;;  %v542_v32 = vmul.f32 0.5, %v526_v51  ;;  %v1305_v51 = vld [vmem:[%s6409_s1 + $0x3c8] sm:$0xff] }
 0x14d   : > { %v4381_v54 = vpop.eup %4380  ;;  %v498_v56 = vmul.f32 0.7978846, %v482_v9  ;;  %771 = vmatprep.mubr.f32.mxu1 %v6416_v21  ;;  %v1307_v9 = vld [vmem:[%s6409_s1 + $0x3d8] sm:$0xff]  ;;  %4178 = vmatprep.subr.bf16.mxu0 %v4177_v46 }
 0x14e   : > { %v5014_v57 = vmul.f32 %v542_v32, %v4945_v38  ;;  %v527_v58 = vadd.f32 1.0, %v4381_v54  ;;  %v4179_v32 = vpack.c.bf16 %v1302_v49, %v1300_v55  ;;  %v4181_v54 = vpack.c.bf16 %v1307_v9, %v1305_v51 }
 0x14f   : > { %4386 = vtanh.f32 %v498_v56  ;;  %v1304_v56 = vld [vmem:[%s6409_s1 + $0x3c0] sm:$0xff] }
 0x150   : > { %6425 = vst [vmem:[#allocation2_spill] sm:$0xff] %v5014_v57  ;;  %3473 = vmatmul.mubr.msk.f32.gmra.mrb[22].mxu1 %vm592_vm1, %v5014_v57  ;;  %v543_v23 = vmul.f32 0.5, %v527_v58  ;;  %v1306_v58 = vld [vmem:[%s6409_s1 + $0x3d0] sm:$0xff]  ;;  %4180 = vmatpush1.bf16.msra.mxu0 %v4179_v32 }
 0x151   : > { %v4383_v63 = vpop.eup %4382  ;;  %777 = vmatprep.mubr.f32.mxu1 %v6416_v21  ;;  %4182 = vmatprep.subr.bf16.mxu0 %v4181_v54 }
 0x152   : > { %v5020_v59 = vmul.f32 %v543_v23, %v4958_v52  ;;  %v528_v61 = vadd.f32 1.0, %v4383_v63  ;;  %v1309_v23 = vld [vmem:[%s6409_s1 + $0x3e8] sm:$0xff]  ;;  %v5116_v63 = vshrl.u32 %v582_v43, 7 }
 0x154   : > { %6426 = vst [vmem:[#allocation3_spill] sm:$0xff] %v5020_v59  ;;  %3474 = vmatmul.mubr.msk.f32.gmra.mrb[24].mxu1 %vm592_vm1, %v5020_v59  ;;  %v544_v62 = vmul.f32 0.5, %v528_v61  ;;  %6430 = vst [vmem:[#allocation7_spill] sm:$0xff] %v5116_v63  ;;  %v1311_v61 = vld [vmem:[%s6409_s1 + $0x3f8] sm:$0xff]  ;;  %v6414_v39 = vsub.s32 1, %v5116_v63 }
 0x155   : > { %v4385_v0 = vpop.eup %4384  ;;  %783 = vmatprep.mubr.f32.mxu1 %v6416_v21 }
 0x156   : > { %v5026_v38 = vmul.f32 %v544_v62, %v4971_v2  ;;  %v529_v4 = vadd.f32 1.0, %v4385_v0  ;;  %v4183_v62 = vpack.c.bf16 %v1306_v58, %v1304_v56  ;;  %v4185_v0 = vpack.c.bf16 %v1311_v61, %v1309_v23 }
 0x157   : > { %v5150_v17 = vrot.slane %v3461_v12, %v6414_v39 }
 0x158   : > { %6427 = vst [vmem:[#allocation4_spill] sm:$0xff] %v5026_v38  ;;  %3475 = vmatmul.mubr.msk.f32.gmra.mrb[26].mxu1 %vm592_vm1, %v5026_v38  ;;  %v545_v5 = vmul.f32 0.5, %v529_v4  ;;  %v1308_v4 = vld [vmem:[%s6409_s1 + $0x3e0] sm:$0xff]  ;;  %4184 = vmatpush1.bf16.msra.mxu0 %v4183_v62 }
 0x159   : > { %v4387_v6 = vpop.eup %4386  ;;  %789 = vmatprep.mubr.f32.mxu1 %v6416_v21  ;;  %4186 = vmatprep.subr.bf16.mxu0 %v4185_v0 }
 0x15a   : > { %v5032_v52 = vmul.f32 %v545_v5, %v4984_v15  ;;  %v530_v7 = vadd.f32 1.0, %v4387_v6  ;;  %v4163_v15 = vpack.c.bf16 %v1099_v14, %v1098_v13  ;;  %v1310_v5 = vld [vmem:[%s6409_s1 + $0x3f0] sm:$0xff]  ;;  %v1313_v6 = vld [vmem:[%s6409_s1 + $0x408] sm:$0xff]  ;;  %v1312_v14 = vld [vmem:[%s6409_s1 + $0x400] sm:$0xff] }
 0x15b   : > { %v4187_v11 = vpack.c.bf16 %v1310_v5, %v1308_v4 }
 0x15c   : > { %6428 = vst [vmem:[#allocation5_spill] sm:$0xff] %v5032_v52  ;;  %3476 = vmatmul.mubr.msk.f32.gmra.mrb[28].mxu1 %vm592_vm1, %v5032_v52  ;;  %v546_v8 = vmul.f32 0.5, %v530_v7  ;;  %v1315_v7 = vld [vmem:[%s6409_s1 + $0x418] sm:$0xff] }
 0x15d   : > { %795 = vmatprep.mubr.f32.mxu1 %v6416_v21  ;;  %4164 = vmatpush3.bf16.msra.mxu1 %v4163_v15  ;;  %v4189_v13 = vpack.c.bf16 %v1315_v7, %v1313_v6  ;;  %v1314_v15 = vld [vmem:[%s6409_s1 + $0x410] sm:$0xff] }
 0x15e   : > { %v5037_v2 = vmul.f32 %v546_v8, %v416_v47  ;;  %4166 = vmatprep.subr.bf16.mxu1 %v4165_v19  ;;  %v1103_v47 = vld [vmem:[%s6409_s1 + $0x270] sm:$0xff]  ;;  %v6415_v8 = vsub.s32 0, %v5116_v63  ;;  %4188 = vmatpush1.bf16.msra.mxu0 %v4187_v11  ;;  %v4191_v19 = vpack.c.bf16 %v1314_v15, %v1312_v14 }
 0x15f   : > { %v4171_v33 = vpack.c.bf16 %v1103_v47, %v1102_v31  ;;  %4190 = vmatprep.subr.bf16.mxu0 %v4189_v13 }
 0x160   : > { %6429 = vst [vmem:[#allocation6_spill] sm:$0xff] %v5037_v2  ;;  %3477 = vmatmul.mubr.msk.f32.gmra.mrb[30].mxu1 %vm592_vm1, %v5037_v2  ;;  %v5146_v16 = vrot.slane %v3461_v12, %v6415_v8 }
 0x161   : > { %4168 = vmatpush3.bf16.msra.mxu1 %v4167_v34 }
 0x162   : > { %4170 = vmatprep.subr.bf16.mxu1 %v4169_v30  ;;  %4192 = vmatpush1.bf16.msra.mxu0 %v4191_v19 }
 0x165   : > { %4172 = vmatpush3.bf16.msra.mxu1 %v4171_v33 }
 0x166   : > { %4174 = vmatprep.subr.bf16.mxu1 %v4173_v37 }
 0x169   : > { %4176 = vmatpush3.bf16.msra.mxu1 %v4175_v42 }
 0x1f7   : > { %v707_v20 = vpop.f32.mrb[0].mxu1 }
 0x1f8   : > { %v5153_v22 = vadd.f32 %v707_v20, %v5146_v16  ;;  %v709_v34 = vpop.f32.mrb[1].mxu1 }
 0x1f9   : > { %v5156_v26 = vadd.f32 %v709_v34, %v5150_v17 }
 0x1fa   : > { %v802_v29 = vmul.f32 %v5153_v22, %v5153_v22 }
 0x1fb   : > { %v803_v30 = vmul.f32 %v5156_v26, %v5156_v26  ;;  %v713_v31 = vpop.f32.mrb[2].mxu1 }
 0x1fc   : > { %v834_v47 = vmul.f32 %v802_v29, %v5153_v22  ;;  %v5164_v33 = vadd.f32 %v713_v31, %v5146_v16  ;;  %v715_v35 = vpop.f32.mrb[3].mxu1 }
 0x1fd   : > { %v835_v36 = vmul.f32 %v803_v30, %v5156_v26  ;;  %v5168_v37 = vadd.f32 %v715_v35, %v5150_v17 }
 0x1fe   : > { %v866_v40 = vmul.f32 0.044715, %v834_v47  ;;  %v804_v41 = vmul.f32 %v5164_v33, %v5164_v33 }
 0x1ff   : > { %v867_v42 = vmul.f32 0.044715, %v835_v36  ;;  %v805_v43 = vmul.f32 %v5168_v37, %v5168_v37  ;;  %v719_v44 = vpop.f32.mrb[4].mxu1 }
 0x200   : > { %v898_v25 = vadd.f32 %v866_v40, %v5153_v22  ;;  %v836_v55 = vmul.f32 %v804_v41, %v5164_v33  ;;  %v5177_v46 = vadd.f32 %v719_v44, %v5146_v16  ;;  %v721_v49 = vpop.f32.mrb[5].mxu1 }
 0x201   : > { %v899_v51 = vadd.f32 %v867_v42, %v5156_v26  ;;  %v837_v9 = vmul.f32 %v805_v43, %v5168_v37  ;;  %v5182_v32 = vadd.f32 %v721_v49, %v5150_v17 }
 0x202   : > { %v930_v54 = vmul.f32 0.7978846, %v898_v25  ;;  %v868_v56 = vmul.f32 0.044715, %v836_v55  ;;  %v806_v58 = vmul.f32 %v5177_v46, %v5177_v46 }
 0x203   : > { %v931_v23 = vmul.f32 0.7978846, %v899_v51  ;;  %v869_v61 = vmul.f32 0.044715, %v837_v9  ;;  %v807_v62 = vmul.f32 %v5182_v32, %v5182_v32  ;;  %v725_v0 = vpop.f32.mrb[6].mxu1 }
 0x204   : > { %4388 = vtanh.f32 %v930_v54  ;;  %v900_v4 = vadd.f32 %v868_v56, %v5164_v33  ;;  %v838_v5 = vmul.f32 %v806_v58, %v5177_v46  ;;  %v5191_v6 = vadd.f32 %v725_v0, %v5146_v16  ;;  %v727_v7 = vpop.f32.mrb[7].mxu1 }
 0x205   : > { %v901_v12 = vadd.f32 %v869_v61, %v5168_v37  ;;  %v839_v11 = vmul.f32 %v807_v62, %v5182_v32  ;;  %v5196_v13 = vadd.f32 %v727_v7, %v5150_v17  ;;  %4390 = vtanh.f32 %v931_v23 }
 0x206   : > { %v932_v14 = vmul.f32 0.7978846, %v900_v4  ;;  %v870_v15 = vmul.f32 0.044715, %v838_v5  ;;  %v808_v19 = vmul.f32 %v5191_v6, %v5191_v6 }
 0x207   : > { %v933_v20 = vmul.f32 0.7978846, %v901_v12  ;;  %v871_v34 = vmul.f32 0.044715, %v839_v11  ;;  %v809_v29 = vmul.f32 %v5196_v13, %v5196_v13  ;;  %v731_v30 = vpop.f32.mrb[8].mxu1 }
 0x208   : > { %v902_v31 = vadd.f32 %v870_v15, %v5177_v46  ;;  %v840_v47 = vmul.f32 %v808_v19, %v5191_v6  ;;  %v5205_v35 = vadd.f32 %v731_v30, %v5146_v16  ;;  %v733_v36 = vpop.f32.mrb[9].mxu1  ;;  %4392 = vtanh.f32 %v932_v14 }
 0x209   : > { %v903_v40 = vadd.f32 %v871_v34, %v5182_v32  ;;  %v841_v41 = vmul.f32 %v809_v29, %v5196_v13  ;;  %v5210_v42 = vadd.f32 %v733_v36, %v5150_v17  ;;  %4394 = vtanh.f32 %v933_v20 }
 0x20a   : > { %v810_v43 = vmul.f32 %v5205_v35, %v5205_v35  ;;  %v934_v44 = vmul.f32 0.7978846, %v902_v31  ;;  %v872_v51 = vmul.f32 0.044715, %v840_v47 }
 0x20b   : > { %v935_v25 = vmul.f32 0.7978846, %v903_v40  ;;  %v811_v55 = vmul.f32 %v5210_v42, %v5210_v42  ;;  %v737_v49 = vpop.f32.mrb[10].mxu1  ;;  %v873_v56 = vmul.f32 0.044715, %v841_v41 }
 0x20c   : > { %v5217_v9 = vadd.f32 %v737_v49, %v5146_v16  ;;  %v739_v54 = vpop.f32.mrb[11].mxu1  ;;  %v842_v61 = vmul.f32 %v810_v43, %v5205_v35  ;;  %v904_v11 = vadd.f32 %v872_v51, %v5191_v6 }
 0x20d   : > { %v5220_v58 = vadd.f32 %v739_v54, %v5150_v17  ;;  %v843_v62 = vmul.f32 %v811_v55, %v5210_v42  ;;  %4396 = vtanh.f32 %v935_v25  ;;  %v905_v29 = vadd.f32 %v873_v56, %v5196_v13 }
 0x20e   : > { %v4389_v23 = vpop.eup %4388  ;;  %v812_v0 = vmul.f32 %v5217_v9, %v5217_v9  ;;  %4398 = vtanh.f32 %v934_v44  ;;  %v874_v47 = vmul.f32 0.044715, %v842_v61  ;;  %v5242_v49 = vmul.f32 0.7978846, %v904_v11 }
 0x20f   : > { %v4391_v4 = vpop.eup %4390  ;;  %v994_v5 = vadd.f32 1.0, %v4389_v23  ;;  %v813_v7 = vmul.f32 %v5220_v58, %v5220_v58  ;;  %v743_v12 = vpop.f32.mrb[12].mxu1  ;;  %v875_v36 = vmul.f32 0.044715, %v843_v62 }
 0x210   : > { %v844_v14 = vmul.f32 %v812_v0, %v5217_v9  ;;  %v5231_v15 = vadd.f32 %v743_v12, %v5146_v16  ;;  %v745_v19 = vpop.f32.mrb[13].mxu1  ;;  %v995_v20 = vadd.f32 1.0, %v4391_v4 }
 0x211   : > { %v1026_v34 = vmul.f32 0.5, %v994_v5  ;;  %v5235_v30 = vadd.f32 %v745_v19, %v5150_v17  ;;  %v845_v44 = vmul.f32 %v813_v7, %v5220_v58  ;;  %v937_v5 = vmul.f32 0.7978846, %v905_v29 }
 0x212   : > { %v4393_v31 = vpop.eup %4392  ;;  %v814_v40 = vmul.f32 %v5231_v15, %v5231_v15  ;;  %v1027_v41 = vmul.f32 0.5, %v995_v20  ;;  %v876_v51 = vmul.f32 0.044715, %v844_v14  ;;  %v906_v7 = vadd.f32 %v874_v47, %v5205_v35 }
 0x213   : > { %v4395_v43 = vpop.eup %4394  ;;  %v815_v25 = vmul.f32 %v5235_v30, %v5235_v30  ;;  %v749_v55 = vpop.f32.mrb[14].mxu1  ;;  %v1058_v61 = vmul.f32 %v1026_v34, %v5153_v22  ;;  %v907_v12 = vadd.f32 %v875_v36, %v5210_v42  ;;  %v996_v11 = vadd.f32 1.0, %v4393_v31 }
 0x214   : > { %v846_v54 = vmul.f32 %v814_v40, %v5231_v15  ;;  %v751_v56 = vpop.f32.mrb[15].mxu1  ;;  %v1059_v23 = vmul.f32 %v1027_v41, %v5156_v26  ;;  %v5248_v62 = vadd.f32 %v749_v55, %v5146_v16  ;;  %v997_v4 = vadd.f32 1.0, %v4395_v43 }
 0x215   : > { %v5251_v0 = vadd.f32 %v751_v56, %v5150_v17  ;;  %v877_v14 = vmul.f32 0.044715, %v845_v44  ;;  %v847_v19 = vmul.f32 %v815_v25, %v5235_v30  ;;  %v908_v40 = vadd.f32 %v876_v51, %v5217_v9 }
 0x216   : > { %1186 = vmatprep.mubr.f32.mxu1 %v1059_v23  ;;  %v1029_v20 = vmul.f32 0.5, %v997_v4  ;;  %v878_v41 = vmul.f32 0.044715, %v846_v54  ;;  %v1028_v36 = vmul.f32 0.5, %v996_v11  ;;  %v816_v31 = vmul.f32 %v5248_v62, %v5248_v62 }
 0x217   : > { %v817_v22 = vmul.f32 %v5251_v0, %v5251_v0  ;;  %v755_v26 = vpop.f32.mrb[16].mxu1  ;;  %1187 = vmatmul.mubr.f32.vlgmr.msra.gmra.mrb[32].mxu1 %v1058_v61  ;;  %v4397_v34 = vpop.eup %4396  ;;  %v938_v56 = vmul.f32 0.7978846, %v906_v7  ;;  %v939_v23 = vmul.f32 0.7978846, %v907_v12  ;;  %v909_v61 = vadd.f32 %v877_v14, %v5220_v58 }
 0x218   : > { %v5260_v29 = vadd.f32 %v755_v26, %v5146_v16  ;;  %v757_v47 = vpop.f32.mrb[17].mxu1  ;;  %v4399_v43 = vpop.eup %4398  ;;  %v1061_v55 = vmul.f32 %v1029_v20, %v5168_v37  ;;  %v1060_v54 = vmul.f32 %v1028_v36, %v5164_v33  ;;  %v879_v4 = vmul.f32 0.044715, %v847_v19 }
 0x219   : > { %v849_v44 = vmul.f32 %v817_v22, %v5251_v0  ;;  %v5266_v25 = vadd.f32 %v757_v47, %v5150_v17  ;;  %v999_v26 = vadd.f32 1.0, %v4397_v34  ;;  %v940_v47 = vmul.f32 0.7978846, %v908_v40 }
 0x21a   : > { %v818_v51 = vmul.f32 %v5260_v29, %v5260_v29  ;;  %1191 = vmatprep.mubr.f32.mxu1 %v1061_v55  ;;  %v910_v3 = vadd.f32 %v878_v41, %v5231_v15  ;;  %v998_v12 = vadd.f32 1.0, %v4399_v43  ;;  %v848_v33 = vmul.f32 %v816_v31, %v5248_v62 }
 0x21b   : > { %v819_v11 = vmul.f32 %v5266_v25, %v5266_v25  ;;  %v761_v22 = vpop.f32.mrb[18].mxu1  ;;  %1192 = vmatmul.mubr.f32.gmra.mrb[34].mxu1 %v1060_v54  ;;  %v881_v20 = vmul.f32 0.044715, %v849_v44  ;;  %v1031_v19 = vmul.f32 0.5, %v999_v26  ;;  %v941_v55 = vmul.f32 0.7978846, %v909_v61 }
 0x21c   : > { %v5277_v37 = vadd.f32 %v761_v22, %v5146_v16  ;;  %v763_v7 = vpop.f32.mrb[19].mxu1  ;;  %v850_v36 = vmul.f32 %v818_v51, %v5260_v29  ;;  %v1030_v41 = vmul.f32 0.5, %v998_v12  ;;  %v911_v54 = vadd.f32 %v879_v4, %v5235_v30 }
 0x21d   : > { %v5281_v14 = vadd.f32 %v763_v7, %v5150_v17  ;;  %v851_v34 = vmul.f32 %v819_v11, %v5266_v25  ;;  %v1063_v31 = vmul.f32 %v1031_v19, %v5182_v32  ;;  %v942_v22 = vmul.f32 0.7978846, %v910_v3 }
 0x21e   : > { %v820_v40 = vmul.f32 %v5277_v37, %v5277_v37  ;;  %v1062_v11 = vmul.f32 %v1030_v41, %v5177_v46  ;;  %v880_v39 = vmul.f32 0.044715, %v848_v33  ;;  %v913_v61 = vadd.f32 %v881_v20, %v5251_v0 }
 0x21f   : > { %v821_v43 = vmul.f32 %v5281_v14, %v5281_v14  ;;  %v767_v44 = vpop.f32.mrb[20].mxu1  ;;  %1196 = vmatprep.mubr.f32.mxu1 %v1063_v31  ;;  %4400 = vtanh.f32 %v937_v5  ;;  %v882_v12 = vmul.f32 0.044715, %v850_v36  ;;  %v883_v32 = vmul.f32 0.044715, %v851_v34 }
 0x220   : > { %v852_v26 = vmul.f32 %v820_v40, %v5277_v37  ;;  %v5293_v51 = vadd.f32 %v767_v44, %v5146_v16  ;;  %v769_v7 = vpop.f32.mrb[21].mxu1  ;;  %1197 = vmatmul.mubr.f32.gmra.mrb[36].mxu1 %v1062_v11  ;;  %4402 = vtanh.f32 %v5242_v49  ;;  %v943_v19 = vmul.f32 0.7978846, %v911_v54 }
 0x221   : > { %v5298_v4 = vadd.f32 %v769_v7, %v5150_v17  ;;  %v853_v46 = vmul.f32 %v821_v43, %v5281_v14  ;;  %4404 = vtanh.f32 %v939_v23  ;;  %v912_v34 = vadd.f32 %v880_v39, %v5248_v62 }
 0x222   : > { %v822_v3 = vmul.f32 %v5293_v51, %v5293_v51  ;;  %v884_v40 = vmul.f32 0.044715, %v852_v26  ;;  %4406 = vtanh.f32 %v938_v56  ;;  %v945_v31 = vmul.f32 0.7978846, %v913_v61 }
 0x223   : > { %v773_v33 = vpop.f32.mrb[22].mxu1  ;;  %v823_v41 = vmul.f32 %v5298_v4, %v5298_v4  ;;  %4408 = vtanh.f32 %v941_v55  ;;  %v914_v54 = vadd.f32 %v882_v12, %v5260_v29  ;;  %v915_v23 = vadd.f32 %v883_v32, %v5266_v25 }
 0x224   : > { %v854_v20 = vmul.f32 %v822_v3, %v5293_v51  ;;  %v5308_v5 = vadd.f32 %v773_v33, %v5146_v16  ;;  %v775_v36 = vpop.f32.mrb[23].mxu1  ;;  %4410 = vtanh.f32 %v940_v47  ;;  %v916_v44 = vadd.f32 %v884_v40, %v5277_v37 }
 0x225   : > { %v5312_v49 = vadd.f32 %v775_v36, %v5150_v17  ;;  %v885_v26 = vmul.f32 0.044715, %v853_v46  ;;  %4412 = vtanh.f32 %v943_v19  ;;  %v855_v7 = vmul.f32 %v823_v41, %v5298_v4 }
 0x226   : > { %v824_v43 = vmul.f32 %v5308_v5, %v5308_v5  ;;  %v886_v11 = vmul.f32 0.044715, %v854_v20  ;;  %4414 = vtanh.f32 %v942_v22  ;;  %v944_v12 = vmul.f32 0.7978846, %v912_v34 }
 0x227   : > { %v825_v56 = vmul.f32 %v5312_v49, %v5312_v49  ;;  %v779_v39 = vpop.f32.mrb[24].mxu1  ;;  %4416 = vtanh.f32 %v945_v31  ;;  %v947_v47 = vmul.f32 0.7978846, %v915_v23  ;;  %v5329_v46 = vmul.f32 0.7978846, %v914_v54 }
 0x228   : > { %v5323_v55 = vadd.f32 %v779_v39, %v5146_v16  ;;  %v781_v61 = vpop.f32.mrb[25].mxu1  ;;  %v856_v32 = vmul.f32 %v824_v43, %v5308_v5  ;;  %v5331_v19 = vmul.f32 0.7978846, %v916_v44  ;;  %v917_v33 = vadd.f32 %v885_v26, %v5281_v14 }
 0x229   : > { %v5327_v3 = vadd.f32 %v781_v61, %v5150_v17  ;;  %v4401_v40 = vpop.eup %4400  ;;  %v857_v20 = vmul.f32 %v825_v56, %v5312_v49  ;;  %v918_v22 = vadd.f32 %v886_v11, %v5293_v51  ;;  %v887_v34 = vmul.f32 0.044715, %v855_v7 }
 0x22a   : > { %v4403_v36 = vpop.eup %4402  ;;  %v1001_v43 = vadd.f32 1.0, %v4401_v40  ;;  %v888_v61 = vmul.f32 0.044715, %v856_v32  ;;  %v826_v44 = vmul.f32 %v5323_v55, %v5323_v55  ;;  %4418 = vtanh.f32 %v944_v12 }
 0x22b   : > { %v785_v41 = vpop.f32.mrb[26].mxu1  ;;  %v4405_v39 = vpop.eup %4404  ;;  %v1000_v54 = vadd.f32 1.0, %v4403_v36  ;;  %v827_v21 = vmul.f32 %v5327_v3, %v5327_v3  ;;  %4420 = vtanh.f32 %v947_v47  ;;  %v889_v40 = vmul.f32 0.044715, %v857_v20 }
 0x22c   : > { %v5337_v31 = vadd.f32 %v785_v41, %v5146_v16  ;;  %v787_v23 = vpop.f32.mrb[27].mxu1  ;;  %v4407_v26 = vpop.eup %4406  ;;  %v1033_v8 = vmul.f32 0.5, %v1001_v43  ;;  %v1003_v56 = vadd.f32 1.0, %v4405_v39  ;;  %v5346_v36 = vmul.f32 0.7978846, %v917_v33 }
 0x22d   : > { %v4409_v11 = vpop.eup %4408  ;;  %v1032_v7 = vmul.f32 0.5, %v1000_v54  ;;  %v1002_v41 = vadd.f32 1.0, %v4407_v26  ;;  %v5344_v63 = vadd.f32 %v787_v23, %v5150_v17  ;;  %v5349_v38 = vmul.f32 0.7978846, %v918_v22 }
 0x22e   : > { %v4411_v32 = vpop.eup %4410  ;;  %v1065_v2 = vmul.f32 %v1033_v8, %v5196_v13  ;;  %v1035_v12 = vmul.f32 0.5, %v1003_v56  ;;  %v1005_v52 = vadd.f32 1.0, %v4409_v11  ;;  %v919_v47 = vadd.f32 %v887_v34, %v5298_v4 }
 0x22f   : > { %v791_v43 = vpop.f32.mrb[28].mxu1  ;;  %v4413_v39 = vpop.eup %4412  ;;  %v1064_v54 = vmul.f32 %v1032_v7, %v5191_v6  ;;  %v1034_v20 = vmul.f32 0.5, %v1002_v41  ;;  %v859_v33 = vmul.f32 %v827_v21, %v5327_v3  ;;  %v1004_v8 = vadd.f32 1.0, %v4411_v32 }
 0x230   : > { %v793_v26 = vpop.f32.mrb[29].mxu1  ;;  %v4415_v59 = vpop.eup %4414  ;;  %1201 = vmatprep.mubr.f32.mxu1 %v1065_v2  ;;  %v1067_v23 = vmul.f32 %v1035_v12, %v5210_v42  ;;  %v1037_v57 = vmul.f32 0.5, %v1005_v52  ;;  %v920_v56 = vadd.f32 %v888_v61, %v5308_v5  ;;  %v921_v22 = vadd.f32 %v889_v40, %v5312_v49 }
 0x231   : > { %v4417_v13 = vpop.eup %4416  ;;  %1202 = vmatmul.mubr.f32.gmra.mrb[38].mxu1 %v1064_v54  ;;  %v858_v34 = vmul.f32 %v826_v44, %v5323_v55  ;;  %v829_v6 = vmul.f32 %v5344_v63, %v5344_v63  ;;  %v1066_v2 = vmul.f32 %v1034_v20, %v5205_v35  ;;  %v1007_v21 = vadd.f32 1.0, %v4413_v39 }
 0x232   : > { %1206 = vmatprep.mubr.f32.mxu1 %v1067_v23  ;;  %v1069_v42 = vmul.f32 %v1037_v57, %v5220_v58  ;;  %v5363_v52 = vadd.f32 %v791_v43, %v5146_v16  ;;  %v1036_v61 = vmul.f32 0.5, %v1004_v8  ;;  %v1006_v40 = vadd.f32 1.0, %v4415_v59 }
 0x233   : > { %v797_v11 = vpop.f32.mrb[30].mxu1  ;;  %v861_v41 = vmul.f32 %v829_v6, %v5344_v63  ;;  %v5367_v44 = vadd.f32 %v793_v26, %v5150_v17  ;;  %v891_v32 = vmul.f32 0.044715, %v859_v33  ;;  %v828_v12 = vmul.f32 %v5337_v31, %v5337_v31 }
 0x234   : > { %v799_v7 = vpop.f32.mrb[31].mxu1  ;;  %v1039_v54 = vmul.f32 0.5, %v1007_v21  ;;  %v1009_v35 = vadd.f32 1.0, %v4417_v13  ;;  %v4419_v20 = vpop.eup %4418  ;;  %v951_v57 = vmul.f32 0.7978846, %v919_v47  ;;  %v1038_v43 = vmul.f32 0.5, %v1006_v40 }
 0x235   : > { %1207 = vmatmul.mubr.f32.gmra.mrb[40].mxu1 %v1066_v2  ;;  %v893_v58 = vmul.f32 0.044715, %v861_v41  ;;  %v831_v39 = vmul.f32 %v5367_v44, %v5367_v44  ;;  %v4421_v23 = vpop.eup %4420  ;;  %v952_v8 = vmul.f32 0.7978846, %v920_v56  ;;  %v5375_v33 = vadd.f32 %v797_v11, %v5146_v16 }
 0x236   : > { %1211 = vmatprep.mubr.f32.mxu1 %v1069_v42  ;;  %v1071_v59 = vmul.f32 %v1039_v54, %v5235_v30  ;;  %v1041_v26 = vmul.f32 0.5, %v1009_v35  ;;  %v953_v6 = vmul.f32 0.7978846, %v921_v22  ;;  %v890_v21 = vmul.f32 0.044715, %v858_v34 }
 0x237   : > { %v1068_v13 = vmul.f32 %v1036_v61, %v5217_v9  ;;  %v863_v47 = vmul.f32 %v831_v39, %v5367_v44  ;;  %v923_v2 = vadd.f32 %v891_v32, %v5327_v3  ;;  %v860_v41 = vmul.f32 %v828_v12, %v5337_v31 }
 0x238   : > { %v830_v56 = vmul.f32 %v5363_v52, %v5363_v52  ;;  %v1008_v42 = vadd.f32 1.0, %v4419_v20  ;;  %v925_v30 = vadd.f32 %v893_v58, %v5344_v63  ;;  %v1070_v16 = vmul.f32 %v1038_v43, %v5231_v15 }
 0x239   : > { %1212 = vmatmul.mubr.f32.gmra.mrb[42].mxu1 %v1068_v13  ;;  %v5386_v22 = vadd.f32 %v799_v7, %v5150_v17  ;;  %v1011_v34 = vadd.f32 1.0, %v4421_v23  ;;  %v895_v9 = vmul.f32 0.044715, %v863_v47  ;;  %v1073_v11 = vmul.f32 %v1041_v26, %v5251_v0 }
 0x23a   : > { %1216 = vmatprep.mubr.f32.mxu1 %v1071_v59  ;;  %v832_v61 = vmul.f32 %v5375_v33, %v5375_v33  ;;  %4422 = vtanh.f32 %v5329_v46  ;;  %v1040_v40 = vmul.f32 0.5, %v1008_v42  ;;  %v922_v17 = vadd.f32 %v890_v21, %v5323_v55 }
 0x23b   : > { %v833_v32 = vmul.f32 %v5386_v22, %v5386_v22  ;;  %v1043_v12 = vmul.f32 0.5, %v1011_v34  ;;  %4424 = vtanh.f32 %v5346_v36  ;;  %v892_v15 = vmul.f32 0.044715, %v860_v41 }
 0x23c   : > { %v862_v7 = vmul.f32 %v830_v56, %v5363_v52  ;;  %4426 = vtanh.f32 %v5331_v19  ;;  %v955_v0 = vmul.f32 0.7978846, %v923_v2  ;;  %v957_v46 = vmul.f32 0.7978846, %v925_v30 }
 0x23d   : > { %1217 = vmatmul.mubr.f32.gmra.mrb[44].mxu1 %v1070_v16  ;;  %v865_v54 = vmul.f32 %v833_v32, %v5386_v22  ;;  %4428 = vtanh.f32 %v951_v57  ;;  %v864_v35 = vmul.f32 %v832_v61, %v5375_v33  ;;  %v1075_v20 = vmul.f32 %v1043_v12, %v5266_v25 }
 0x23e   : > { %1221 = vmatprep.mubr.f32.mxu1 %v1073_v11  ;;  %4430 = vtanh.f32 %v5349_v38  ;;  %v927_v36 = vadd.f32 %v895_v9, %v5367_v44  ;;  %v1072_v58 = vmul.f32 %v1040_v40, %v5248_v62  ;;  %v954_v19 = vmul.f32 0.7978846, %v922_v17 }
 0x23f   : > { %v897_v43 = vmul.f32 0.044715, %v865_v54  ;;  %4432 = vtanh.f32 %v953_v6  ;;  %v924_v39 = vadd.f32 %v892_v15, %v5337_v31  ;;  %v894_v23 = vmul.f32 0.044715, %v862_v7 }
 0x240   : > { %4434 = vtanh.f32 %v952_v8  ;;  %v896_v57 = vmul.f32 0.044715, %v864_v35  ;;  %v959_v59 = vmul.f32 0.7978846, %v927_v36 }
 0x241   : > { %1222 = vmatmul.mubr.f32.gmra.mrb[46].mxu1 %v1072_v58  ;;  %4436 = vtanh.f32 %v955_v0  ;;  %v929_v25 = vadd.f32 %v897_v43, %v5386_v22  ;;  %v956_v26 = vmul.f32 0.7978846, %v924_v39  ;;  %v926_v21 = vadd.f32 %v894_v23, %v5363_v52 }
 0x242   : > { %1226 = vmatprep.mubr.f32.mxu1 %v1075_v20  ;;  %4438 = vtanh.f32 %v957_v46  ;;  %v928_v47 = vadd.f32 %v896_v57, %v5375_v33 }
 0x243   : > { %4440 = vtanh.f32 %v954_v19  ;;  %v961_v41 = vmul.f32 0.7978846, %v929_v25  ;;  %v958_v16 = vmul.f32 0.7978846, %v926_v21 }
 0x244   : > { %v4423_v38 = vpop.eup %4422  ;;  %4442 = vtanh.f32 %v959_v59  ;;  %v960_v54 = vmul.f32 0.7978846, %v928_v47 }
 0x245   : > { %v4425_v62 = vpop.eup %4424  ;;  %v1010_v6 = vadd.f32 1.0, %v4423_v38  ;;  %4444 = vtanh.f32 %v956_v26 }
 0x246   : > { %v4427_v13 = vpop.eup %4426  ;;  %v1013_v2 = vadd.f32 1.0, %v4425_v62  ;;  %4446 = vtanh.f32 %v961_v41 }
 0x247   : > { %v4429_v8 = vpop.eup %4428  ;;  %v1042_v56 = vmul.f32 0.5, %v1010_v6  ;;  %v1012_v42 = vadd.f32 1.0, %v4427_v13  ;;  %4448 = vtanh.f32 %v958_v16 }
 0x248   : > { %v4431_v30 = vpop.eup %4430  ;;  %v1045_v34 = vmul.f32 0.5, %v1013_v2  ;;  %v1015_v9 = vadd.f32 1.0, %v4429_v8  ;;  %4450 = vtanh.f32 %v960_v54  ;;  %v1847_v54 = vld [vmem:[%s6409_s1 + $0x570] sm:$0xff] }
 0x249   : > { %v4433_v11 = vpop.eup %4432  ;;  %v1074_v61 = vmul.f32 %v1042_v56, %v5260_v29  ;;  %v1044_v40 = vmul.f32 0.5, %v1012_v42  ;;  %v1014_v32 = vadd.f32 1.0, %v4431_v30 }
 0x24a   : > { %v4435_v12 = vpop.eup %4434  ;;  %v1077_v17 = vmul.f32 %v1045_v34, %v5281_v14  ;;  %v1047_v15 = vmul.f32 0.5, %v1015_v9  ;;  %v1017_v7 = vadd.f32 1.0, %v4433_v11 }
 0x24b   : > { %v4437_v0 = vpop.eup %4436  ;;  %1227 = vmatmul.mubr.f32.gmra.mrb[48].mxu1 %v1074_v61  ;;  %v1076_v29 = vmul.f32 %v1044_v40, %v5277_v37  ;;  %v1046_v58 = vmul.f32 0.5, %v1014_v32  ;;  %v1016_v43 = vadd.f32 1.0, %v4435_v12  ;;  %v1845_v32 = vld [vmem:[%s6409_s1 + $0x550] sm:$0xff] }
 0x24c   : > { %1231 = vmatprep.mubr.f32.mxu1 %v1077_v17  ;;  %v1079_v46 = vmul.f32 %v1047_v15, %v5298_v4  ;;  %v1049_v35 = vmul.f32 0.5, %v1017_v7  ;;  %v1019_v20 = vadd.f32 1.0, %v4437_v0  ;;  %v4439_v36 = vpop.eup %4438  ;;  %v1828_v15 = vld [vmem:[%s6409_s1 + $0x440] sm:$0xff]  ;;  %v1829_v7 = vld [vmem:[%s6409_s1 + $0x450] sm:$0xff] }
 0x24d   : > { %v4441_v19 = vpop.eup %4440  ;;  %v1021_v23 = vadd.f32 1.0, %v4439_v36  ;;  %v1078_v59 = vmul.f32 %v1046_v58, %v5293_v51  ;;  %v1048_v4 = vmul.f32 0.5, %v1016_v43  ;;  %v1846_v0 = vld [vmem:[%s6409_s1 + $0x560] sm:$0xff]  ;;  %v1831_v36 = vld [vmem:[%s6409_s1 + $0x470] sm:$0xff] }
 0x24e   : > { %v1081_v14 = vmul.f32 %v1049_v35, %v5312_v49  ;;  %v1051_v39 = vmul.f32 0.5, %v1019_v20  ;;  %v4443_v57 = vpop.eup %4442  ;;  %v1018_v25 = vadd.f32 1.0, %v4441_v19  ;;  %v4201_v35 = vpack.c.bf16 %v1847_v54, %v1846_v0  ;;  %v1830_v20 = vld [vmem:[%s6409_s1 + $0x460] sm:$0xff]  ;;  %v1849_v58 = vld [vmem:[%s6409_s1 + $0x590] sm:$0xff] }
 0x24f   : > { %1232 = vmatmul.mubr.f32.gmra.mrb[50].mxu1 %v1076_v29  ;;  %v4445_v38 = vpop.eup %4444  ;;  %v1053_v26 = vmul.f32 0.5, %v1021_v23  ;;  %v1023_v21 = vadd.f32 1.0, %v4443_v57  ;;  %v1080_v6 = vmul.f32 %v1048_v4, %v5308_v5  ;;  %v1848_v29 = vld [vmem:[%s6409_s1 + $0x580] sm:$0xff]  ;;  %v4203_v43 = vpack.c.bf16 %v1831_v36, %v1830_v20 }
 0x250   : > { %1236 = vmatprep.mubr.f32.mxu1 %v1079_v46  ;;  %v1083_v37 = vmul.f32 %v1051_v39, %v5327_v3  ;;  %v4447_v62 = vpop.eup %4446  ;;  %v1050_v13 = vmul.f32 0.5, %v1018_v25  ;;  %v1020_v49 = vadd.f32 1.0, %v4445_v38  ;;  %v4199_v46 = vpack.c.bf16 %v1829_v7, %v1828_v15  ;;  %v1833_v39 = vld [vmem:[%s6409_s1 + $0x490] sm:$0xff]  ;;  %v5474_v25 = vld [vmem:[%s6409_s1 + $0x940] ss:$0 sm:$0xff] }
 0x251   : > { %v4449_v47 = vpop.eup %4448  ;;  %v1085_v2 = vmul.f32 %v1053_v26, %v5344_v63  ;;  %v1055_v51 = vmul.f32 0.5, %v1023_v21  ;;  %v1025_v8 = vadd.f32 1.0, %v4447_v62  ;;  %v4205_v19 = vpack.c.bf16 %v1849_v58, %v1848_v29 }
 0x252   : > { %v1082_v41 = vmul.f32 %v1050_v13, %v5323_v55  ;;  %v1052_v56 = vmul.f32 0.5, %v1020_v49  ;;  %v1022_v42 = vadd.f32 1.0, %v4449_v47  ;;  %v4451_v30 = vpop.eup %4450  ;;  %v6431_v13 = vmov 0.0  }
 0x253   : > { %1237 = vmatmul.mubr.f32.gmra.mrb[52].mxu1 %v1078_v59  ;;  %v1087_v3 = vmul.f32 %v1055_v51, %v5367_v44  ;;  %v1057_v16 = vmul.f32 0.5, %v1025_v8  ;;  %v1024_v9 = vadd.f32 1.0, %v4451_v30  ;;  %v1842_v44 = vld [vmem:[%s6409_s1 + $0x520] sm:$0xff] }
 0x254   : > { %1241 = vmatprep.mubr.f32.mxu1 %v1081_v14  ;;  %v1084_v5 = vmul.f32 %v1052_v56, %v5337_v31  ;;  %v1054_v34 = vmul.f32 0.5, %v1022_v42  ;;  %v1843_v31 = vld [vmem:[%s6409_s1 + $0x530] sm:$0xff]  ;;  %v1832_v14 = vld [vmem:[%s6409_s1 + $0x480] sm:$0xff] }
 0x255   : > { %v1089_v63 = vmul.f32 %v1057_v16, %v5386_v22  ;;  %v1056_v61 = vmul.f32 0.5, %v1024_v9  ;;  %v1826_v22 = vld [vmem:[%s6409_s1 + $0x420] sm:$0xff]  ;;  %v4193_v40 = vpack.c.bf16 %v1843_v31, %v1842_v44  ;;  %v4207_v23 = vpack.c.bf16 %v1833_v39, %v1832_v14 }
 0x256   : > { %v1086_v11 = vmul.f32 %v1054_v34, %v5363_v52  ;;  %v1827_v52 = vld [vmem:[%s6409_s1 + $0x430] sm:$0xff]  ;;  %v6432_v14 = vld [vmem:[#allocation2_spill] sm:$0xff] }
 0x257   : > { %1242 = vmatmul.mubr.f32.gmra.mrb[54].mxu1 %v1080_v6  ;;  %v1088_v55 = vmul.f32 %v1056_v61, %v5375_v33  ;;  %v1844_v33 = vld [vmem:[%s6409_s1 + $0x540] sm:$0xff]  ;;  %v4195_v12 = vpack.c.bf16 %v1827_v52, %v1826_v22  ;;  %4194 = vmatprep.subr.bf16.mxu1 %v4193_v40 }
 0x258   : > { %1246 = vmatprep.mubr.f32.mxu1 %v1083_v37  ;;  %v4197_v17 = vpack.c.bf16 %v1845_v32, %v1844_v33 }
 0x259   : > { %4196 = vmatpush3.bf16.msra.mxu1 %v4195_v12 }
 0x25a   : > { %4198 = vmatprep.subr.bf16.mxu1 %v4197_v17 }
 0x25b   : > { %1247 = vmatmul.mubr.f32.gmra.mrb[56].mxu1 %v1082_v41 }
 0x25c   : > { %1251 = vmatprep.mubr.f32.mxu1 %v1085_v2 }
 0x25d   : > { %4200 = vmatpush3.bf16.msra.mxu1 %v4199_v46 }
 0x25e   : > { %4202 = vmatprep.subr.bf16.mxu1 %v4201_v35 }
 0x25f   : > { %1252 = vmatmul.mubr.f32.gmra.mrb[58].mxu1 %v1084_v5 }
 0x260   : > { %1256 = vmatprep.mubr.f32.mxu1 %v1087_v3 }
 0x261   : > { %4204 = vmatpush3.bf16.msra.mxu1 %v4203_v43 }
 0x262   : > { %4206 = vmatprep.subr.bf16.mxu1 %v4205_v19 }
 0x263   : > { %1257 = vmatmul.mubr.f32.gmra.mrb[60].mxu1 %v1086_v11 }
 0x264   : > { %1261 = vmatprep.mubr.f32.mxu1 %v1089_v63 }
 0x265   : > { %4208 = vmatpush3.bf16.msra.mxu1 %v4207_v23 }
 0x267   : > { %1262 = vmatmul.mubr.f32.gmra.mrb[62].mxu1 %v1088_v55 }
 0x2ea   : > { %v3578_v57 = vpop.f32.mrb[32].mxu1 }
 0x2eb   : > { %v3579_v59 = vpop.f32.mrb[33].mxu1 }
 0x2ec   : > { %v3580_v4 = vadd.f32 %v3579_v59, %v3578_v57 }
 0x2ee   : > { %v1267_v38 = vadd.f32 %v3580_v4, %v4858_v24  ;;  %v3581_v37 = vpop.f32.mrb[34].mxu1  ;;  %v6433_v4 = vld [vmem:[#allocation3_spill] sm:$0xff] }
 0x2ef   : > { %v3582_v21 = vpop.f32.mrb[35].mxu1 }
 0x2f0   : > { %v5478_v26 = vadd.f32 %v5474_v25, %v1267_v38  ;;  %v3583_v62 = vadd.f32 %v3582_v21, %v3581_v37 }
 0x2f2   : > { %3479 = vmatmul.mubr.msk.f32.vlgmr.msra.gmra.mrb[32].mxu0 %vm592_vm1, %v5478_v26  ;;  %v1268_v6 = vadd.f32 %v3583_v62, %v4883_v45 }
 0x2f3   : > { %1447 = vmatprep.mubr.f32.mxu0 %v6431_v13  ;;  %v3584_v47 = vpop.f32.mrb[36].mxu1 }
 0x2f4   : > { %v5485_v49 = vadd.f32 %v5474_v25, %v1268_v6  ;;  %v3585_v2 = vpop.f32.mrb[37].mxu1 }
 0x2f5   : > { %v3586_v51 = vadd.f32 %v3585_v2, %v3584_v47  ;;  %v6434_v47 = vld [vmem:[#allocation4_spill] sm:$0xff] }
 0x2f6   : > { %3480 = vmatmul.mubr.msk.f32.gmra.mrb[34].mxu0 %vm592_vm1, %v5485_v49 }
 0x2f7   : > { %1453 = vmatprep.mubr.f32.mxu0 %v6431_v13  ;;  %v1269_v24 = vadd.f32 %v3586_v51, %v4908_v1 }
 0x2f9   : > { %v5492_v8 = vadd.f32 %v5474_v25, %v1269_v24 }
 0x2fb   : > { %3481 = vmatmul.mubr.msk.f32.gmra.mrb[36].mxu0 %vm592_vm1, %v5492_v8 }
 0x2fc   : > { %1459 = vmatprep.mubr.f32.mxu0 %v6431_v13 }
 0x304   : > { %v3587_v45 = vpop.f32.mrb[38].mxu1 }
 0x305   : > { %v3588_v41 = vpop.f32.mrb[39].mxu1 }
 0x306   : > { %v3589_v56 = vadd.f32 %v3588_v41, %v3587_v45 }
 0x308   : > { %v1270_v42 = vadd.f32 %v3589_v56, %v4927_v18  ;;  %v3590_v30 = vpop.f32.mrb[40].mxu1  ;;  %v6435_v56 = vld [vmem:[#allocation5_spill] sm:$0xff] }
 0x309   : > { %v3591_v3 = vpop.f32.mrb[41].mxu1 }
 0x30a   : > { %v5499_v16 = vadd.f32 %v5474_v25, %v1270_v42  ;;  %v3592_v5 = vadd.f32 %v3591_v3, %v3590_v30 }
 0x30c   : > { %v1271_v1 = vadd.f32 %v3592_v5, %v4940_v27  ;;  %v3593_v34 = vpop.f32.mrb[42].mxu1  ;;  %3482 = vmatmul.mubr.msk.f32.gmra.mrb[38].mxu0 %vm592_vm1, %v5499_v16 }
 0x30d   : > { %v3594_v9 = vpop.f32.mrb[43].mxu1  ;;  %1465 = vmatprep.mubr.f32.mxu0 %v6431_v13 }
 0x30e   : > { %v5506_v63 = vadd.f32 %v5474_v25, %v1271_v1  ;;  %v3595_v11 = vadd.f32 %v3594_v9, %v3593_v34  ;;  %v6436_v34 = vld [vmem:[#allocation6_spill] sm:$0xff] }
 0x310   : > { %v1272_v18 = vadd.f32 %v3595_v11, %v4953_v48  ;;  %v3596_v61 = vpop.f32.mrb[44].mxu1  ;;  %3483 = vmatmul.mubr.msk.f32.gmra.mrb[40].mxu0 %vm592_vm1, %v5506_v63 }
 0x311   : > { %v3597_v55 = vpop.f32.mrb[45].mxu1  ;;  %1471 = vmatprep.mubr.f32.mxu0 %v6431_v13 }
 0x312   : > { %v5513_v27 = vadd.f32 %v5474_v25, %v1272_v18  ;;  %v3598_v44 = vadd.f32 %v3597_v55, %v3596_v61  ;;  %v1850_v18 = vld [vmem:[%s6409_s1 + $0x5a0] sm:$0xff]  ;;  %v1851_v61 = vld [vmem:[%s6409_s1 + $0x5b0] sm:$0xff] }
 0x313   : > { %v1834_v55 = vld [vmem:[%s6409_s1 + $0x4a0] sm:$0xff] }
 0x314   : > { %v1273_v31 = vadd.f32 %v3598_v44, %v4966_v60  ;;  %v3599_v22 = vpop.f32.mrb[46].mxu1  ;;  %3484 = vmatmul.mubr.msk.f32.gmra.mrb[42].mxu0 %vm592_vm1, %v5513_v27  ;;  %v4209_v44 = vpack.c.bf16 %v1851_v61, %v1850_v18 }
 0x315   : > { %v3600_v40 = vpop.f32.mrb[47].mxu1  ;;  %1477 = vmatprep.mubr.f32.mxu0 %v6431_v13 }
 0x316   : > { %v5520_v48 = vadd.f32 %v5474_v25, %v1273_v31  ;;  %v3601_v52 = vadd.f32 %v3600_v40, %v3599_v22  ;;  %v1852_v31 = vld [vmem:[%s6409_s1 + $0x5c0] sm:$0xff]  ;;  %v1853_v22 = vld [vmem:[%s6409_s1 + $0x5d0] sm:$0xff]  ;;  %4210 = vmatprep.subr.bf16.mxu1 %v4209_v44 }
 0x318   : > { %v1274_v33 = vadd.f32 %v3601_v52, %v4979_v10  ;;  %3485 = vmatmul.mubr.msk.f32.gmra.mrb[44].mxu0 %vm592_vm1, %v5520_v48  ;;  %v4213_v52 = vpack.c.bf16 %v1853_v22, %v1852_v31 }
 0x319   : > { %1483 = vmatprep.mubr.f32.mxu0 %v6431_v13 }
 0x31a   : > { %v5527_v60 = vadd.f32 %v5474_v25, %v1274_v33  ;;  %v1836_v33 = vld [vmem:[%s6409_s1 + $0x4c0] sm:$0xff] }
 0x31c   : > { %3486 = vmatmul.mubr.msk.f32.gmra.mrb[46].mxu0 %vm592_vm1, %v5527_v60 }
 0x31d   : > { %1489 = vmatprep.mubr.f32.mxu0 %v6431_v13 }
 0x31e   : > { %v3602_v32 = vpop.f32.mrb[48].mxu1 }
 0x31f   : > { %v3603_v12 = vpop.f32.mrb[49].mxu1 }
 0x320   : > { %v3604_v17 = vadd.f32 %v3603_v12, %v3602_v32  ;;  %v1837_v32 = vld [vmem:[%s6409_s1 + $0x4d0] sm:$0xff] }
 0x321   : > { %v4215_v12 = vpack.c.bf16 %v1837_v32, %v1836_v33 }
 0x322   : > { %v1275_v15 = vadd.f32 %v3604_v17, %v4992_v28  ;;  %v3605_v7 = vpop.f32.mrb[50].mxu1  ;;  %v1854_v17 = vld [vmem:[%s6409_s1 + $0x5e0] sm:$0xff] }
 0x323   : > { %v3606_v10 = vpop.f32.mrb[51].mxu1 }
 0x324   : > { %v5534_v0 = vadd.f32 %v5474_v25, %v1275_v15  ;;  %v3607_v54 = vadd.f32 %v3606_v10, %v3605_v7  ;;  %v1855_v15 = vld [vmem:[%s6409_s1 + $0x5f0] sm:$0xff]  ;;  %v1838_v10 = vld [vmem:[%s6409_s1 + $0x4e0] sm:$0xff] }
 0x325   : > { %v4217_v7 = vpack.c.bf16 %v1855_v15, %v1854_v17 }
 0x326   : > { %v1276_v46 = vadd.f32 %v3607_v54, %v5001_v53  ;;  %v3608_v35 = vpop.f32.mrb[52].mxu1  ;;  %3487 = vmatmul.mubr.msk.f32.gmra.mrb[48].mxu0 %vm592_vm1, %v5534_v0  ;;  %v1839_v54 = vld [vmem:[%s6409_s1 + $0x4f0] sm:$0xff] }
 0x327   : > { %v3609_v20 = vpop.f32.mrb[53].mxu1  ;;  %1495 = vmatprep.mubr.f32.mxu0 %v6431_v13 }
 0x328   : > { %v5541_v36 = vadd.f32 %v5474_v25, %v1276_v46  ;;  %v3610_v29 = vadd.f32 %v3609_v20, %v3608_v35  ;;  %v4219_v46 = vpack.c.bf16 %v1839_v54, %v1838_v10  ;;  %v1856_v35 = vld [vmem:[%s6409_s1 + $0x600] sm:$0xff]  ;;  %v1857_v20 = vld [vmem:[%s6409_s1 + $0x610] sm:$0xff] }
 0x32a   : > { %v1277_v28 = vadd.f32 %v3610_v29, %v5008_v50  ;;  %v3611_v58 = vpop.f32.mrb[54].mxu1  ;;  %3488 = vmatmul.mubr.msk.f32.gmra.mrb[50].mxu0 %vm592_vm1, %v5541_v36  ;;  %v4221_v29 = vpack.c.bf16 %v1857_v20, %v1856_v35 }
 0x32b   : > { %v3612_v43 = vpop.f32.mrb[55].mxu1  ;;  %1501 = vmatprep.mubr.f32.mxu0 %v6431_v13 }
 0x32c   : > { %v5548_v53 = vadd.f32 %v5474_v25, %v1277_v28  ;;  %v3613_v19 = vadd.f32 %v3612_v43, %v3611_v58  ;;  %v1840_v28 = vld [vmem:[%s6409_s1 + $0x500] sm:$0xff]  ;;  %v1841_v58 = vld [vmem:[%s6409_s1 + $0x510] sm:$0xff] }
 0x32d   : > { %v4223_v43 = vpack.c.bf16 %v1841_v58, %v1840_v28 }
 0x32e   : > { %v1278_v39 = vadd.f32 %v3613_v19, %v6432_v14  ;;  %v3614_v23 = vpop.f32.mrb[56].mxu1  ;;  %3489 = vmatmul.mubr.msk.f32.gmra.mrb[52].mxu0 %vm592_vm1, %v5548_v53  ;;  %v3478_v19 = vld [vmem:[%s6409_s1 + $0x950] ss:$8 sm:$0x3]  ;;  %v2036_v14 = vld [vmem:[%s6409_s1 + $0x620] sm:$0xff] }
 0x32f   : > { %v3615_v57 = vpop.f32.mrb[57].mxu1  ;;  %1507 = vmatprep.mubr.f32.mxu0 %v6431_v13 }
 0x330   : > { %v5555_v50 = vadd.f32 %v5474_v25, %v1278_v39  ;;  %v3616_v59 = vadd.f32 %v3615_v57, %v3614_v23  ;;  %v2037_v39 = vld [vmem:[%s6409_s1 + $0x630] sm:$0xff]  ;;  %v2038_v23 = vld [vmem:[%s6409_s1 + $0x640] sm:$0xff]  ;;  %v6437_v57 = vld [vmem:[#allocation7_spill] sm:$0xff] }
 0x332   : > { %v1279_v38 = vadd.f32 %v3616_v59, %v6433_v4  ;;  %v3617_v37 = vpop.f32.mrb[58].mxu1  ;;  %3490 = vmatmul.mubr.msk.f32.gmra.mrb[54].mxu0 %vm592_vm1, %v5555_v50  ;;  %v6438_v59 = vsub.s32 0, %v6437_v57 }
 0x333   : > { %v3618_v21 = vpop.f32.mrb[59].mxu1  ;;  %1513 = vmatprep.mubr.f32.mxu0 %v6431_v13 }
 0x334   : > { %v5562_v62 = vadd.f32 %v5474_v25, %v1279_v38  ;;  %v3619_v6 = vadd.f32 %v3618_v21, %v3617_v37  ;;  %v5649_v4 = vrot.slane %v3478_v19, %v6438_v59  ;;  %v4225_v38 = vpack.c.bf16 %v2037_v39, %v2036_v14  ;;  %v2039_v37 = vld [vmem:[%s6409_s1 + $0x650] sm:$0xff] }
 0x335   : > { %v6439_v21 = vsub.s32 1, %v6437_v57 }
 0x336   : > { %v1280_v2 = vadd.f32 %v3619_v6, %v6434_v47  ;;  %v3620_v51 = vpop.f32.mrb[60].mxu1  ;;  %3491 = vmatmul.mubr.msk.f32.gmra.mrb[56].mxu0 %vm592_vm1, %v5562_v62  ;;  %v4229_v47 = vpack.c.bf16 %v2039_v37, %v2038_v23  ;;  %4226 = vmatprep.subr.bf16.mxu0 %v4225_v38 }
 0x337   : > { %v3621_v24 = vpop.f32.mrb[61].mxu1  ;;  %1519 = vmatprep.mubr.f32.mxu0 %v6431_v13  ;;  %v5656_v6 = vrot.slane %v3478_v19, %v6439_v21  ;;  %4228 = vmatpush3.bf16.msra.mxu0 %v4225_v38 }
 0x338   : > { %v5569_v45 = vadd.f32 %v5474_v25, %v1280_v2  ;;  %v3622_v41 = vadd.f32 %v3621_v24, %v3620_v51  ;;  %4230 = vmatprep.subr.bf16.mxu0 %v4229_v47 }
 0x33a   : > { %v1281_v42 = vadd.f32 %v3622_v41, %v6435_v56  ;;  %v3623_v30 = vpop.f32.mrb[62].mxu1  ;;  %3492 = vmatmul.mubr.msk.f32.gmra.mrb[58].mxu0 %vm592_vm1, %v5569_v45 }
 0x33b   : > { %v3624_v3 = vpop.f32.mrb[63].mxu1  ;;  %1525 = vmatprep.mubr.f32.mxu0 %v6431_v13  ;;  %4232 = vmatpush3.bf16.msra.mxu0 %v4229_v47 }
 0x33c   : > { %v5576_v5 = vadd.f32 %v5474_v25, %v1281_v42  ;;  %v3625_v1 = vadd.f32 %v3624_v3, %v3623_v30 }
 0x33e   : > { %v1282_v9 = vadd.f32 %v3625_v1, %v6436_v34  ;;  %3493 = vmatmul.mubr.msk.f32.gmra.mrb[60].mxu0 %vm592_vm1, %v5576_v5 }
 0x33f   : > { %1531 = vmatprep.mubr.f32.mxu0 %v6431_v13 }
 0x340   : > { %v5583_v11 = vadd.f32 %v5474_v25, %v1282_v9  ;;  %v1835_v25 = vld [vmem:[%s6409_s1 + $0x4b0] sm:$0xff] }
 0x341   : > { %v4211_v40 = vpack.c.bf16 %v1835_v25, %v1834_v55 }
 0x342   : > { %3494 = vmatmul.mubr.msk.f32.gmra.mrb[62].mxu0 %vm592_vm1, %v5583_v11 }
 0x343   : > { %4212 = vmatpush3.bf16.msra.mxu1 %v4211_v40 }
 0x344   : > { %4214 = vmatprep.subr.bf16.mxu1 %v4213_v52 }
 0x347   : > { %4216 = vmatpush3.bf16.msra.mxu1 %v4215_v12 }
 0x348   : > { %4218 = vmatprep.subr.bf16.mxu1 %v4217_v7 }
 0x34b   : > { %4220 = vmatpush3.bf16.msra.mxu1 %v4219_v46 }
 0x34c   : > { %4222 = vmatprep.subr.bf16.mxu1 %v4221_v29 }
 0x34f   : > { %4224 = vmatpush3.bf16.msra.mxu1 %v4223_v43 }
 0x3c5   : > { %v1443_v2 = vpop.f32.mrb[32].mxu0 }
 0x3c6   : > { %v1444_v51 = vadd.f32 %v1443_v2, %v5649_v4  ;;  %v1445_v24 = vpop.f32.mrb[33].mxu0 }
 0x3c7   : > { %v1446_v41 = vadd.f32 %v1445_v24, %v5656_v6 }
 0x3c8   : > { %v1538_v56 = vmul.f32 %v1444_v51, %v1444_v51 }
 0x3c9   : > { %v1539_v42 = vmul.f32 %v1446_v41, %v1446_v41  ;;  %v1449_v3 = vpop.f32.mrb[34].mxu0 }
 0x3ca   : > { %v1570_v30 = vmul.f32 %v1538_v56, %v1444_v51  ;;  %v5661_v34 = vadd.f32 %v1449_v3, %v5649_v4  ;;  %v1451_v9 = vpop.f32.mrb[35].mxu0 }
 0x3cb   : > { %v1571_v1 = vmul.f32 %v1539_v42, %v1446_v41  ;;  %v5664_v61 = vadd.f32 %v1451_v9, %v5656_v6 }
 0x3cc   : > { %v1602_v18 = vmul.f32 0.044715, %v1570_v30  ;;  %v1540_v44 = vmul.f32 %v5661_v34, %v5661_v34 }
 0x3cd   : > { %v1603_v55 = vmul.f32 0.044715, %v1571_v1  ;;  %v1541_v31 = vmul.f32 %v5664_v61, %v5664_v61 }
 0x3ce   : > { %v1634_v25 = vadd.f32 %v1602_v18, %v1444_v51  ;;  %v1572_v40 = vmul.f32 %v1540_v44, %v5661_v34  ;;  %v1455_v32 = vpop.f32.mrb[36].mxu0 }
 0x3cf   : > { %v1635_v22 = vadd.f32 %v1603_v55, %v1446_v41  ;;  %v1573_v33 = vmul.f32 %v1541_v31, %v5664_v61  ;;  %v5673_v15 = vadd.f32 %v1455_v32, %v5649_v4  ;;  %v1457_v7 = vpop.f32.mrb[37].mxu0 }
 0x3d0   : > { %v1666_v52 = vmul.f32 0.7978846, %v1634_v25  ;;  %v1604_v17 = vmul.f32 0.044715, %v1572_v40  ;;  %v5676_v54 = vadd.f32 %v1457_v7, %v5656_v6 }
 0x3d1   : > { %v1667_v12 = vmul.f32 0.7978846, %v1635_v22  ;;  %v1605_v10 = vmul.f32 0.044715, %v1573_v33  ;;  %v1542_v35 = vmul.f32 %v5673_v15, %v5673_v15 }
 0x3d2   : > { %4452 = vtanh.f32 %v1666_v52  ;;  %v1636_v46 = vadd.f32 %v1604_v17, %v5661_v34  ;;  %v1543_v29 = vmul.f32 %v5676_v54, %v5676_v54 }
 0x3d3   : > { %4454 = vtanh.f32 %v1667_v12  ;;  %v1637_v20 = vadd.f32 %v1605_v10, %v5664_v61  ;;  %v1574_v58 = vmul.f32 %v1542_v35, %v5673_v15 }
 0x3d4   : > { %v1668_v28 = vmul.f32 0.7978846, %v1636_v46  ;;  %v1575_v19 = vmul.f32 %v1543_v29, %v5676_v54 }
 0x3d5   : > { %v1669_v43 = vmul.f32 0.7978846, %v1637_v20  ;;  %v1606_v14 = vmul.f32 0.044715, %v1574_v58 }
 0x3d6   : > { %4456 = vtanh.f32 %v1668_v28  ;;  %v1607_v39 = vmul.f32 0.044715, %v1575_v19 }
 0x3d7   : > { %4458 = vtanh.f32 %v1669_v43  ;;  %v1638_v23 = vadd.f32 %v1606_v14, %v5673_v15 }
 0x3d8   : > { %v1639_v57 = vadd.f32 %v1607_v39, %v5676_v54 }
 0x3d9   : > { %v1670_v59 = vmul.f32 0.7978846, %v1638_v23 }
 0x3da   : > { %v1671_v37 = vmul.f32 0.7978846, %v1639_v57 }
 0x3db   : > { %4460 = vtanh.f32 %v1670_v59 }
 0x3dc   : > { %v4453_v38 = vpop.eup %4452  ;;  %4462 = vtanh.f32 %v1671_v37 }
 0x3dd   : > { %v4455_v21 = vpop.eup %4454  ;;  %v1730_v47 = vadd.f32 1.0, %v4453_v38 }
 0x3de   : > { %v1731_v2 = vadd.f32 1.0, %v4455_v21 }
 0x3df   : > { %v1762_v24 = vmul.f32 0.5, %v1730_v47  ;;  %v1461_v30 = vpop.f32.mrb[38].mxu0 }
 0x3e0   : > { %v1763_v56 = vmul.f32 0.5, %v1731_v2  ;;  %v4457_v42 = vpop.eup %4456  ;;  %v5689_v1 = vadd.f32 %v1461_v30, %v5649_v4  ;;  %v1463_v9 = vpop.f32.mrb[39].mxu0 }
 0x3e1   : > { %v4459_v3 = vpop.eup %4458  ;;  %v1732_v55 = vadd.f32 1.0, %v4457_v42  ;;  %v1794_v44 = vmul.f32 %v1762_v24, %v1444_v51  ;;  %v5692_v25 = vadd.f32 %v1463_v9, %v5656_v6 }
 0x3e2   : > { %v1795_v18 = vmul.f32 %v1763_v56, %v1446_v41  ;;  %v1733_v31 = vadd.f32 1.0, %v4459_v3  ;;  %v1544_v22 = vmul.f32 %v5689_v1, %v5689_v1 }
 0x3e3   : > { %v1764_v40 = vmul.f32 0.5, %v1732_v55  ;;  %v1545_v52 = vmul.f32 %v5692_v25, %v5692_v25  ;;  %v1467_v33 = vpop.f32.mrb[40].mxu0 }
 0x3e4   : > { %1922 = vmatprep.mubr.f32.mxu1 %v1795_v18  ;;  %v1765_v32 = vmul.f32 0.5, %v1733_v31  ;;  %v1576_v12 = vmul.f32 %v1544_v22, %v5689_v1  ;;  %v5700_v41 = vadd.f32 %v1467_v33, %v5649_v4  ;;  %v1469_v51 = vpop.f32.mrb[41].mxu0 }
 0x3e5   : > { %1923 = vmatmul.mubr.f32.vlgmr.msra.gmra.mrb[64].mxu1 %v1794_v44  ;;  %v4461_v17 = vpop.eup %4460  ;;  %v1577_v7 = vmul.f32 %v1545_v52, %v5692_v25  ;;  %v5704_v10 = vadd.f32 %v1469_v51, %v5656_v6  ;;  %v1796_v28 = vmul.f32 %v1764_v40, %v5661_v34 }
 0x3e6   : > { %v1797_v46 = vmul.f32 %v1765_v32, %v5664_v61  ;;  %v4463_v35 = vpop.eup %4462  ;;  %v1608_v20 = vmul.f32 0.044715, %v1576_v12  ;;  %v1546_v29 = vmul.f32 %v5700_v41, %v5700_v41  ;;  %v1734_v58 = vadd.f32 1.0, %v4461_v17 }
 0x3e7   : > { %v1609_v43 = vmul.f32 0.044715, %v1577_v7  ;;  %v1547_v19 = vmul.f32 %v5704_v10, %v5704_v10  ;;  %v1473_v14 = vpop.f32.mrb[42].mxu0  ;;  %v1735_v39 = vadd.f32 1.0, %v4463_v35 }
 0x3e8   : > { %1927 = vmatprep.mubr.f32.mxu1 %v1797_v46  ;;  %v1640_v23 = vadd.f32 %v1608_v20, %v5689_v1  ;;  %v1578_v57 = vmul.f32 %v1546_v29, %v5700_v41  ;;  %v5715_v61 = vadd.f32 %v1473_v14, %v5649_v4  ;;  %v1475_v59 = vpop.f32.mrb[43].mxu0  ;;  %v1766_v38 = vmul.f32 0.5, %v1734_v58 }
 0x3e9   : > { %1928 = vmatmul.mubr.f32.gmra.mrb[66].mxu1 %v1796_v28  ;;  %v1641_v34 = vadd.f32 %v1609_v43, %v5692_v25  ;;  %v1579_v37 = vmul.f32 %v1547_v19, %v5704_v10  ;;  %v5720_v21 = vadd.f32 %v1475_v59, %v5656_v6  ;;  %v1767_v47 = vmul.f32 0.5, %v1735_v39 }
 0x3ea   : > { %v1672_v2 = vmul.f32 0.7978846, %v1640_v23  ;;  %v1610_v24 = vmul.f32 0.044715, %v1578_v57  ;;  %v1548_v56 = vmul.f32 %v5715_v61, %v5715_v61  ;;  %v1798_v42 = vmul.f32 %v1766_v38, %v5673_v15 }
 0x3eb   : > { %v1673_v30 = vmul.f32 0.7978846, %v1641_v34  ;;  %v1611_v3 = vmul.f32 0.044715, %v1579_v37  ;;  %v1549_v9 = vmul.f32 %v5720_v21, %v5720_v21  ;;  %v1479_v18 = vpop.f32.mrb[44].mxu0  ;;  %v1799_v55 = vmul.f32 %v1767_v47, %v5676_v54 }
 0x3ec   : > { %v1642_v44 = vadd.f32 %v1610_v24, %v5700_v41  ;;  %v1580_v31 = vmul.f32 %v1548_v56, %v5715_v61  ;;  %v5731_v22 = vadd.f32 %v1479_v18, %v5649_v4  ;;  %v1481_v40 = vpop.f32.mrb[45].mxu0  ;;  %4464 = vtanh.f32 %v1672_v2 }
 0x3ed   : > { %v1643_v52 = vadd.f32 %v1611_v3, %v5704_v10  ;;  %v1581_v15 = vmul.f32 %v1549_v9, %v5720_v21  ;;  %v5736_v33 = vadd.f32 %v1481_v40, %v5656_v6  ;;  %1932 = vmatprep.mubr.f32.mxu1 %v1799_v55  ;;  %4466 = vtanh.f32 %v1673_v30 }
 0x3ee   : > { %v1674_v32 = vmul.f32 0.7978846, %v1642_v44  ;;  %v1612_v54 = vmul.f32 0.044715, %v1580_v31  ;;  %v1550_v12 = vmul.f32 %v5731_v22, %v5731_v22  ;;  %1933 = vmatmul.mubr.f32.gmra.mrb[68].mxu1 %v1798_v42 }
 0x3ef   : > { %v1675_v51 = vmul.f32 0.7978846, %v1643_v52  ;;  %v1613_v17 = vmul.f32 0.044715, %v1581_v15  ;;  %v1551_v7 = vmul.f32 %v5736_v33, %v5736_v33  ;;  %v1485_v46 = vpop.f32.mrb[46].mxu0 }
 0x3f0   : > { %v1644_v35 = vadd.f32 %v1612_v54, %v5715_v61  ;;  %v1582_v20 = vmul.f32 %v1550_v12, %v5731_v22  ;;  %v5745_v29 = vadd.f32 %v1485_v46, %v5649_v4  ;;  %v1487_v28 = vpop.f32.mrb[47].mxu0  ;;  %4468 = vtanh.f32 %v1674_v32 }
 0x3f1   : > { %v1645_v58 = vadd.f32 %v1613_v17, %v5720_v21  ;;  %v1583_v43 = vmul.f32 %v1551_v7, %v5736_v33  ;;  %v5750_v19 = vadd.f32 %v1487_v28, %v5656_v6  ;;  %4470 = vtanh.f32 %v1675_v51 }
 0x3f2   : > { %v1676_v14 = vmul.f32 0.7978846, %v1644_v35  ;;  %v1614_v39 = vmul.f32 0.044715, %v1582_v20  ;;  %v1552_v23 = vmul.f32 %v5745_v29, %v5745_v29 }
 0x3f3   : > { %v1677_v57 = vmul.f32 0.7978846, %v1645_v58  ;;  %v1615_v59 = vmul.f32 0.044715, %v1583_v43  ;;  %v1553_v38 = vmul.f32 %v5750_v19, %v5750_v19 }
 0x3f4   : > { %v1646_v34 = vadd.f32 %v1614_v39, %v5731_v22  ;;  %v1584_v37 = vmul.f32 %v1552_v23, %v5745_v29  ;;  %4472 = vtanh.f32 %v1676_v14 }
 0x3f5   : > { %v1647_v47 = vadd.f32 %v1615_v59, %v5736_v33  ;;  %v1585_v2 = vmul.f32 %v1553_v38, %v5750_v19  ;;  %4474 = vtanh.f32 %v1677_v57 }
 0x3f6   : > { %v4465_v24 = vpop.eup %4464  ;;  %v1678_v56 = vmul.f32 0.7978846, %v1646_v34  ;;  %v1616_v42 = vmul.f32 0.044715, %v1584_v37 }
 0x3f7   : > { %v4467_v30 = vpop.eup %4466  ;;  %v1679_v3 = vmul.f32 0.7978846, %v1647_v47  ;;  %v1617_v9 = vmul.f32 0.044715, %v1585_v2  ;;  %v1736_v18 = vadd.f32 1.0, %v4465_v24 }
 0x3f8   : > { %v1648_v55 = vadd.f32 %v1616_v42, %v5745_v29  ;;  %v1737_v44 = vadd.f32 1.0, %v4467_v30  ;;  %4476 = vtanh.f32 %v1678_v56 }
 0x3f9   : > { %v1649_v31 = vadd.f32 %v1617_v9, %v5750_v19  ;;  %v1491_v40 = vpop.f32.mrb[48].mxu0  ;;  %v1768_v52 = vmul.f32 0.5, %v1736_v18  ;;  %4478 = vtanh.f32 %v1679_v3 }
 0x3fa   : > { %v4469_v15 = vpop.eup %4468  ;;  %v5763_v32 = vadd.f32 %v1491_v40, %v5649_v4  ;;  %v1493_v54 = vpop.f32.mrb[49].mxu0  ;;  %v1769_v12 = vmul.f32 0.5, %v1737_v44  ;;  %v1680_v17 = vmul.f32 0.7978846, %v1648_v55 }
 0x3fb   : > { %v4471_v51 = vpop.eup %4470  ;;  %v1681_v7 = vmul.f32 0.7978846, %v1649_v31  ;;  %v5766_v46 = vadd.f32 %v1493_v54, %v5656_v6  ;;  %v1738_v35 = vadd.f32 1.0, %v4469_v15  ;;  %v1800_v39 = vmul.f32 %v1768_v52, %v5689_v1 }
 0x3fc   : > { %v1554_v20 = vmul.f32 %v5763_v32, %v5763_v32  ;;  %v1801_v28 = vmul.f32 %v1769_v12, %v5692_v25  ;;  %v1739_v58 = vadd.f32 1.0, %v4471_v51 }
 0x3fd   : > { %v1555_v43 = vmul.f32 %v5766_v46, %v5766_v46  ;;  %v1497_v14 = vpop.f32.mrb[50].mxu0  ;;  %v1770_v23 = vmul.f32 0.5, %v1738_v35  ;;  %4480 = vtanh.f32 %v1681_v7 }
 0x3fe   : > { %v4473_v57 = vpop.eup %4472  ;;  %v1586_v59 = vmul.f32 %v1554_v20, %v5763_v32  ;;  %v5776_v38 = vadd.f32 %v1497_v14, %v5649_v4  ;;  %v1499_v34 = vpop.f32.mrb[51].mxu0  ;;  %1937 = vmatprep.mubr.f32.mxu1 %v1801_v28  ;;  %v1771_v37 = vmul.f32 0.5, %v1739_v58  ;;  %4482 = vtanh.f32 %v1680_v17 }
 0x3ff   : > { %v4475_v47 = vpop.eup %4474  ;;  %v1587_v25 = vmul.f32 %v1555_v43, %v5766_v46  ;;  %v5780_v2 = vadd.f32 %v1499_v34, %v5656_v6  ;;  %1938 = vmatmul.mubr.f32.gmra.mrb[70].mxu1 %v1800_v39  ;;  %v1740_v24 = vadd.f32 1.0, %v4473_v57  ;;  %v1802_v55 = vmul.f32 %v1770_v23, %v5700_v41 }
 0x400   : > { %v1618_v1 = vmul.f32 0.044715, %v1586_v59  ;;  %v1556_v56 = vmul.f32 %v5776_v38, %v5776_v38  ;;  %v1803_v42 = vmul.f32 %v1771_v37, %v5704_v10  ;;  %v1741_v30 = vadd.f32 1.0, %v4475_v47 }
 0x401   : > { %v1619_v3 = vmul.f32 0.044715, %v1587_v25  ;;  %v1557_v9 = vmul.f32 %v5780_v2, %v5780_v2  ;;  %v1503_v18 = vpop.f32.mrb[52].mxu0  ;;  %v1772_v44 = vmul.f32 0.5, %v1740_v24 }
 0x402   : > { %v4477_v31 = vpop.eup %4476  ;;  %v1650_v40 = vadd.f32 %v1618_v1, %v5763_v32  ;;  %v1588_v52 = vmul.f32 %v1556_v56, %v5776_v38  ;;  %v5791_v15 = vadd.f32 %v1503_v18, %v5649_v4  ;;  %v1505_v54 = vpop.f32.mrb[53].mxu0  ;;  %1942 = vmatprep.mubr.f32.mxu1 %v1803_v42  ;;  %v1773_v10 = vmul.f32 0.5, %v1741_v30 }
 0x403   : > { %v4479_v12 = vpop.eup %4478  ;;  %v1651_v51 = vadd.f32 %v1619_v3, %v5766_v46  ;;  %v1589_v17 = vmul.f32 %v1557_v9, %v5780_v2  ;;  %v5796_v7 = vadd.f32 %v1505_v54, %v5656_v6  ;;  %1943 = vmatmul.mubr.f32.gmra.mrb[72].mxu1 %v1802_v55  ;;  %v1804_v28 = vmul.f32 %v1772_v44, %v5715_v61 }
 0x404   : > { %v1620_v41 = vmul.f32 0.044715, %v1588_v52  ;;  %v1558_v35 = vmul.f32 %v5791_v15, %v5791_v15  ;;  %v1805_v20 = vmul.f32 %v1773_v10, %v5720_v21  ;;  %v5802_v58 = vmul.f32 0.7978846, %v1650_v40 }
 0x405   : > { %v1621_v43 = vmul.f32 0.044715, %v1589_v17  ;;  %v1559_v14 = vmul.f32 %v5796_v7, %v5796_v7  ;;  %v1509_v39 = vpop.f32.mrb[54].mxu0  ;;  %v1743_v23 = vadd.f32 1.0, %v4479_v12  ;;  %v1742_v21 = vadd.f32 1.0, %v4477_v31 }
 0x406   : > { %v1652_v57 = vadd.f32 %v1620_v41, %v5776_v38  ;;  %v1590_v59 = vmul.f32 %v1558_v35, %v5791_v15  ;;  %v5809_v34 = vadd.f32 %v1509_v39, %v5649_v4  ;;  %v1511_v37 = vpop.f32.mrb[55].mxu0  ;;  %1947 = vmatprep.mubr.f32.mxu1 %v1805_v20  ;;  %v1683_v56 = vmul.f32 0.7978846, %v1651_v51 }
 0x407   : > { %v1653_v61 = vadd.f32 %v1621_v43, %v5780_v2  ;;  %v1591_v47 = vmul.f32 %v1559_v14, %v5796_v7  ;;  %v5814_v25 = vadd.f32 %v1511_v37, %v5656_v6  ;;  %1948 = vmatmul.mubr.f32.gmra.mrb[74].mxu1 %v1804_v28  ;;  %v1775_v24 = vmul.f32 0.5, %v1743_v23  ;;  %v4481_v1 = vpop.eup %4480 }
 0x408   : > { %v1622_v42 = vmul.f32 0.044715, %v1590_v59  ;;  %v1560_v30 = vmul.f32 %v5809_v34, %v5809_v34  ;;  %v1774_v3 = vmul.f32 0.5, %v1742_v21  ;;  %v4483_v9 = vpop.eup %4482  ;;  %v1684_v18 = vmul.f32 0.7978846, %v1652_v57 }
 0x409   : > { %v1623_v55 = vmul.f32 0.044715, %v1591_v47  ;;  %v1561_v44 = vmul.f32 %v5814_v25, %v5814_v25  ;;  %v1515_v31 = vpop.f32.mrb[56].mxu0  ;;  %v1807_v40 = vmul.f32 %v1775_v24, %v5736_v33  ;;  %v1685_v17 = vmul.f32 0.7978846, %v1653_v61 }
 0x40a   : > { %v1654_v52 = vadd.f32 %v1622_v42, %v5791_v15  ;;  %v1592_v54 = vmul.f32 %v1560_v30, %v5809_v34  ;;  %v5824_v10 = vadd.f32 %v1515_v31, %v5649_v4  ;;  %v1517_v12 = vpop.f32.mrb[57].mxu0  ;;  %v1806_v51 = vmul.f32 %v1774_v3, %v5731_v22 }
 0x40b   : > { %v1593_v41 = vmul.f32 %v1561_v44, %v5814_v25  ;;  %v5829_v35 = vadd.f32 %v1517_v12, %v5656_v6  ;;  %1952 = vmatprep.mubr.f32.mxu1 %v1807_v40  ;;  %v1745_v20 = vadd.f32 1.0, %v4481_v1  ;;  %v1655_v33 = vadd.f32 %v1623_v55, %v5796_v7 }
 0x40c   : > { %v1624_v28 = vmul.f32 0.044715, %v1592_v54  ;;  %v1562_v43 = vmul.f32 %v5824_v10, %v5824_v10  ;;  %1953 = vmatmul.mubr.f32.gmra.mrb[76].mxu1 %v1806_v51  ;;  %v1744_v14 = vadd.f32 1.0, %v4483_v9  ;;  %v1686_v39 = vmul.f32 0.7978846, %v1654_v52 }
 0x40d   : > { %v1625_v23 = vmul.f32 0.044715, %v1593_v41  ;;  %v1563_v22 = vmul.f32 %v5829_v35, %v5829_v35  ;;  %v1521_v57 = vpop.f32.mrb[58].mxu0  ;;  %v1777_v59 = vmul.f32 0.5, %v1745_v20  ;;  %v1687_v9 = vmul.f32 0.7978846, %v1655_v33 }
 0x40e   : > { %v1656_v37 = vadd.f32 %v1624_v28, %v5809_v34  ;;  %v1594_v21 = vmul.f32 %v1562_v43, %v5824_v10  ;;  %v5839_v61 = vadd.f32 %v1521_v57, %v5649_v4  ;;  %v1523_v47 = vpop.f32.mrb[59].mxu0  ;;  %v1776_v24 = vmul.f32 0.5, %v1744_v14 }
 0x40f   : > { %v1657_v1 = vadd.f32 %v1625_v23, %v5814_v25  ;;  %v1595_v42 = vmul.f32 %v1563_v22, %v5829_v35  ;;  %v5844_v30 = vadd.f32 %v1523_v47, %v5656_v6  ;;  %v1809_v3 = vmul.f32 %v1777_v59, %v5750_v19 }
 0x410   : > { %v1626_v55 = vmul.f32 0.044715, %v1594_v21  ;;  %v1564_v44 = vmul.f32 %v5839_v61, %v5839_v61  ;;  %v1808_v31 = vmul.f32 %v1776_v24, %v5745_v29  ;;  %v1688_v40 = vmul.f32 0.7978846, %v1656_v37 }
 0x411   : > { %v1627_v52 = vmul.f32 0.044715, %v1595_v42  ;;  %v1565_v54 = vmul.f32 %v5844_v30, %v5844_v30  ;;  %v1527_v12 = vpop.f32.mrb[60].mxu0  ;;  %1957 = vmatprep.mubr.f32.mxu1 %v1809_v3  ;;  %4484 = vtanh.f32 %v1683_v56  ;;  %v1689_v51 = vmul.f32 0.7978846, %v1657_v1 }
 0x412   : > { %v1596_v41 = vmul.f32 %v1564_v44, %v5839_v61  ;;  %v5854_v19 = vadd.f32 %v1527_v12, %v5649_v4  ;;  %v1529_v20 = vpop.f32.mrb[61].mxu0  ;;  %1958 = vmatmul.mubr.f32.gmra.mrb[78].mxu1 %v1808_v31  ;;  %4486 = vtanh.f32 %v5802_v58  ;;  %v1658_v56 = vadd.f32 %v1626_v55, %v5824_v10 }
 0x413   : > { %v1659_v29 = vadd.f32 %v1627_v52, %v5829_v35  ;;  %v1597_v33 = vmul.f32 %v1565_v54, %v5844_v30  ;;  %v5860_v28 = vadd.f32 %v1529_v20, %v5656_v6  ;;  %4488 = vtanh.f32 %v1685_v17 }
 0x414   : > { %v1628_v43 = vmul.f32 0.044715, %v1596_v41  ;;  %v1566_v14 = vmul.f32 %v5854_v19, %v5854_v19  ;;  %4490 = vtanh.f32 %v1684_v18  ;;  %v1690_v1 = vmul.f32 0.7978846, %v1658_v56 }
 0x415   : > { %v1691_v23 = vmul.f32 0.7978846, %v1659_v29  ;;  %v1629_v22 = vmul.f32 0.044715, %v1597_v33  ;;  %v1567_v58 = vmul.f32 %v5860_v28, %v5860_v28  ;;  %v1533_v57 = vpop.f32.mrb[62].mxu0  ;;  %4492 = vtanh.f32 %v1687_v9 }
 0x416   : > { %v1660_v59 = vadd.f32 %v1628_v43, %v5839_v61  ;;  %v1598_v37 = vmul.f32 %v1566_v14, %v5854_v19  ;;  %v5870_v17 = vadd.f32 %v1533_v57, %v5649_v4  ;;  %v1535_v21 = vpop.f32.mrb[63].mxu0  ;;  %4494 = vtanh.f32 %v1686_v39 }
 0x417   : > { %v1661_v47 = vadd.f32 %v1629_v22, %v5844_v30  ;;  %v1599_v18 = vmul.f32 %v1567_v58, %v5860_v28  ;;  %v5875_v24 = vadd.f32 %v1535_v21, %v5656_v6  ;;  %4496 = vtanh.f32 %v1689_v51 }
 0x418   : > { %v1630_v42 = vmul.f32 0.044715, %v1598_v37  ;;  %v1568_v3 = vmul.f32 %v5870_v17, %v5870_v17  ;;  %4498 = vtanh.f32 %v1688_v40  ;;  %v1692_v39 = vmul.f32 0.7978846, %v1660_v59 }
 0x419   : > { %v1693_v9 = vmul.f32 0.7978846, %v1661_v47  ;;  %v1631_v55 = vmul.f32 0.044715, %v1599_v18  ;;  %v1569_v4 = vmul.f32 %v5875_v24, %v5875_v24  ;;  %4500 = vtanh.f32 %v1691_v23 }
 0x41a   : > { %v1662_v44 = vadd.f32 %v1630_v42, %v5854_v19  ;;  %v1600_v31 = vmul.f32 %v1568_v3, %v5870_v17 }
 0x41b   : > { %v4485_v6 = vpop.eup %4484  ;;  %v1663_v52 = vadd.f32 %v1631_v55, %v5860_v28  ;;  %v1601_v54 = vmul.f32 %v1569_v4, %v5875_v24  ;;  %4502 = vtanh.f32 %v1693_v9 }
 0x41c   : > { %v4487_v12 = vpop.eup %4486  ;;  %v1632_v51 = vmul.f32 0.044715, %v1600_v31  ;;  %v1747_v40 = vadd.f32 1.0, %v4485_v6  ;;  %4504 = vtanh.f32 %v1690_v1  ;;  %v1694_v43 = vmul.f32 0.7978846, %v1662_v44 }
 0x41d   : > { %v4489_v41 = vpop.eup %4488  ;;  %v1695_v20 = vmul.f32 0.7978846, %v1663_v52  ;;  %v1633_v29 = vmul.f32 0.044715, %v1601_v54  ;;  %v1746_v33 = vadd.f32 1.0, %v4487_v12  ;;  %4506 = vtanh.f32 %v1692_v39 }
 0x41e   : > { %v4491_v56 = vpop.eup %4490  ;;  %v1779_v14 = vmul.f32 0.5, %v1747_v40  ;;  %v1749_v23 = vadd.f32 1.0, %v4489_v41  ;;  %v1664_v21 = vadd.f32 %v1632_v51, %v5870_v17 }
 0x41f   : > { %v4493_v22 = vpop.eup %4492  ;;  %v1665_v58 = vadd.f32 %v1633_v29, %v5875_v24  ;;  %v1778_v57 = vmul.f32 0.5, %v1746_v33  ;;  %v1748_v59 = vadd.f32 1.0, %v4491_v56  ;;  %4508 = vtanh.f32 %v1695_v20 }
 0x420   : > { %v4495_v37 = vpop.eup %4494  ;;  %v1811_v47 = vmul.f32 %v1779_v14, %v5766_v46  ;;  %v1781_v18 = vmul.f32 0.5, %v1749_v23  ;;  %v1751_v1 = vadd.f32 1.0, %v4493_v22  ;;  %4510 = vtanh.f32 %v1694_v43 }
 0x421   : > { %v4497_v42 = vpop.eup %4496  ;;  %v1697_v3 = vmul.f32 0.7978846, %v1665_v58  ;;  %v1810_v9 = vmul.f32 %v1778_v57, %v5763_v32  ;;  %v1780_v55 = vmul.f32 0.5, %v1748_v59  ;;  %v1750_v4 = vadd.f32 1.0, %v4495_v37 }
 0x422   : > { %v4499_v39 = vpop.eup %4498  ;;  %1962 = vmatprep.mubr.f32.mxu1 %v1811_v47  ;;  %v1813_v44 = vmul.f32 %v1781_v18, %v5780_v2  ;;  %v1783_v31 = vmul.f32 0.5, %v1751_v1  ;;  %v1753_v6 = vadd.f32 1.0, %v4497_v42  ;;  %v1696_v54 = vmul.f32 0.7978846, %v1664_v21 }
 0x423   : > { %v4501_v52 = vpop.eup %4500  ;;  %1963 = vmatmul.mubr.f32.gmra.mrb[80].mxu1 %v1810_v9  ;;  %4512 = vtanh.f32 %v1697_v3  ;;  %v1812_v32 = vmul.f32 %v1780_v55, %v5776_v38  ;;  %v1782_v41 = vmul.f32 0.5, %v1750_v4  ;;  %v1752_v20 = vadd.f32 1.0, %v4499_v39 }
 0x424   : > { %1967 = vmatprep.mubr.f32.mxu1 %v1813_v44  ;;  %v1815_v46 = vmul.f32 %v1783_v31, %v5796_v7  ;;  %v1785_v12 = vmul.f32 0.5, %v1753_v6  ;;  %v1755_v51 = vadd.f32 1.0, %v4501_v52  ;;  %4514 = vtanh.f32 %v1696_v54 }
 0x425   : > { %v4503_v40 = vpop.eup %4502  ;;  %v1814_v23 = vmul.f32 %v1782_v41, %v5791_v15  ;;  %v1784_v7 = vmul.f32 0.5, %v1752_v20  ;;  %v5924_v41 = vld [vmem:[%s6409_s1 + $0x960] ss:$0 sm:$0xff] }
 0x426   : > { %v4505_v29 = vpop.eup %4504  ;;  %v1817_v33 = vmul.f32 %v1785_v12, %v5814_v25  ;;  %v1787_v56 = vmul.f32 0.5, %v1755_v51  ;;  %v1757_v43 = vadd.f32 1.0, %v4503_v40 }
 0x427   : > { %1968 = vmatmul.mubr.f32.gmra.mrb[82].mxu1 %v1812_v32  ;;  %v4507_v2 = vpop.eup %4506  ;;  %v1754_v22 = vadd.f32 1.0, %v4505_v29  ;;  %v1816_v21 = vmul.f32 %v1784_v7, %v5809_v34 }
 0x428   : > { %1972 = vmatprep.mubr.f32.mxu1 %v1815_v46  ;;  %v1819_v38 = vmul.f32 %v1787_v56, %v5829_v35  ;;  %v1789_v57 = vmul.f32 0.5, %v1757_v43  ;;  %v1756_v25 = vadd.f32 1.0, %v4507_v2  ;;  %v2238_v46 = vld [vmem:[%s6409_s1 + $0x6a0] sm:$0xff] }
 0x429   : > { %v4509_v14 = vpop.eup %4508  ;;  %v1786_v47 = vmul.f32 0.5, %v1754_v22 }
 0x42a   : > { %v4511_v58 = vpop.eup %4510  ;;  %v1759_v59 = vadd.f32 1.0, %v4509_v14  ;;  %v1821_v18 = vmul.f32 %v1789_v57, %v5844_v30  ;;  %v1788_v3 = vmul.f32 0.5, %v1756_v25 }
 0x42b   : > { %1973 = vmatmul.mubr.f32.gmra.mrb[84].mxu1 %v1814_v23  ;;  %v1818_v42 = vmul.f32 %v1786_v47, %v5824_v10  ;;  %v1758_v9 = vadd.f32 1.0, %v4511_v58  ;;  %v2040_v10 = vld [vmem:[%s6409_s1 + $0x660] sm:$0xff] }
 0x42c   : > { %1977 = vmatprep.mubr.f32.mxu1 %v1817_v33  ;;  %v1791_v1 = vmul.f32 0.5, %v1759_v59  ;;  %v1820_v34 = vmul.f32 %v1788_v3, %v5839_v61 }
 0x42d   : > { %v4513_v37 = vpop.eup %4512  ;;  %v1790_v39 = vmul.f32 0.5, %v1758_v9 }
 0x42e   : > { %v1761_v15 = vadd.f32 1.0, %v4513_v37  ;;  %v4515_v55 = vpop.eup %4514  ;;  %v1823_v35 = vmul.f32 %v1791_v1, %v5860_v28  ;;  %v2041_v28 = vld [vmem:[%s6409_s1 + $0x670] sm:$0xff] }
 0x42f   : > { %1978 = vmatmul.mubr.f32.gmra.mrb[86].mxu1 %v1816_v21  ;;  %v1760_v44 = vadd.f32 1.0, %v4515_v55  ;;  %v1822_v31 = vmul.f32 %v1790_v39, %v5854_v19  ;;  %v4233_v52 = vpack.c.bf16 %v2041_v28, %v2040_v10  ;;  %v2042_v19 = vld [vmem:[%s6409_s1 + $0x680] sm:$0xff] }
 0x430   : > { %1982 = vmatprep.mubr.f32.mxu1 %v1819_v38  ;;  %v1793_v4 = vmul.f32 0.5, %v1761_v15 }
 0x431   : > { %v1792_v6 = vmul.f32 0.5, %v1760_v44  ;;  %4234 = vmatprep.subr.bf16.mxu0 %v4233_v52 }
 0x432   : > { %v1825_v30 = vmul.f32 %v1793_v4, %v5875_v24  ;;  %4236 = vmatpush3.bf16.msra.mxu0 %v4233_v52  ;;  %v2043_v24 = vld [vmem:[%s6409_s1 + $0x690] sm:$0xff] }
 0x433   : > { %1983 = vmatmul.mubr.f32.gmra.mrb[88].mxu1 %v1818_v42  ;;  %v1824_v61 = vmul.f32 %v1792_v6, %v5870_v17  ;;  %v4237_v54 = vpack.c.bf16 %v2043_v24, %v2042_v19  ;;  %v2239_v17 = vld [vmem:[%s6409_s1 + $0x6b0] sm:$0xff] }
 0x434   : > { %1987 = vmatprep.mubr.f32.mxu1 %v1821_v18  ;;  %v4241_v12 = vpack.c.bf16 %v2239_v17, %v2238_v46 }
 0x435   : > { %4238 = vmatprep.subr.bf16.mxu0 %v4237_v54 }
 0x436   : > { %4240 = vmatpush3.bf16.msra.mxu0 %v4237_v54 }
 0x437   : > { %1988 = vmatmul.mubr.f32.gmra.mrb[90].mxu1 %v1820_v34  ;;  %4242 = vmatprep.subr.bf16.mxu0 %v4241_v12 }
 0x438   : > { %1992 = vmatprep.mubr.f32.mxu1 %v1823_v35 }
 0x43b   : > { %1993 = vmatmul.mubr.f32.gmra.mrb[92].mxu1 %v1822_v31 }
 0x43c   : > { %1997 = vmatprep.mubr.f32.mxu1 %v1825_v30 }
 0x43f   : > { %1998 = vmatmul.mubr.f32.gmra.mrb[94].mxu1 %v1824_v61 }
 0x4b8   : > { %v3658_v51 = vpop.f32.mrb[64].mxu1 }
 0x4b9   : > { %v3659_v40 = vpop.f32.mrb[65].mxu1 }
 0x4ba   : > { %v3660_v32 = vadd.f32 %v3659_v40, %v3658_v51 }
 0x4bc   : > { %v2003_v20 = vadd.f32 %v3660_v32, %v5478_v26  ;;  %v3661_v29 = vpop.f32.mrb[66].mxu1 }
 0x4bd   : > { %v3662_v33 = vpop.f32.mrb[67].mxu1 }
 0x4be   : > { %v2020_v2 = vadd.f32 %v5924_v41, %v2003_v20  ;;  %v3663_v56 = vadd.f32 %v3662_v33, %v3661_v29 }
 0x4c0   : > { %3867 = vmatprep.mubr.msk.f32.mxu0 %vm592_vm1, %v2020_v2  ;;  %v2004_v43 = vadd.f32 %v3663_v56, %v5485_v49 }
 0x4c1   : > { %v3664_v23 = vpop.f32.mrb[68].mxu1 }
 0x4c2   : > { %v2021_v14 = vadd.f32 %v5924_v41, %v2004_v43  ;;  %v3665_v7 = vpop.f32.mrb[69].mxu1 }
 0x4c3   : > { %v3666_v22 = vadd.f32 %v3665_v7, %v3664_v23 }
 0x4c4   : > { %3868 = vmatmul.mubr.msk.f32.vlgmr.msra.gmra.mrb[64].mxu0 %vm592_vm1, %v2021_v14 }
 0x4c5   : > { %4244 = vmatpush3.bf16.msra.mxu0 %v4241_v12  ;;  %v2005_v58 = vadd.f32 %v3666_v22, %v5492_v8 }
 0x4c7   : > { %v2022_v26 = vadd.f32 %v5924_v41, %v2005_v58 }
 0x4c9   : > { %3870 = vmatprep.mubr.msk.f32.mxu0 %vm592_vm1, %v2022_v26 }
 0x4d2   : > { %v3667_v38 = vpop.f32.mrb[70].mxu1 }
 0x4d3   : > { %v3668_v57 = vpop.f32.mrb[71].mxu1 }
 0x4d4   : > { %v3669_v59 = vadd.f32 %v3668_v57, %v3667_v38 }
 0x4d6   : > { %v2006_v37 = vadd.f32 %v3669_v59, %v5499_v16  ;;  %v3670_v49 = vpop.f32.mrb[72].mxu1 }
 0x4d7   : > { %v3671_v21 = vpop.f32.mrb[73].mxu1 }
 0x4d8   : > { %v2023_v47 = vadd.f32 %v5924_v41, %v2006_v37  ;;  %v3672_v25 = vadd.f32 %v3671_v21, %v3670_v49  ;;  %v2240_v21 = vld [vmem:[%s6409_s1 + $0x6c0] sm:$0xff] }
 0x4da   : > { %v2007_v18 = vadd.f32 %v3672_v25, %v5506_v63  ;;  %v3673_v1 = vpop.f32.mrb[74].mxu1  ;;  %3871 = vmatmul.mubr.msk.f32.gmra.mrb[66].mxu0 %vm592_vm1, %v2023_v47 }
 0x4db   : > { %v3674_v8 = vpop.f32.mrb[75].mxu1 }
 0x4dc   : > { %v2024_v15 = vadd.f32 %v5924_v41, %v2007_v18  ;;  %v3675_v42 = vadd.f32 %v3674_v8, %v3673_v1  ;;  %v2044_v18 = vld [vmem:[%s6409_s1 + $0x970] ss:$0 sm:$0xff] }
 0x4de   : > { %v2008_v3 = vadd.f32 %v3675_v42, %v5513_v27  ;;  %3873 = vmatprep.mubr.msk.f32.mxu0 %vm592_vm1, %v2024_v15 }
 0x4df   : > { %v3676_v9 = vpop.f32.mrb[76].mxu1 }
 0x4e0   : > { %v2025_v16 = vadd.f32 %v5924_v41, %v2008_v3  ;;  %v3677_v55 = vpop.f32.mrb[77].mxu1 }
 0x4e1   : > { %v3678_v35 = vadd.f32 %v3677_v55, %v3676_v9 }
 0x4e2   : > { %3874 = vmatmul.mubr.msk.f32.gmra.mrb[68].mxu0 %vm592_vm1, %v2025_v16 }
 0x4e3   : > { %v2009_v63 = vadd.f32 %v3678_v35, %v5520_v48 }
 0x4e5   : > { %v2026_v4 = vadd.f32 %v5924_v41, %v2009_v63  ;;  %v3679_v34 = vpop.f32.mrb[78].mxu1 }
 0x4e6   : > { %v3680_v39 = vpop.f32.mrb[79].mxu1 }
 0x4e7   : > { %v3681_v44 = vadd.f32 %v3680_v39, %v3679_v34  ;;  %3876 = vmatprep.mubr.msk.f32.mxu0 %vm592_vm1, %v2026_v4 }
 0x4e9   : > { %v2010_v27 = vadd.f32 %v3681_v44, %v5527_v60 }
 0x4eb   : > { %v2027_v30 = vadd.f32 %v5924_v41, %v2010_v27 }
 0x4ed   : > { %3877 = vmatmul.mubr.msk.f32.gmra.mrb[70].mxu0 %vm592_vm1, %v2027_v30 }
 0x4f6   : > { %v3682_v31 = vpop.f32.mrb[80].mxu1 }
 0x4f7   : > { %v3683_v6 = vpop.f32.mrb[81].mxu1 }
 0x4f8   : > { %v3684_v10 = vadd.f32 %v3683_v6, %v3682_v31 }
 0x4fa   : > { %v2011_v28 = vadd.f32 %v3684_v10, %v5534_v0  ;;  %v3685_v61 = vpop.f32.mrb[82].mxu1 }
 0x4fb   : > { %v3686_v48 = vpop.f32.mrb[83].mxu1 }
 0x4fc   : > { %v2028_v52 = vadd.f32 %v5924_v41, %v2011_v28  ;;  %v3687_v19 = vadd.f32 %v3686_v48, %v3685_v61 }
 0x4fe   : > { %v2012_v24 = vadd.f32 %v3687_v19, %v5541_v36  ;;  %v3688_v54 = vpop.f32.mrb[84].mxu1  ;;  %3879 = vmatprep.mubr.msk.f32.mxu0 %vm592_vm1, %v2028_v52 }
 0x4ff   : > { %v3689_v60 = vpop.f32.mrb[85].mxu1 }
 0x500   : > { %v2029_v46 = vadd.f32 %v5924_v41, %v2012_v24  ;;  %v3690_v17 = vadd.f32 %v3689_v60, %v3688_v54 }
 0x502   : > { %v2013_v12 = vadd.f32 %v3690_v17, %v5548_v53  ;;  %v3691_v51 = vpop.f32.mrb[86].mxu1  ;;  %3880 = vmatmul.mubr.msk.f32.gmra.mrb[72].mxu0 %vm592_vm1, %v2029_v46 }
 0x503   : > { %v3692_v0 = vpop.f32.mrb[87].mxu1 }
 0x504   : > { %v2030_v40 = vadd.f32 %v5924_v41, %v2013_v12  ;;  %v3693_v32 = vadd.f32 %v3692_v0, %v3691_v51 }
 0x506   : > { %v2014_v20 = vadd.f32 %v3693_v32, %v5555_v50  ;;  %v3694_v29 = vpop.f32.mrb[88].mxu1  ;;  %3882 = vmatprep.mubr.msk.f32.mxu0 %vm592_vm1, %v2030_v40  ;;  %v2583_v40 = vld [vmem:[%s6409_s1 + $0x700] sm:$0xff]  ;;  %v2584_v32 = vld [vmem:[%s6409_s1 + $0x710] sm:$0xff] }
 0x507   : > { %v3695_v36 = vpop.f32.mrb[89].mxu1 }
 0x508   : > { %v2031_v2 = vadd.f32 %v5924_v41, %v2014_v20  ;;  %v3696_v33 = vadd.f32 %v3695_v36, %v3694_v29  ;;  %v4253_v20 = vpack.c.bf16 %v2584_v32, %v2583_v40  ;;  %v2585_v29 = vld [vmem:[%s6409_s1 + $0x720] sm:$0xff]  ;;  %v2586_v36 = vld [vmem:[%s6409_s1 + $0x730] sm:$0xff] }
 0x50a   : > { %v2015_v56 = vadd.f32 %v3696_v33, %v5562_v62  ;;  %v3697_v43 = vpop.f32.mrb[90].mxu1  ;;  %3883 = vmatmul.mubr.msk.f32.gmra.mrb[74].mxu0 %vm592_vm1, %v2031_v2  ;;  %v4257_v2 = vpack.c.bf16 %v2586_v36, %v2585_v29  ;;  %v2587_v33 = vld [vmem:[%s6409_s1 + $0x740] sm:$0xff] }
 0x50b   : > { %v3698_v53 = vpop.f32.mrb[91].mxu1 }
 0x50c   : > { %v2032_v14 = vadd.f32 %v5924_v41, %v2015_v56  ;;  %v3699_v23 = vadd.f32 %v3698_v53, %v3697_v43  ;;  %v2588_v56 = vld [vmem:[%s6409_s1 + $0x750] sm:$0xff]  ;;  %v2589_v53 = vld [vmem:[%s6409_s1 + $0x760] sm:$0xff] }
 0x50d   : > { %v4261_v43 = vpack.c.bf16 %v2588_v56, %v2587_v33 }
 0x50e   : > { %v2016_v7 = vadd.f32 %v3699_v23, %v5569_v45  ;;  %v3700_v22 = vpop.f32.mrb[92].mxu1  ;;  %3885 = vmatprep.mubr.msk.f32.mxu0 %vm592_vm1, %v2032_v14  ;;  %v2590_v14 = vld [vmem:[%s6409_s1 + $0x770] sm:$0xff] }
 0x50f   : > { %v3701_v50 = vpop.f32.mrb[93].mxu1  ;;  %v4265_v23 = vpack.c.bf16 %v2590_v14, %v2589_v53 }
 0x510   : > { %v2033_v58 = vadd.f32 %v5924_v41, %v2016_v7  ;;  %v3702_v26 = vadd.f32 %v3701_v50, %v3700_v22  ;;  %v2591_v7 = vld [vmem:[%s6409_s1 + $0x780] sm:$0xff]  ;;  %v2592_v22 = vld [vmem:[%s6409_s1 + $0x790] sm:$0xff] }
 0x511   : > { %v4269_v50 = vpack.c.bf16 %v2592_v22, %v2591_v7 }
 0x512   : > { %v2017_v38 = vadd.f32 %v3702_v26, %v5576_v5  ;;  %v3703_v57 = vpop.f32.mrb[94].mxu1  ;;  %3886 = vmatmul.mubr.msk.f32.gmra.mrb[76].mxu0 %vm592_vm1, %v2033_v58  ;;  %v2241_v5 = vld [vmem:[%s6409_s1 + $0x6d0] sm:$0xff]  ;;  %v2593_v58 = vld [vmem:[%s6409_s1 + $0x7a0] sm:$0xff] }
 0x513   : > { %v3704_v62 = vpop.f32.mrb[95].mxu1  ;;  %v4245_v47 = vpack.c.bf16 %v2241_v5, %v2240_v21  ;;  %v2594_v26 = vld [vmem:[%s6409_s1 + $0x7b0] sm:$0xff]  ;;  %v6104_v21 = vld [vmem:[%s6409_s1 + $0x980] ss:$0 sm:$0xff] }
 0x514   : > { %v2034_v59 = vadd.f32 %v5924_v41, %v2017_v38  ;;  %v3705_v37 = vadd.f32 %v3704_v62, %v3703_v57  ;;  %v4273_v38 = vpack.c.bf16 %v2594_v26, %v2593_v58  ;;  %v2595_v57 = vld [vmem:[%s6409_s1 + $0x7c0] sm:$0xff]  ;;  %v2596_v62 = vld [vmem:[%s6409_s1 + $0x7d0] sm:$0xff] }
 0x515   : > { %4246 = vmatprep.subr.bf16.mxu0 %v4245_v47 }
 0x516   : > { %v2018_v49 = vadd.f32 %v3705_v37, %v5583_v11  ;;  %3888 = vmatprep.mubr.msk.f32.mxu0 %vm592_vm1, %v2034_v59  ;;  %4248 = vmatpush3.bf16.msra.mxu0 %v4245_v47  ;;  %v2581_v11 = vld [vmem:[%s6409_s1 + $0x6e0] sm:$0xff]  ;;  %v4277_v59 = vpack.c.bf16 %v2596_v62, %v2595_v57 }
 0x517   : > { %v2775_v37 = vld [vmem:[%s6409_s1 + $0x7e0] sm:$0xff] }
 0x518   : > { %v2035_v45 = vadd.f32 %v5924_v41, %v2018_v49  ;;  %v2582_v41 = vld [vmem:[%s6409_s1 + $0x6f0] sm:$0xff] }
 0x519   : > { %v4249_v25 = vpack.c.bf16 %v2582_v41, %v2581_v11  ;;  %v2776_v49 = vld [vmem:[%s6409_s1 + $0x7f0] sm:$0xff] }
 0x51a   : > { %3889 = vmatmul.mubr.msk.f32.gmra.mrb[78].mxu0 %vm592_vm1, %v2035_v45  ;;  %v4281_v45 = vpack.c.bf16 %v2776_v49, %v2775_v37 }
 0x51b   : > { %4250 = vmatprep.subr.bf16.mxu1 %v4249_v25 }
 0x51c   : > { %4252 = vmatpush3.bf16.msra.mxu1 %v4249_v25  ;;  %4282 = vmatprep.subr.bf16.mxu0 %v4281_v45 }
 0x51d   : > { %4254 = vmatprep.subr.bf16.mxu1 %v4253_v20 }
 0x520   : > { %4256 = vmatpush3.bf16.msra.mxu1 %v4253_v20 }
 0x521   : > { %4258 = vmatprep.subr.bf16.mxu1 %v4257_v2 }
 0x524   : > { %4260 = vmatpush3.bf16.msra.mxu1 %v4257_v2 }
 0x525   : > { %4262 = vmatprep.subr.bf16.mxu1 %v4261_v43 }
 0x528   : > { %4264 = vmatpush3.bf16.msra.mxu1 %v4261_v43 }
 0x529   : > { %4266 = vmatprep.subr.bf16.mxu1 %v4265_v23 }
 0x52c   : > { %4268 = vmatpush3.bf16.msra.mxu1 %v4265_v23 }
 0x52d   : > { %4270 = vmatprep.subr.bf16.mxu1 %v4269_v50 }
 0x530   : > { %4272 = vmatpush3.bf16.msra.mxu1 %v4269_v50 }
 0x531   : > { %4274 = vmatprep.subr.bf16.mxu1 %v4273_v38 }
 0x534   : > { %4276 = vmatpush3.bf16.msra.mxu1 %v4273_v38 }
 0x535   : > { %4278 = vmatprep.subr.bf16.mxu1 %v4277_v59 }
 0x538   : > { %4280 = vmatpush3.bf16.msra.mxu1 %v4277_v59 }
 0x597   : > { %v3869_v1 = vpop.f32.mrb[64].mxu0 }
 0x598   : > { %v2159_v8 = vpop.f32.mrb[65].mxu0  ;;  %v5991_v42 = vadd.f32 %v3869_v1, %v2044_v18 }
 0x599   : > { %v5989_v15 = vadd.f32 %v2159_v8, %v2044_v18 }
 0x59b   : > { %3899 = vmatprep.mubr.msk.f32.mxu0 %vm2243_vm2, %v5989_v15 }
 0x59c   : > { %3900 = vmatmul.mubr.msk.f32.vlgmr.msra.gmra.mrb[80].mxu0 %vm2243_vm2, %v5991_v42 }
 0x59d   : > { %4284 = vmatpush3.bf16.msra.mxu0 %v4281_v45 }
 0x5ad   : > { %v3872_v3 = vpop.f32.mrb[66].mxu0 }
 0x5ae   : > { %v2169_v9 = vpop.f32.mrb[67].mxu0  ;;  %v5999_v55 = vadd.f32 %v3872_v3, %v2044_v18 }
 0x5af   : > { %v5997_v16 = vadd.f32 %v2169_v9, %v2044_v18 }
 0x5b1   : > { %3902 = vmatprep.mubr.msk.f32.mxu0 %vm2243_vm2, %v5997_v16 }
 0x5b2   : > { %3903 = vmatmul.mubr.msk.f32.gmra.mrb[82].mxu0 %vm2243_vm2, %v5999_v55 }
 0x5b5   : > { %v3875_v35 = vpop.f32.mrb[68].mxu0 }
 0x5b6   : > { %v2179_v63 = vpop.f32.mrb[69].mxu0  ;;  %v6007_v34 = vadd.f32 %v3875_v35, %v2044_v18 }
 0x5b7   : > { %v6005_v4 = vadd.f32 %v2179_v63, %v2044_v18 }
 0x5b9   : > { %3905 = vmatprep.mubr.msk.f32.mxu0 %vm2243_vm2, %v6005_v4 }
 0x5ba   : > { %3906 = vmatmul.mubr.msk.f32.gmra.mrb[84].mxu0 %vm2243_vm2, %v6007_v34 }
 0x5c0   : > { %v3878_v39 = vpop.f32.mrb[70].mxu0 }
 0x5c1   : > { %v2189_v44 = vpop.f32.mrb[71].mxu0  ;;  %v6015_v30 = vadd.f32 %v3878_v39, %v2044_v18 }
 0x5c2   : > { %v6013_v27 = vadd.f32 %v2189_v44, %v2044_v18 }
 0x5c4   : > { %3908 = vmatprep.mubr.msk.f32.mxu0 %vm2243_vm2, %v6013_v27 }
 0x5c5   : > { %3909 = vmatmul.mubr.msk.f32.gmra.mrb[86].mxu0 %vm2243_vm2, %v6015_v30 }
 0x5d5   : > { %v3881_v31 = vpop.f32.mrb[72].mxu0 }
 0x5d6   : > { %v2199_v6 = vpop.f32.mrb[73].mxu0  ;;  %v6023_v28 = vadd.f32 %v3881_v31, %v2044_v18 }
 0x5d7   : > { %v6021_v10 = vadd.f32 %v2199_v6, %v2044_v18 }
 0x5d9   : > { %3911 = vmatprep.mubr.msk.f32.mxu0 %vm2243_vm2, %v6021_v10 }
 0x5da   : > { %3912 = vmatmul.mubr.msk.f32.gmra.mrb[88].mxu0 %vm2243_vm2, %v6023_v28 }
 0x5dd   : > { %v3884_v61 = vpop.f32.mrb[74].mxu0 }
 0x5de   : > { %v2209_v48 = vpop.f32.mrb[75].mxu0  ;;  %v6031_v19 = vadd.f32 %v3884_v61, %v2044_v18 }
 0x5df   : > { %v6029_v52 = vadd.f32 %v2209_v48, %v2044_v18 }
 0x5e1   : > { %3914 = vmatprep.mubr.msk.f32.mxu0 %vm2243_vm2, %v6029_v52 }
 0x5e2   : > { %3915 = vmatmul.mubr.msk.f32.gmra.mrb[90].mxu0 %vm2243_vm2, %v6031_v19 }
 0x5e5   : > { %v3887_v24 = vpop.f32.mrb[76].mxu0 }
 0x5e6   : > { %v2219_v54 = vpop.f32.mrb[77].mxu0  ;;  %v6039_v46 = vadd.f32 %v3887_v24, %v2044_v18 }
 0x5e7   : > { %v6037_v60 = vadd.f32 %v2219_v54, %v2044_v18 }
 0x5e9   : > { %3917 = vmatprep.mubr.msk.f32.mxu0 %vm2243_vm2, %v6037_v60 }
 0x5ea   : > { %3918 = vmatmul.mubr.msk.f32.gmra.mrb[92].mxu0 %vm2243_vm2, %v6039_v46 }
 0x5ed   : > { %v3890_v17 = vpop.f32.mrb[78].mxu0 }
 0x5ee   : > { %v2229_v12 = vpop.f32.mrb[79].mxu0  ;;  %v6047_v0 = vadd.f32 %v3890_v17, %v2044_v18 }
 0x5ef   : > { %v6045_v51 = vadd.f32 %v2229_v12, %v2044_v18 }
 0x5f1   : > { %3920 = vmatprep.mubr.msk.f32.mxu0 %vm2243_vm2, %v6045_v51 }
 0x5f2   : > { %3921 = vmatmul.mubr.msk.f32.gmra.mrb[94].mxu0 %vm2243_vm2, %v6047_v0 }
 0x66f   : > { %v3901_v5 = vpop.f32.mrb[80].mxu0 }
 0x670   : > { %v2364_v47 = vadd.f32 %v3901_v5, %v6104_v21  ;;  %v2358_v11 = vpop.f32.mrb[81].mxu0 }
 0x671   : > { %v2359_v41 = vadd.f32 %v2358_v11, %v6104_v21 }
 0x672   : > { %v2438_v25 = vmul.f32 %v2364_v47, %v2364_v47 }
 0x673   : > { %v2437_v18 = vmul.f32 %v2359_v41, %v2359_v41 }
 0x674   : > { %v2454_v1 = vmul.f32 %v2438_v25, %v2364_v47 }
 0x675   : > { %v2453_v8 = vmul.f32 %v2437_v18, %v2359_v41 }
 0x676   : > { %v2470_v3 = vmul.f32 0.044715, %v2454_v1 }
 0x677   : > { %v2469_v9 = vmul.f32 0.044715, %v2453_v8 }
 0x678   : > { %v2486_v35 = vadd.f32 %v2470_v3, %v2364_v47 }
 0x679   : > { %v2485_v63 = vadd.f32 %v2469_v9, %v2359_v41 }
 0x67a   : > { %v2502_v39 = vmul.f32 0.7978846, %v2486_v35 }
 0x67b   : > { %v2501_v44 = vmul.f32 0.7978846, %v2485_v63 }
 0x67c   : > { %4516 = vtanh.f32 %v2502_v39 }
 0x67d   : > { %4518 = vtanh.f32 %v2501_v44 }
 0x685   : > { %v3904_v6 = vpop.f32.mrb[82].mxu0 }
 0x686   : > { %v4517_v31 = vpop.eup %4516  ;;  %v2374_v24 = vadd.f32 %v3904_v6, %v6104_v21  ;;  %v2368_v54 = vpop.f32.mrb[83].mxu0 }
 0x687   : > { %v4519_v61 = vpop.eup %4518  ;;  %v2534_v48 = vadd.f32 1.0, %v4517_v31  ;;  %v2369_v17 = vadd.f32 %v2368_v54, %v6104_v21 }
 0x688   : > { %v2533_v12 = vadd.f32 1.0, %v4519_v61  ;;  %v2440_v32 = vmul.f32 %v2374_v24, %v2374_v24 }
 0x689   : > { %v2550_v40 = vmul.f32 0.5, %v2534_v48  ;;  %v2439_v20 = vmul.f32 %v2369_v17, %v2369_v17 }
 0x68a   : > { %v2549_v29 = vmul.f32 0.5, %v2533_v12  ;;  %v2456_v36 = vmul.f32 %v2440_v32, %v2374_v24 }
 0x68b   : > { %v2455_v2 = vmul.f32 %v2439_v20, %v2369_v17  ;;  %v2566_v56 = vmul.f32 %v2550_v40, %v2364_v47 }
 0x68c   : > { %v2565_v33 = vmul.f32 %v2549_v29, %v2359_v41  ;;  %v2472_v43 = vmul.f32 0.044715, %v2456_v36 }
 0x68d   : > { %v2471_v53 = vmul.f32 0.044715, %v2455_v2  ;;  %v3907_v14 = vpop.f32.mrb[84].mxu0 }
 0x68e   : > { %3955 = vmatprep.mubr.f32.mxu1 %v2565_v33  ;;  %v2488_v23 = vadd.f32 %v2472_v43, %v2374_v24  ;;  %v2384_v7 = vadd.f32 %v3907_v14, %v6104_v21  ;;  %v2378_v22 = vpop.f32.mrb[85].mxu0 }
 0x68f   : > { %3956 = vmatmul.mubr.f32.vlgmr.msra.gmra.mrb[96].mxu1 %v2566_v56  ;;  %v2487_v50 = vadd.f32 %v2471_v53, %v2369_v17  ;;  %v2379_v58 = vadd.f32 %v2378_v22, %v6104_v21 }
 0x690   : > { %v2504_v26 = vmul.f32 0.7978846, %v2488_v23  ;;  %v2442_v38 = vmul.f32 %v2384_v7, %v2384_v7 }
 0x691   : > { %v2503_v57 = vmul.f32 0.7978846, %v2487_v50  ;;  %v2441_v62 = vmul.f32 %v2379_v58, %v2379_v58 }
 0x692   : > { %v2458_v59 = vmul.f32 %v2442_v38, %v2384_v7  ;;  %4520 = vtanh.f32 %v2504_v26 }
 0x693   : > { %v2457_v37 = vmul.f32 %v2441_v62, %v2379_v58  ;;  %4522 = vtanh.f32 %v2503_v57 }
 0x694   : > { %v2474_v49 = vmul.f32 0.044715, %v2458_v59 }
 0x695   : > { %v2473_v45 = vmul.f32 0.044715, %v2457_v37 }
 0x696   : > { %v2490_v5 = vadd.f32 %v2474_v49, %v2384_v7 }
 0x697   : > { %v2489_v47 = vadd.f32 %v2473_v45, %v2379_v58 }
 0x698   : > { %v2506_v11 = vmul.f32 0.7978846, %v2490_v5  ;;  %v3910_v41 = vpop.f32.mrb[86].mxu0 }
 0x699   : > { %v2505_v25 = vmul.f32 0.7978846, %v2489_v47  ;;  %v2394_v18 = vadd.f32 %v3910_v41, %v6104_v21  ;;  %v2388_v1 = vpop.f32.mrb[87].mxu0 }
 0x69a   : > { %v2389_v8 = vadd.f32 %v2388_v1, %v6104_v21  ;;  %4524 = vtanh.f32 %v2506_v11 }
 0x69b   : > { %v2444_v3 = vmul.f32 %v2394_v18, %v2394_v18  ;;  %4526 = vtanh.f32 %v2505_v25 }
 0x69c   : > { %v4521_v9 = vpop.eup %4520  ;;  %v2443_v35 = vmul.f32 %v2389_v8, %v2389_v8 }
 0x69d   : > { %v4523_v63 = vpop.eup %4522  ;;  %v2460_v39 = vmul.f32 %v2444_v3, %v2394_v18  ;;  %v2536_v44 = vadd.f32 1.0, %v4521_v9 }
 0x69e   : > { %v2459_v31 = vmul.f32 %v2443_v35, %v2389_v8  ;;  %v2535_v6 = vadd.f32 1.0, %v4523_v63 }
 0x69f   : > { %v2476_v61 = vmul.f32 0.044715, %v2460_v39  ;;  %v2552_v48 = vmul.f32 0.5, %v2536_v44 }
 0x6a0   : > { %v2475_v54 = vmul.f32 0.044715, %v2459_v31  ;;  %v2551_v12 = vmul.f32 0.5, %v2535_v6 }
 0x6a1   : > { %v2492_v40 = vadd.f32 %v2476_v61, %v2394_v18  ;;  %v2568_v36 = vmul.f32 %v2552_v48, %v2374_v24 }
 0x6a2   : > { %v2491_v32 = vadd.f32 %v2475_v54, %v2389_v8  ;;  %v2567_v20 = vmul.f32 %v2551_v12, %v2369_v17 }
 0x6a3   : > { %v2508_v29 = vmul.f32 0.7978846, %v2492_v40 }
 0x6a4   : > { %v4525_v2 = vpop.eup %4524  ;;  %v2507_v33 = vmul.f32 0.7978846, %v2491_v32  ;;  %3958 = vmatprep.mubr.f32.mxu1 %v2567_v20 }
 0x6a5   : > { %v4527_v56 = vpop.eup %4526  ;;  %3959 = vmatmul.mubr.f32.gmra.mrb[98].mxu1 %v2568_v36  ;;  %v2538_v43 = vadd.f32 1.0, %v4525_v2  ;;  %4528 = vtanh.f32 %v2508_v29 }
 0x6a6   : > { %v2537_v53 = vadd.f32 1.0, %v4527_v56  ;;  %4530 = vtanh.f32 %v2507_v33 }
 0x6a7   : > { %v2554_v14 = vmul.f32 0.5, %v2538_v43 }
 0x6a8   : > { %v2553_v23 = vmul.f32 0.5, %v2537_v53 }
 0x6a9   : > { %v2570_v50 = vmul.f32 %v2554_v14, %v2384_v7 }
 0x6aa   : > { %v2569_v22 = vmul.f32 %v2553_v23, %v2379_v58 }
 0x6ac   : > { %3961 = vmatprep.mubr.f32.mxu1 %v2569_v22 }
 0x6ad   : > { %v3913_v26 = vpop.f32.mrb[88].mxu0  ;;  %3962 = vmatmul.mubr.f32.gmra.mrb[100].mxu1 %v2570_v50 }
 0x6ae   : > { %v6115_v17 = vadd.f32 %v3913_v26, %v6104_v21  ;;  %v2398_v24 = vpop.f32.mrb[89].mxu0 }
 0x6af   : > { %v4529_v38 = vpop.eup %4528  ;;  %v6118_v57 = vadd.f32 %v2398_v24, %v6104_v21 }
 0x6b0   : > { %v4531_v62 = vpop.eup %4530  ;;  %v2446_v59 = vmul.f32 %v6115_v17, %v6115_v17  ;;  %v2540_v37 = vadd.f32 1.0, %v4529_v38 }
 0x6b1   : > { %v2445_v58 = vmul.f32 %v6118_v57, %v6118_v57  ;;  %v2539_v7 = vadd.f32 1.0, %v4531_v62 }
 0x6b2   : > { %v2462_v49 = vmul.f32 %v2446_v59, %v6115_v17  ;;  %v2556_v45 = vmul.f32 0.5, %v2540_v37 }
 0x6b3   : > { %v2461_v5 = vmul.f32 %v2445_v58, %v6118_v57  ;;  %v2555_v47 = vmul.f32 0.5, %v2539_v7 }
 0x6b4   : > { %v2478_v11 = vmul.f32 0.044715, %v2462_v49  ;;  %v2572_v63 = vmul.f32 %v2556_v45, %v2394_v18 }
 0x6b5   : > { %v2477_v41 = vmul.f32 0.044715, %v2461_v5  ;;  %v3916_v25 = vpop.f32.mrb[90].mxu0  ;;  %v2571_v1 = vmul.f32 %v2555_v47, %v2389_v8 }
 0x6b6   : > { %v2494_v3 = vadd.f32 %v2478_v11, %v6115_v17  ;;  %v6128_v9 = vadd.f32 %v3916_v25, %v6104_v21  ;;  %v2408_v35 = vpop.f32.mrb[91].mxu0 }
 0x6b7   : > { %v2493_v39 = vadd.f32 %v2477_v41, %v6118_v57  ;;  %v6132_v44 = vadd.f32 %v2408_v35, %v6104_v21  ;;  %3964 = vmatprep.mubr.f32.mxu1 %v2571_v1 }
 0x6b8   : > { %v2510_v31 = vmul.f32 0.7978846, %v2494_v3  ;;  %v2448_v6 = vmul.f32 %v6128_v9, %v6128_v9  ;;  %3965 = vmatmul.mubr.f32.gmra.mrb[102].mxu1 %v2572_v63 }
 0x6b9   : > { %v2509_v61 = vmul.f32 0.7978846, %v2493_v39  ;;  %v2447_v8 = vmul.f32 %v6132_v44, %v6132_v44 }
 0x6ba   : > { %v2464_v48 = vmul.f32 %v2448_v6, %v6128_v9  ;;  %4532 = vtanh.f32 %v2510_v31 }
 0x6bb   : > { %v2463_v18 = vmul.f32 %v2447_v8, %v6132_v44  ;;  %4534 = vtanh.f32 %v2509_v61 }
 0x6bc   : > { %v2480_v54 = vmul.f32 0.044715, %v2464_v48 }
 0x6bd   : > { %v2479_v12 = vmul.f32 0.044715, %v2463_v18  ;;  %v3919_v40 = vpop.f32.mrb[92].mxu0 }
 0x6be   : > { %v2496_v32 = vadd.f32 %v2480_v54, %v6128_v9  ;;  %v6142_v20 = vadd.f32 %v3919_v40, %v6104_v21  ;;  %v2418_v29 = vpop.f32.mrb[93].mxu0 }
 0x6bf   : > { %v2495_v36 = vadd.f32 %v2479_v12, %v6132_v44  ;;  %v2419_v2 = vadd.f32 %v2418_v29, %v6104_v21 }
 0x6c0   : > { %v2512_v33 = vmul.f32 0.7978846, %v2496_v32  ;;  %v2450_v56 = vmul.f32 %v6142_v20, %v6142_v20 }
 0x6c1   : > { %v2511_v43 = vmul.f32 0.7978846, %v2495_v36  ;;  %v2449_v53 = vmul.f32 %v2419_v2, %v2419_v2 }
 0x6c2   : > { %v2466_v14 = vmul.f32 %v2450_v56, %v6142_v20  ;;  %4536 = vtanh.f32 %v2512_v33 }
 0x6c3   : > { %v2465_v23 = vmul.f32 %v2449_v53, %v2419_v2  ;;  %4538 = vtanh.f32 %v2511_v43 }
 0x6c4   : > { %v4533_v22 = vpop.eup %4532  ;;  %v2482_v50 = vmul.f32 0.044715, %v2466_v14 }
 0x6c5   : > { %v4535_v26 = vpop.eup %4534  ;;  %v2481_v24 = vmul.f32 0.044715, %v2465_v23  ;;  %v3922_v38 = vpop.f32.mrb[94].mxu0  ;;  %v2542_v62 = vadd.f32 1.0, %v4533_v22 }
 0x6c6   : > { %v2498_v59 = vadd.f32 %v2482_v50, %v6142_v20  ;;  %v2434_v37 = vadd.f32 %v3922_v38, %v6104_v21  ;;  %v2428_v58 = vpop.f32.mrb[95].mxu0  ;;  %v2541_v7 = vadd.f32 1.0, %v4535_v26 }
 0x6c7   : > { %v2497_v49 = vadd.f32 %v2481_v24, %v2419_v2  ;;  %v2429_v45 = vadd.f32 %v2428_v58, %v6104_v21  ;;  %v2558_v5 = vmul.f32 0.5, %v2542_v62  ;;  %v2777_v58 = vld [vmem:[%s6409_s1 + $0x800] sm:$0xff] }
 0x6c8   : > { %v2514_v47 = vmul.f32 0.7978846, %v2498_v59  ;;  %v2452_v11 = vmul.f32 %v2434_v37, %v2434_v37  ;;  %v2557_v41 = vmul.f32 0.5, %v2541_v7  ;;  %v6440_v7 = vmov 0.0|0.0  }
 0x6c9   : > { %v2513_v25 = vmul.f32 0.7978846, %v2497_v49  ;;  %v2451_v1 = vmul.f32 %v2429_v45, %v2429_v45  ;;  %v2574_v39 = vmul.f32 %v2558_v5, %v6115_v17 }
 0x6ca   : > { %v2468_v3 = vmul.f32 %v2452_v11, %v2434_v37  ;;  %v2573_v35 = vmul.f32 %v2557_v41, %v6118_v57  ;;  %4540 = vtanh.f32 %v2514_v47 }
 0x6cb   : > { %v2467_v63 = vmul.f32 %v2451_v1, %v2429_v45  ;;  %4542 = vtanh.f32 %v2513_v25 }
 0x6cc   : > { %v4537_v31 = vpop.eup %4536  ;;  %v2484_v6 = vmul.f32 0.044715, %v2468_v3  ;;  %3967 = vmatprep.mubr.f32.mxu1 %v2573_v35 }
 0x6cd   : > { %v4539_v61 = vpop.eup %4538  ;;  %v2483_v8 = vmul.f32 0.044715, %v2467_v63  ;;  %3968 = vmatmul.mubr.f32.gmra.mrb[104].mxu1 %v2574_v39  ;;  %v2544_v21 = vadd.f32 1.0, %v4537_v31 }
 0x6ce   : > { %v2500_v48 = vadd.f32 %v2484_v6, %v2434_v37  ;;  %v2543_v18 = vadd.f32 1.0, %v4539_v61 }
 0x6cf   : > { %v2499_v54 = vadd.f32 %v2483_v8, %v2429_v45  ;;  %v2560_v12 = vmul.f32 0.5, %v2544_v21 }
 0x6d0   : > { %v2516_v40 = vmul.f32 0.7978846, %v2500_v48  ;;  %v2559_v32 = vmul.f32 0.5, %v2543_v18 }
 0x6d1   : > { %v2515_v29 = vmul.f32 0.7978846, %v2499_v54  ;;  %v2576_v17 = vmul.f32 %v2560_v12, %v6128_v9 }
 0x6d2   : > { %v2575_v57 = vmul.f32 %v2559_v32, %v6132_v44  ;;  %4544 = vtanh.f32 %v2516_v40 }
 0x6d3   : > { %4546 = vtanh.f32 %v2515_v29 }
 0x6d4   : > { %v4541_v36 = vpop.eup %4540  ;;  %3970 = vmatprep.mubr.f32.mxu1 %v2575_v57 }
 0x6d5   : > { %v4543_v33 = vpop.eup %4542  ;;  %3971 = vmatmul.mubr.f32.gmra.mrb[106].mxu1 %v2576_v17  ;;  %v2546_v56 = vadd.f32 1.0, %v4541_v36 }
 0x6d6   : > { %v2545_v43 = vadd.f32 1.0, %v4543_v33 }
 0x6d7   : > { %v2562_v53 = vmul.f32 0.5, %v2546_v56 }
 0x6d8   : > { %v2561_v14 = vmul.f32 0.5, %v2545_v43 }
 0x6d9   : > { %v2578_v22 = vmul.f32 %v2562_v53, %v6142_v20  ;;  %v2778_v20 = vld [vmem:[%s6409_s1 + $0x810] sm:$0xff] }
 0x6da   : > { %v2577_v23 = vmul.f32 %v2561_v14, %v2419_v2  ;;  %v4285_v2 = vpack.c.bf16 %v2778_v20, %v2777_v58  ;;  %v3124_v58 = vld [vmem:[%s6409_s1 + $0x890] sm:$0xff] }
 0x6dc   : > { %v4545_v50 = vpop.eup %4544  ;;  %3973 = vmatprep.mubr.f32.mxu1 %v2577_v23  ;;  %4286 = vmatprep.subr.bf16.mxu0 %v4285_v2 }
 0x6dd   : > { %v4547_v26 = vpop.eup %4546  ;;  %3974 = vmatmul.mubr.f32.gmra.mrb[108].mxu1 %v2578_v22  ;;  %v2548_v44 = vadd.f32 1.0, %v4545_v50  ;;  %4288 = vmatpush3.bf16.msra.mxu0 %v4285_v2  ;;  %v3125_v2 = vld [vmem:[%s6409_s1 + $0x8a0] sm:$0xff] }
 0x6de   : > { %v2547_v24 = vadd.f32 1.0, %v4547_v26  ;;  %4321 = vmatprep.subr.bf16.mxu0 %v6440_v7 }
 0x6df   : > { %v2564_v38 = vmul.f32 0.5, %v2548_v44  ;;  %v3120_v44 = vld [vmem:[%s6409_s1 + $0x850] sm:$0xff] }
 0x6e0   : > { %v2563_v9 = vmul.f32 0.5, %v2547_v24 }
 0x6e1   : > { %v2580_v59 = vmul.f32 %v2564_v38, %v2434_v37  ;;  %v2758_v37 = vld [vmem:[%s6409_s1 + $0x990] ss:$0 sm:$0xff]  ;;  %v3121_v38 = vld [vmem:[%s6409_s1 + $0x860] sm:$0xff] }
 0x6e2   : > { %v2579_v62 = vmul.f32 %v2563_v9, %v2429_v45  ;;  %v3122_v9 = vld [vmem:[%s6409_s1 + $0x870] sm:$0xff] }
 0x6e4   : > { %3976 = vmatprep.mubr.f32.mxu1 %v2579_v62  ;;  %v4297_v62 = vpack.c.bf16 %v3122_v9, %v3121_v38 }
 0x6e5   : > { %3977 = vmatmul.mubr.f32.gmra.mrb[110].mxu1 %v2580_v59  ;;  %v3123_v59 = vld [vmem:[%s6409_s1 + $0x880] sm:$0xff] }
 0x6e6   : > { %v4301_v20 = vpack.c.bf16 %v3124_v58, %v3123_v59 }
 0x762   : > { %v3957_v49 = vpop.f32.mrb[96].mxu1 }
 0x763   : > { %v2743_v5 = vadd.f32 %v3957_v49, %v5991_v42  ;;  %v2663_v45 = vpop.f32.mrb[97].mxu1  ;;  %v3126_v49 = vld [vmem:[%s6409_s1 + $0x8b0] sm:$0xff] }
 0x764   : > { %v2742_v47 = vadd.f32 %v2663_v45, %v5989_v15  ;;  %v3128_v45 = vld [vmem:[%s6409_s1 + $0x8d0] sm:$0xff] }
 0x765   : > { %v6171_v41 = vadd.f32 %v2758_v37, %v2743_v5  ;;  %v4305_v5 = vpack.c.bf16 %v3126_v49, %v3125_v2 }
 0x766   : > { %v6169_v11 = vadd.f32 %v2758_v37, %v2742_v47 }
 0x768   : > { %3987 = vmatprep.mubr.msk.f32.mxu0 %vm2243_vm2, %v6169_v11 }
 0x769   : > { %3988 = vmatmul.mubr.msk.f32.vlgmr.msra.gmra.mrb[96].mxu0 %vm2243_vm2, %v6171_v41 }
 0x778   : > { %v3960_v25 = vpop.f32.mrb[98].mxu1 }
 0x779   : > { %v2745_v42 = vadd.f32 %v3960_v25, %v5999_v55  ;;  %v2673_v1 = vpop.f32.mrb[99].mxu1  ;;  %v3129_v25 = vld [vmem:[%s6409_s1 + $0x8e0] sm:$0xff] }
 0x77a   : > { %v2744_v3 = vadd.f32 %v2673_v1, %v5997_v16 }
 0x77b   : > { %v6181_v63 = vadd.f32 %v2758_v37, %v2745_v42  ;;  %v3130_v42 = vld [vmem:[%s6409_s1 + $0x8f0] sm:$0xff] }
 0x77c   : > { %v6179_v35 = vadd.f32 %v2758_v37, %v2744_v3  ;;  %v4313_v1 = vpack.c.bf16 %v3130_v42, %v3129_v25  ;;  %v3131_v3 = vld [vmem:[%s6409_s1 + $0x900] sm:$0xff] }
 0x77e   : > { %3990 = vmatprep.mubr.msk.f32.mxu0 %vm2243_vm2, %v6179_v35 }
 0x77f   : > { %3991 = vmatmul.mubr.msk.f32.gmra.mrb[98].mxu0 %vm2243_vm2, %v6181_v63 }
 0x780   : > { %v3963_v15 = vpop.f32.mrb[100].mxu1 }
 0x781   : > { %v2747_v39 = vadd.f32 %v3963_v15, %v6007_v34  ;;  %v2683_v31 = vpop.f32.mrb[101].mxu1  ;;  %v3132_v15 = vld [vmem:[%s6409_s1 + $0x910] sm:$0xff] }
 0x782   : > { %v2746_v6 = vadd.f32 %v2683_v31, %v6005_v4  ;;  %v6298_v31 = vld [vmem:[%s6409_s1 + $0x9a0] ss:$0 sm:$0xff] }
 0x783   : > { %v6191_v61 = vadd.f32 %v2758_v37, %v2747_v39  ;;  %v4317_v39 = vpack.c.bf16 %v3132_v15, %v3131_v3 }
 0x784   : > { %v6189_v55 = vadd.f32 %v2758_v37, %v2746_v6 }
 0x786   : > { %3993 = vmatprep.mubr.msk.f32.mxu0 %vm2243_vm2, %v6189_v55 }
 0x787   : > { %3994 = vmatmul.mubr.msk.f32.gmra.mrb[100].mxu0 %vm2243_vm2, %v6191_v61 }
 0x78b   : > { %v3966_v16 = vpop.f32.mrb[102].mxu1 }
 0x78c   : > { %v2749_v8 = vadd.f32 %v3966_v16, %v6015_v30  ;;  %v2693_v21 = vpop.f32.mrb[103].mxu1 }
 0x78d   : > { %v2748_v48 = vadd.f32 %v2693_v21, %v6013_v27 }
 0x78e   : > { %v6201_v18 = vadd.f32 %v2758_v37, %v2749_v8 }
 0x78f   : > { %v6199_v34 = vadd.f32 %v2758_v37, %v2748_v48 }
 0x791   : > { %3996 = vmatprep.mubr.msk.f32.mxu0 %vm2243_vm2, %v6199_v34 }
 0x792   : > { %3997 = vmatmul.mubr.msk.f32.gmra.mrb[102].mxu0 %vm2243_vm2, %v6201_v18 }
 0x7a0   : > { %v3969_v4 = vpop.f32.mrb[104].mxu1 }
 0x7a1   : > { %v2751_v54 = vadd.f32 %v3969_v4, %v6023_v28  ;;  %v2703_v12 = vpop.f32.mrb[105].mxu1 }
 0x7a2   : > { %v2750_v40 = vadd.f32 %v2703_v12, %v6021_v10 }
 0x7a3   : > { %v6211_v32 = vadd.f32 %v2758_v37, %v2751_v54 }
 0x7a4   : > { %v6209_v30 = vadd.f32 %v2758_v37, %v2750_v40 }
 0x7a6   : > { %3999 = vmatprep.mubr.msk.f32.mxu0 %vm2243_vm2, %v6209_v30 }
 0x7a7   : > { %4000 = vmatmul.mubr.msk.f32.gmra.mrb[104].mxu0 %vm2243_vm2, %v6211_v32 }
 0x7a8   : > { %v3972_v27 = vpop.f32.mrb[106].mxu1 }
 0x7a9   : > { %v2753_v29 = vadd.f32 %v3972_v27, %v6031_v19  ;;  %v2713_v57 = vpop.f32.mrb[107].mxu1 }
 0x7aa   : > { %v2752_v17 = vadd.f32 %v2713_v57, %v6029_v52 }
 0x7ab   : > { %v6221_v36 = vadd.f32 %v2758_v37, %v2753_v29 }
 0x7ac   : > { %v6219_v28 = vadd.f32 %v2758_v37, %v2752_v17 }
 0x7ae   : > { %4002 = vmatprep.mubr.msk.f32.mxu0 %vm2243_vm2, %v6219_v28 }
 0x7af   : > { %4003 = vmatmul.mubr.msk.f32.gmra.mrb[106].mxu0 %vm2243_vm2, %v6221_v36 }
 0x7b0   : > { %v3975_v10 = vpop.f32.mrb[108].mxu1 }
 0x7b1   : > { %v2755_v33 = vadd.f32 %v3975_v10, %v6039_v46  ;;  %v2723_v56 = vpop.f32.mrb[109].mxu1 }
 0x7b2   : > { %v2754_v43 = vadd.f32 %v2723_v56, %v6037_v60  ;;  %v3117_v60 = vld [vmem:[%s6409_s1 + $0x820] sm:$0xff] }
 0x7b3   : > { %v6231_v53 = vadd.f32 %v2758_v37, %v2755_v33 }
 0x7b4   : > { %v6229_v19 = vadd.f32 %v2758_v37, %v2754_v43 }
 0x7b6   : > { %4005 = vmatprep.mubr.msk.f32.mxu0 %vm2243_vm2, %v6229_v19 }
 0x7b7   : > { %4006 = vmatmul.mubr.msk.f32.gmra.mrb[108].mxu0 %vm2243_vm2, %v6231_v53 }
 0x7b8   : > { %v3978_v52 = vpop.f32.mrb[110].mxu1 }
 0x7b9   : > { %v2757_v14 = vadd.f32 %v3978_v52, %v6047_v0  ;;  %v2733_v23 = vpop.f32.mrb[111].mxu1  ;;  %v3118_v0 = vld [vmem:[%s6409_s1 + $0x830] sm:$0xff] }
 0x7ba   : > { %v2756_v22 = vadd.f32 %v2733_v23, %v6045_v51  ;;  %v3119_v51 = vld [vmem:[%s6409_s1 + $0x840] sm:$0xff]  ;;  %v4289_v26 = vpack.c.bf16 %v3118_v0, %v3117_v60 }
 0x7bb   : > { %v6241_v50 = vadd.f32 %v2758_v37, %v2757_v14  ;;  %v4293_v24 = vpack.c.bf16 %v3120_v44, %v3119_v51 }
 0x7bc   : > { %v6239_v46 = vadd.f32 %v2758_v37, %v2756_v22  ;;  %4290 = vmatprep.subr.bf16.mxu1 %v4289_v26  ;;  %v3127_v37 = vld [vmem:[%s6409_s1 + $0x8c0] sm:$0xff] }
 0x7bd   : > { %4292 = vmatpush3.bf16.msra.mxu1 %v4289_v26  ;;  %v4309_v47 = vpack.c.bf16 %v3128_v45, %v3127_v37 }
 0x7be   : > { %4008 = vmatprep.mubr.msk.f32.mxu0 %vm2243_vm2, %v6239_v46  ;;  %4294 = vmatprep.subr.bf16.mxu1 %v4293_v24 }
 0x7bf   : > { %4009 = vmatmul.mubr.msk.f32.gmra.mrb[110].mxu0 %vm2243_vm2, %v6241_v50 }
 0x7c0   : > { %4099 = vmatprep.mubr.msk.f32.mxu0 %vm4590_vm3, %v6431_v13 }
 0x7c1   : > { %4296 = vmatpush3.bf16.msra.mxu1 %v4293_v24 }
 0x7c2   : > { %4298 = vmatprep.subr.bf16.mxu1 %v4297_v62 }
 0x7c5   : > { %4300 = vmatpush3.bf16.msra.mxu1 %v4297_v62 }
 0x7c6   : > { %4302 = vmatprep.subr.bf16.mxu1 %v4301_v20 }
 0x7c9   : > { %4304 = vmatpush3.bf16.msra.mxu1 %v4301_v20 }
 0x7ca   : > { %4306 = vmatprep.subr.bf16.mxu1 %v4305_v5 }
 0x7cd   : > { %4308 = vmatpush3.bf16.msra.mxu1 %v4305_v5 }
 0x7ce   : > { %4310 = vmatprep.subr.bf16.mxu1 %v4309_v47 }
 0x7d1   : > { %4312 = vmatpush3.bf16.msra.mxu1 %v4309_v47 }
 0x7d2   : > { %4314 = vmatprep.subr.bf16.mxu1 %v4313_v1 }
 0x7d5   : > { %4316 = vmatpush3.bf16.msra.mxu1 %v4313_v1 }
 0x7d6   : > { %4318 = vmatprep.subr.bf16.mxu1 %v4317_v39 }
 0x7d9   : > { %4320 = vmatpush3.bf16.msra.mxu1 %v4317_v39 }
 0x83c   : > { %v3989_v6 = vpop.f32.mrb[96].mxu0 }
 0x83d   : > { %v2900_v16 = vadd.f32 %v3989_v6, %v6298_v31  ;;  %v2894_v8 = vpop.f32.mrb[97].mxu0 }
 0x83e   : > { %v2895_v21 = vadd.f32 %v2894_v8, %v6298_v31 }
 0x83f   : > { %v2974_v48 = vmul.f32 %v2900_v16, %v2900_v16 }
 0x840   : > { %v2973_v4 = vmul.f32 %v2895_v21, %v2895_v21 }
 0x841   : > { %v2990_v54 = vmul.f32 %v2974_v48, %v2900_v16 }
 0x842   : > { %v2989_v12 = vmul.f32 %v2973_v4, %v2895_v21 }
 0x843   : > { %v3006_v40 = vmul.f32 0.044715, %v2990_v54 }
 0x844   : > { %v3005_v27 = vmul.f32 0.044715, %v2989_v12 }
 0x845   : > { %v3022_v29 = vadd.f32 %v3006_v40, %v2900_v16 }
 0x846   : > { %v3021_v57 = vadd.f32 %v3005_v27, %v2895_v21 }
 0x847   : > { %v3038_v17 = vmul.f32 0.7978846, %v3022_v29 }
 0x848   : > { %v3037_v10 = vmul.f32 0.7978846, %v3021_v57 }
 0x849   : > { %4548 = vtanh.f32 %v3038_v17 }
 0x84a   : > { %4550 = vtanh.f32 %v3037_v10 }
 0x852   : > { %v3992_v56 = vpop.f32.mrb[98].mxu0 }
 0x853   : > { %v4549_v33 = vpop.eup %4548  ;;  %v2910_v14 = vadd.f32 %v3992_v56, %v6298_v31  ;;  %v2904_v23 = vpop.f32.mrb[99].mxu0 }
 0x854   : > { %v4551_v43 = vpop.eup %4550  ;;  %v3070_v52 = vadd.f32 1.0, %v4549_v33  ;;  %v2905_v22 = vadd.f32 %v2904_v23, %v6298_v31 }
 0x855   : > { %v3069_v60 = vadd.f32 1.0, %v4551_v43  ;;  %v2976_v51 = vmul.f32 %v2910_v14, %v2910_v14 }
 0x856   : > { %v3086_v0 = vmul.f32 0.5, %v3070_v52  ;;  %v2975_v26 = vmul.f32 %v2905_v22, %v2905_v22 }
 0x857   : > { %v3085_v44 = vmul.f32 0.5, %v3069_v60  ;;  %v2992_v24 = vmul.f32 %v2976_v51, %v2910_v14 }
 0x858   : > { %v2991_v38 = vmul.f32 %v2975_v26, %v2905_v22  ;;  %v3102_v62 = vmul.f32 %v3086_v0, %v2900_v16 }
 0x859   : > { %v3101_v9 = vmul.f32 %v3085_v44, %v2895_v21  ;;  %v3008_v59 = vmul.f32 0.044715, %v2992_v24 }
 0x85a   : > { %v3007_v58 = vmul.f32 0.044715, %v2991_v38  ;;  %v3995_v20 = vpop.f32.mrb[100].mxu0 }
 0x85b   : > { %4043 = vmatprep.mubr.f32.mxu1 %v3101_v9  ;;  %v3024_v2 = vadd.f32 %v3008_v59, %v2910_v14  ;;  %v2920_v49 = vadd.f32 %v3995_v20, %v6298_v31  ;;  %v2914_v5 = vpop.f32.mrb[101].mxu0 }
 0x85c   : > { %4044 = vmatmul.mubr.f32.vlgmr.msra.gmra.mrb[112].mxu1 %v3102_v62  ;;  %v3023_v37 = vadd.f32 %v3007_v58, %v2905_v22  ;;  %v2915_v45 = vadd.f32 %v2914_v5, %v6298_v31 }
 0x85d   : > { %v3040_v47 = vmul.f32 0.7978846, %v3024_v2  ;;  %v2978_v25 = vmul.f32 %v2920_v49, %v2920_v49 }
 0x85e   : > { %v3039_v42 = vmul.f32 0.7978846, %v3023_v37  ;;  %v2977_v1 = vmul.f32 %v2915_v45, %v2915_v45 }
 0x85f   : > { %v2994_v3 = vmul.f32 %v2978_v25, %v2920_v49  ;;  %4552 = vtanh.f32 %v3040_v47 }
 0x860   : > { %v2993_v15 = vmul.f32 %v2977_v1, %v2915_v45  ;;  %4554 = vtanh.f32 %v3039_v42 }
 0x861   : > { %v3010_v39 = vmul.f32 0.044715, %v2994_v3 }
 0x862   : > { %v3009_v6 = vmul.f32 0.044715, %v2993_v15 }
 0x863   : > { %v3026_v16 = vadd.f32 %v3010_v39, %v2920_v49 }
 0x864   : > { %v3025_v8 = vadd.f32 %v3009_v6, %v2915_v45 }
 0x865   : > { %v3042_v21 = vmul.f32 0.7978846, %v3026_v16  ;;  %v3998_v48 = vpop.f32.mrb[102].mxu0 }
 0x866   : > { %v3041_v4 = vmul.f32 0.7978846, %v3025_v8  ;;  %v2930_v54 = vadd.f32 %v3998_v48, %v6298_v31  ;;  %v2924_v12 = vpop.f32.mrb[103].mxu0 }
 0x867   : > { %v2925_v40 = vadd.f32 %v2924_v12, %v6298_v31  ;;  %4556 = vtanh.f32 %v3042_v21 }
 0x868   : > { %v2980_v27 = vmul.f32 %v2930_v54, %v2930_v54  ;;  %4558 = vtanh.f32 %v3041_v4 }
 0x869   : > { %v4553_v29 = vpop.eup %4552  ;;  %v2979_v57 = vmul.f32 %v2925_v40, %v2925_v40 }
 0x86a   : > { %v4555_v17 = vpop.eup %4554  ;;  %v2996_v10 = vmul.f32 %v2980_v27, %v2930_v54  ;;  %v3072_v33 = vadd.f32 1.0, %v4553_v29 }
 0x86b   : > { %v2995_v56 = vmul.f32 %v2979_v57, %v2925_v40  ;;  %v3071_v43 = vadd.f32 1.0, %v4555_v17 }
 0x86c   : > { %v3012_v52 = vmul.f32 0.044715, %v2996_v10  ;;  %v3088_v23 = vmul.f32 0.5, %v3072_v33 }
 0x86d   : > { %v3011_v60 = vmul.f32 0.044715, %v2995_v56  ;;  %v3087_v0 = vmul.f32 0.5, %v3071_v43 }
 0x86e   : > { %v3028_v51 = vadd.f32 %v3012_v52, %v2930_v54  ;;  %v3104_v38 = vmul.f32 %v3088_v23, %v2910_v14 }
 0x86f   : > { %v3027_v26 = vadd.f32 %v3011_v60, %v2925_v40  ;;  %v3103_v44 = vmul.f32 %v3087_v0, %v2905_v22 }
 0x870   : > { %v3044_v24 = vmul.f32 0.7978846, %v3028_v51 }
 0x871   : > { %v4557_v9 = vpop.eup %4556  ;;  %v3043_v62 = vmul.f32 0.7978846, %v3027_v26  ;;  %4046 = vmatprep.mubr.f32.mxu1 %v3103_v44 }
 0x872   : > { %v4559_v59 = vpop.eup %4558  ;;  %4047 = vmatmul.mubr.f32.gmra.mrb[114].mxu1 %v3104_v38  ;;  %v3074_v58 = vadd.f32 1.0, %v4557_v9  ;;  %4560 = vtanh.f32 %v3044_v24 }
 0x873   : > { %v3073_v20 = vadd.f32 1.0, %v4559_v59  ;;  %4562 = vtanh.f32 %v3043_v62 }
 0x874   : > { %v3090_v2 = vmul.f32 0.5, %v3074_v58 }
 0x875   : > { %v3089_v5 = vmul.f32 0.5, %v3073_v20 }
 0x876   : > { %v3106_v47 = vmul.f32 %v3090_v2, %v2920_v49 }
 0x877   : > { %v3105_v37 = vmul.f32 %v3089_v5, %v2915_v45 }
 0x879   : > { %4049 = vmatprep.mubr.f32.mxu1 %v3105_v37 }
 0x87a   : > { %v4001_v25 = vpop.f32.mrb[104].mxu0  ;;  %4050 = vmatmul.mubr.f32.gmra.mrb[116].mxu1 %v3106_v47 }
 0x87b   : > { %v6309_v22 = vadd.f32 %v4001_v25, %v6298_v31  ;;  %v2934_v14 = vpop.f32.mrb[105].mxu0 }
 0x87c   : > { %v4561_v42 = vpop.eup %4560  ;;  %v6312_v1 = vadd.f32 %v2934_v14, %v6298_v31 }
 0x87d   : > { %v4563_v3 = vpop.eup %4562  ;;  %v2982_v15 = vmul.f32 %v6309_v22, %v6309_v22  ;;  %v3076_v39 = vadd.f32 1.0, %v4561_v42 }
 0x87e   : > { %v2981_v45 = vmul.f32 %v6312_v1, %v6312_v1  ;;  %v3075_v49 = vadd.f32 1.0, %v4563_v3 }
 0x87f   : > { %v2998_v6 = vmul.f32 %v2982_v15, %v6309_v22  ;;  %v3092_v16 = vmul.f32 0.5, %v3076_v39 }
 0x880   : > { %v2997_v8 = vmul.f32 %v2981_v45, %v6312_v1  ;;  %v3091_v21 = vmul.f32 0.5, %v3075_v49 }
 0x881   : > { %v3014_v48 = vmul.f32 0.044715, %v2998_v6  ;;  %v3108_v10 = vmul.f32 %v3092_v16, %v2930_v54 }
 0x882   : > { %v3013_v4 = vmul.f32 0.044715, %v2997_v8  ;;  %v4004_v12 = vpop.f32.mrb[106].mxu0  ;;  %v3107_v27 = vmul.f32 %v3091_v21, %v2925_v40 }
 0x883   : > { %v3030_v29 = vadd.f32 %v3014_v48, %v6309_v22  ;;  %v6322_v57 = vadd.f32 %v4004_v12, %v6298_v31  ;;  %v2944_v17 = vpop.f32.mrb[107].mxu0 }
 0x884   : > { %v3029_v33 = vadd.f32 %v3013_v4, %v6312_v1  ;;  %v6326_v56 = vadd.f32 %v2944_v17, %v6298_v31  ;;  %4052 = vmatprep.mubr.f32.mxu1 %v3107_v27 }
 0x885   : > { %v3046_v43 = vmul.f32 0.7978846, %v3030_v29  ;;  %v2984_v52 = vmul.f32 %v6322_v57, %v6322_v57  ;;  %4053 = vmatmul.mubr.f32.gmra.mrb[118].mxu1 %v3108_v10 }
 0x886   : > { %v3045_v23 = vmul.f32 0.7978846, %v3029_v33  ;;  %v2983_v40 = vmul.f32 %v6326_v56, %v6326_v56 }
 0x887   : > { %v3000_v60 = vmul.f32 %v2984_v52, %v6322_v57  ;;  %4564 = vtanh.f32 %v3046_v43 }
 0x888   : > { %v2999_v54 = vmul.f32 %v2983_v40, %v6326_v56  ;;  %4566 = vtanh.f32 %v3045_v23 }
 0x889   : > { %v3016_v0 = vmul.f32 0.044715, %v3000_v60 }
 0x88a   : > { %v3015_v51 = vmul.f32 0.044715, %v2999_v54  ;;  %v4007_v26 = vpop.f32.mrb[108].mxu0 }
 0x88b   : > { %v3032_v44 = vadd.f32 %v3016_v0, %v6322_v57  ;;  %v6336_v24 = vadd.f32 %v4007_v26, %v6298_v31  ;;  %v2954_v38 = vpop.f32.mrb[109].mxu0 }
 0x88c   : > { %v3031_v9 = vadd.f32 %v3015_v51, %v6326_v56  ;;  %v2955_v62 = vadd.f32 %v2954_v38, %v6298_v31 }
 0x88d   : > { %v3048_v59 = vmul.f32 0.7978846, %v3032_v44  ;;  %v2986_v58 = vmul.f32 %v6336_v24, %v6336_v24 }
 0x88e   : > { %v3047_v20 = vmul.f32 0.7978846, %v3031_v9  ;;  %v2985_v2 = vmul.f32 %v2955_v62, %v2955_v62 }
 0x88f   : > { %v3002_v5 = vmul.f32 %v2986_v58, %v6336_v24  ;;  %4568 = vtanh.f32 %v3048_v59 }
 0x890   : > { %v3001_v37 = vmul.f32 %v2985_v2, %v2955_v62  ;;  %4570 = vtanh.f32 %v3047_v20 }
 0x891   : > { %v4565_v47 = vpop.eup %4564  ;;  %v3018_v25 = vmul.f32 0.044715, %v3002_v5 }
 0x892   : > { %v4567_v14 = vpop.eup %4566  ;;  %v3017_v42 = vmul.f32 0.044715, %v3001_v37  ;;  %v4010_v3 = vpop.f32.mrb[110].mxu0  ;;  %v3078_v15 = vadd.f32 1.0, %v4565_v47 }
 0x893   : > { %v3034_v39 = vadd.f32 %v3018_v25, %v6336_v24  ;;  %v2970_v45 = vadd.f32 %v4010_v3, %v6298_v31  ;;  %v2964_v49 = vpop.f32.mrb[111].mxu0  ;;  %v3077_v6 = vadd.f32 1.0, %v4567_v14 }
 0x894   : > { %v3033_v16 = vadd.f32 %v3017_v42, %v2955_v62  ;;  %v2965_v8 = vadd.f32 %v2964_v49, %v6298_v31  ;;  %v3094_v21 = vmul.f32 0.5, %v3078_v15 }
 0x895   : > { %v3050_v48 = vmul.f32 0.7978846, %v3034_v39  ;;  %v2988_v4 = vmul.f32 %v2970_v45, %v2970_v45  ;;  %v3093_v12 = vmul.f32 0.5, %v3077_v6 }
 0x896   : > { %v3049_v27 = vmul.f32 0.7978846, %v3033_v16  ;;  %v2987_v29 = vmul.f32 %v2965_v8, %v2965_v8  ;;  %v3110_v43 = vmul.f32 %v3094_v21, %v6309_v22 }
 0x897   : > { %v3004_v17 = vmul.f32 %v2988_v4, %v2970_v45  ;;  %v3109_v10 = vmul.f32 %v3093_v12, %v6312_v1  ;;  %4572 = vtanh.f32 %v3050_v48 }
 0x898   : > { %v3003_v33 = vmul.f32 %v2987_v29, %v2965_v8  ;;  %4574 = vtanh.f32 %v3049_v27 }
 0x899   : > { %v4569_v52 = vpop.eup %4568  ;;  %v3020_v23 = vmul.f32 0.044715, %v3004_v17  ;;  %4055 = vmatprep.mubr.f32.mxu1 %v3109_v10 }
 0x89a   : > { %v4571_v40 = vpop.eup %4570  ;;  %v3019_v60 = vmul.f32 0.044715, %v3003_v33  ;;  %4056 = vmatmul.mubr.f32.gmra.mrb[120].mxu1 %v3110_v43  ;;  %v3080_v31 = vadd.f32 1.0, %v4569_v52 }
 0x89b   : > { %v3036_v54 = vadd.f32 %v3020_v23, %v2970_v45  ;;  %v3079_v0 = vadd.f32 1.0, %v4571_v40 }
 0x89c   : > { %v3035_v51 = vadd.f32 %v3019_v60, %v2965_v8  ;;  %v3096_v26 = vmul.f32 0.5, %v3080_v31 }
 0x89d   : > { %v3052_v44 = vmul.f32 0.7978846, %v3036_v54  ;;  %v3095_v38 = vmul.f32 0.5, %v3079_v0 }
 0x89e   : > { %v3051_v9 = vmul.f32 0.7978846, %v3035_v51  ;;  %v3112_v22 = vmul.f32 %v3096_v26, %v6322_v57 }
 0x89f   : > { %v3111_v1 = vmul.f32 %v3095_v38, %v6326_v56  ;;  %4576 = vtanh.f32 %v3052_v44 }
 0x8a0   : > { %4578 = vtanh.f32 %v3051_v9 }
 0x8a1   : > { %v4573_v59 = vpop.eup %4572  ;;  %4058 = vmatprep.mubr.f32.mxu1 %v3111_v1 }
 0x8a2   : > { %v4575_v58 = vpop.eup %4574  ;;  %4059 = vmatmul.mubr.f32.gmra.mrb[122].mxu1 %v3112_v22  ;;  %v3082_v20 = vadd.f32 1.0, %v4573_v59 }
 0x8a3   : > { %v3081_v2 = vadd.f32 1.0, %v4575_v58 }
 0x8a4   : > { %v3098_v5 = vmul.f32 0.5, %v3082_v20 }
 0x8a5   : > { %v3097_v37 = vmul.f32 0.5, %v3081_v2 }
 0x8a6   : > { %v3114_v25 = vmul.f32 %v3098_v5, %v6336_v24  ;;  %v6355_v24 = vld [vmem:[%s6409_s1 + $0x9b0] ss:$0 sm:$0xff] }
 0x8a7   : > { %v3113_v47 = vmul.f32 %v3097_v37, %v2955_v62 }
 0x8a9   : > { %v4577_v14 = vpop.eup %4576  ;;  %4061 = vmatprep.mubr.f32.mxu1 %v3113_v47 }
 0x8aa   : > { %v4579_v42 = vpop.eup %4578  ;;  %4062 = vmatmul.mubr.f32.gmra.mrb[124].mxu1 %v3114_v25  ;;  %v3084_v56 = vadd.f32 1.0, %v4577_v14 }
 0x8ab   : > { %v3083_v3 = vadd.f32 1.0, %v4579_v42 }
 0x8ac   : > { %v3100_v15 = vmul.f32 0.5, %v3084_v56 }
 0x8ad   : > { %v3099_v57 = vmul.f32 0.5, %v3083_v3 }
 0x8ae   : > { %v3116_v49 = vmul.f32 %v3100_v15, %v2970_v45  ;;  %v3311_v15 = vld [vmem:[%s6410_s2] sm:$0xff] }
 0x8af   : > { %v3115_v39 = vmul.f32 %v3099_v57, %v2965_v8 }
 0x8b1   : > { %4064 = vmatprep.mubr.f32.mxu1 %v3115_v39 }
 0x8b2   : > { %4065 = vmatmul.mubr.f32.gmra.mrb[126].mxu1 %v3116_v49 }
 0x92f   : > { %v4045_v6 = vpop.f32.mrb[112].mxu1 }
 0x930   : > { %v3279_v62 = vadd.f32 %v4045_v6, %v6171_v41  ;;  %v3199_v16 = vpop.f32.mrb[113].mxu1 }
 0x931   : > { %v3278_v21 = vadd.f32 %v3199_v16, %v6169_v11 }
 0x932   : > { %v3296_v48 = vadd.f32 %v6355_v24, %v3279_v62 }
 0x933   : > { %v3295_v45 = vadd.f32 %v6355_v24, %v3278_v21 }
 0x935   : > { %v4322_v8 = vpack.c.bf16 %v3296_v48, %v3295_v45 }
 0x937   : > { %4323 = vmatpush3.bf16.msra.mxu0 %v4322_v8 }
 0x938   : > { %4324 = vmatprep.subr.bf16.mxu0 %v6440_v7 }
 0x945   : > { %v4048_v13 = vpop.f32.mrb[114].mxu1 }
 0x946   : > { %v3281_v4 = vadd.f32 %v4048_v13, %v6181_v63  ;;  %v3209_v12 = vpop.f32.mrb[115].mxu1 }
 0x947   : > { %v3280_v27 = vadd.f32 %v3209_v12, %v6179_v35 }
 0x948   : > { %v3298_v29 = vadd.f32 %v6355_v24, %v3281_v4 }
 0x949   : > { %v3297_v41 = vadd.f32 %v6355_v24, %v3280_v27 }
 0x94b   : > { %v4325_v17 = vpack.c.bf16 %v3298_v29, %v3297_v41 }
 0x94d   : > { %v4051_v11 = vpop.f32.mrb[116].mxu1  ;;  %4326 = vmatpush3.bf16.msra.mxu0 %v4325_v17 }
 0x94e   : > { %v3283_v10 = vadd.f32 %v4051_v11, %v6191_v61  ;;  %v3219_v33 = vpop.f32.mrb[117].mxu1  ;;  %4327 = vmatprep.subr.bf16.mxu0 %v6440_v7 }
 0x94f   : > { %v3282_v43 = vadd.f32 %v3219_v33, %v6189_v55 }
 0x950   : > { %v3300_v52 = vadd.f32 %v6355_v24, %v3283_v10 }
 0x951   : > { %v3299_v63 = vadd.f32 %v6355_v24, %v3282_v43 }
 0x953   : > { %v4328_v23 = vpack.c.bf16 %v3300_v52, %v3299_v63 }
 0x955   : > { %4329 = vmatpush3.bf16.msra.mxu0 %v4328_v23 }
 0x956   : > { %4330 = vmatprep.subr.bf16.mxu0 %v6440_v7 }
 0x958   : > { %v4054_v35 = vpop.f32.mrb[118].mxu1 }
 0x959   : > { %v3285_v40 = vadd.f32 %v4054_v35, %v6201_v18  ;;  %v3229_v60 = vpop.f32.mrb[119].mxu1 }
 0x95a   : > { %v3284_v31 = vadd.f32 %v3229_v60, %v6199_v34 }
 0x95b   : > { %v3302_v61 = vadd.f32 %v6355_v24, %v3285_v40 }
 0x95c   : > { %v3301_v54 = vadd.f32 %v6355_v24, %v3284_v31 }
 0x95e   : > { %v4331_v0 = vpack.c.bf16 %v3302_v61, %v3301_v54 }
 0x960   : > { %4332 = vmatpush3.bf16.msra.mxu0 %v4331_v0 }
 0x961   : > { %4333 = vmatprep.subr.bf16.mxu0 %v6440_v7 }
 0x96d   : > { %v4057_v55 = vpop.f32.mrb[120].mxu1 }
 0x96e   : > { %v3287_v51 = vadd.f32 %v4057_v55, %v6211_v32  ;;  %v3239_v26 = vpop.f32.mrb[121].mxu1 }
 0x96f   : > { %v3286_v44 = vadd.f32 %v3239_v26, %v6209_v30 }
 0x970   : > { %v3304_v38 = vadd.f32 %v6355_v24, %v3287_v51 }
 0x971   : > { %v3303_v18 = vadd.f32 %v6355_v24, %v3286_v44 }
 0x973   : > { %v4334_v9 = vpack.c.bf16 %v3304_v38, %v3303_v18 }
 0x975   : > { %v4060_v34 = vpop.f32.mrb[122].mxu1  ;;  %4335 = vmatpush3.bf16.msra.mxu0 %v4334_v9 }
 0x976   : > { %v3289_v1 = vadd.f32 %v4060_v34, %v6221_v36  ;;  %v3249_v22 = vpop.f32.mrb[123].mxu1  ;;  %4336 = vmatprep.subr.bf16.mxu0 %v6440_v7 }
 0x977   : > { %v3288_v59 = vadd.f32 %v3249_v22, %v6219_v28 }
 0x978   : > { %v3306_v58 = vadd.f32 %v6355_v24, %v3289_v1 }
 0x979   : > { %v3305_v32 = vadd.f32 %v6355_v24, %v3288_v59 }
 0x97b   : > { %v4337_v20 = vpack.c.bf16 %v3306_v58, %v3305_v32 }
 0x97d   : > { %v4063_v30 = vpop.f32.mrb[124].mxu1  ;;  %4338 = vmatpush3.bf16.msra.mxu0 %v4337_v20 }
 0x97e   : > { %v3291_v2 = vadd.f32 %v4063_v30, %v6231_v53  ;;  %v3259_v5 = vpop.f32.mrb[125].mxu1  ;;  %4339 = vmatprep.subr.bf16.mxu0 %v6440_v7 }
 0x97f   : > { %v3290_v37 = vadd.f32 %v3259_v5, %v6229_v19 }
 0x980   : > { %v3308_v36 = vadd.f32 %v6355_v24, %v3291_v2 }
 0x981   : > { %v3307_v28 = vadd.f32 %v6355_v24, %v3290_v37 }
 0x983   : > { %v4340_v47 = vpack.c.bf16 %v3308_v36, %v3307_v28 }
 0x985   : > { %v4066_v25 = vpop.f32.mrb[126].mxu1  ;;  %4341 = vmatpush3.bf16.msra.mxu0 %v4340_v47 }
 0x986   : > { %v3293_v14 = vadd.f32 %v4066_v25, %v6241_v50  ;;  %v3269_v42 = vpop.f32.mrb[127].mxu1  ;;  %4342 = vmatprep.subr.bf16.mxu0 %v6440_v7 }
 0x987   : > { %v3292_v53 = vadd.f32 %v3269_v42, %v6239_v46 }
 0x988   : > { %v3310_v56 = vadd.f32 %v6355_v24, %v3293_v14 }
 0x989   : > { %v3309_v19 = vadd.f32 %v6355_v24, %v3292_v53 }
 0x98b   : > { %v4343_v3 = vpack.c.bf16 %v3310_v56, %v3309_v19 }
 0x98d   : > { %4344 = vmatpush3.bf16.msra.mxu0 %v4343_v3 }
 0x990   : > { %4100 = vmatmul.mubr.f32.vlgmr.msra.gmra.mrb[112].mxu0 %v3311_v15 }
 0xa63   : > { %v3378_v7 = vpop.f32.mrb[112].mxu0 }
 0xa64   : > { %3382 = vst.msk [vmem:[%s173_s18] sm:$0xff] %vm2243_vm2, %v3378_v7  ;;  %v4101_v46 = vpop.f32.mrb[113].mxu0 }
 0xa65 PF: > { %s13_s12 = sadd.s32 1, %s4586_s12  }
 0xa66   : > { %p10_p5 = scmp.ge.s32.totalorder %s13_s12, 4  }
 0xa68   :  { %12 = sbr.rel (!%p10_p5) target bundleno = 1 (0x1), region = 64 }

</bundles_post_ra>
